<compile_context>
chip_gen: v5e
topology: v5e:2x2
jax: 0.10.0
libtpu: 0.0.40
codegen_flags: <defaults>
</compile_context>

<pallas_src>
import functools

import jax
import jax.numpy as jnp
from jax import lax
from jax.experimental import pallas as pl
from jax.experimental.pallas import tpu as pltpu

BN_EPS = 1e-5
LANE = 128
# v7x has 64 MiB physical VMEM per TensorCore: 48 MiB scoped leaves headroom. On v5e/v6e
# (128 MiB physical) this can be raised toward ~96 MiB for larger tiles / deeper buffering.
VMEM_LIMIT = 48 * 1024 * 1024


def _round_up(x, m):
    return (x + m - 1) // m * m


# ---------------------------------------------------------------------------
# Kernels
# ---------------------------------------------------------------------------
def _conv_block_kernel(x_ref, w_ref, scale_ref, shift_ref,   # inputs
                       y_ref, stats_ref,                     # outputs
                       xpad_ref,                             # VMEM scratch
                       *, apply_act):
    """One image: [optional fused scale/shift+ReLU on the input] -> Conv2d(3x3, pad=1)
       -> raw (pre-BN) output + per-channel (sum, sumsq) for the following BatchNorm fold.

    x_ref     : (1, H, W, Ci)   bf16, lane-padded input channels
    w_ref     : (3, 3, Ci, Co)  bf16, lane-padded HWIO weights
    scale_ref : (1, Ci) f32     previous BN fold scale  (used iff apply_act)
    shift_ref : (1, Ci) f32     previous BN fold shift
    y_ref     : (1, H, W, Co)   bf16 raw conv output (pre-BN)
    stats_ref : (1, 2, Co) f32  [sum, sumsq] over this image's H*W positions
    xpad_ref  : (H+2, W+2, Ci)  f32 VMEM scratch with zero halo built in-kernel
    """
    H, W = y_ref.shape[1], y_ref.shape[2]
    Ci = x_ref.shape[3]
    Co = y_ref.shape[3]

    x = x_ref[0].astype(jnp.float32)                          # (H, W, Ci)
    if apply_act:
        # Previous block's folded BN (scale/shift) + ReLU, fused into this conv's input path.
        x = jnp.maximum(x * scale_ref[0] + shift_ref[0], 0.0)

    # Zero-padded halo in VMEM. Only the 1-pixel perimeter is re-zeroed each step (the
    # interior is overwritten below), so the kernel stays correct regardless of how the
    # "parallel" batch axis is sharded across TensorCores, at ~30x less store traffic
    # than a full memset.
    xpad_ref[0:1, :, :] = jnp.zeros((1, W + 2, Ci), jnp.float32)
    xpad_ref[H + 1:H + 2, :, :] = jnp.zeros((1, W + 2, Ci), jnp.float32)
    xpad_ref[1:H + 1, 0:1, :] = jnp.zeros((H, 1, Ci), jnp.float32)
    xpad_ref[1:H + 1, W + 1:W + 2, :] = jnp.zeros((H, 1, Ci), jnp.float32)
    xpad_ref[1:H + 1, 1:W + 1, :] = x

    # 3x3 conv as 9 (H*W, Ci) @ (Ci, Co) MXU matmuls: bf16 operands, f32 accumulation in a
    # compiler-managed value (no VMEM accumulator read-modify-write).
    acc = jnp.zeros((H * W, Co), jnp.float32)
    for dh in range(3):
        for dw in range(3):
            patch = xpad_ref[dh:dh + H, dw:dw + W, :].reshape(H * W, Ci)
            acc = acc + jnp.dot(patch.astype(jnp.bfloat16), w_ref[dh, dw],
                                preferred_element_type=jnp.float32)

    y_ref[...] = acc.reshape(1, H, W, Co).astype(y_ref.dtype)

    # Per-channel partial statistics from the f32 accumulator (reduced across batch in JAX).
    s1 = jnp.sum(acc, axis=0, keepdims=True)                  # (1, Co)
    s2 = jnp.sum(acc * acc, axis=0, keepdims=True)            # (1, Co)
    stats_ref[...] = jnp.concatenate([s1, s2], axis=0).reshape(1, 2, Co)


def _bn_relu_crop_kernel(y_ref, scale_ref, shift_ref, o_ref):
    """Final folded BatchNorm (scale/shift) + ReLU, with the channel crop (padded -> real Cout)
    fused into the store (single masked-lane store instead of an extra XLA slice pass)."""
    cout = o_ref.shape[3]
    y = y_ref[...][:, :, :, :cout].astype(jnp.float32)        # (1, H, W, Cout)
    o_ref[...] = jnp.maximum(y * scale_ref[0] + shift_ref[0], 0.0)


# ---------------------------------------------------------------------------
# pallas_call wrappers
# ---------------------------------------------------------------------------
def _conv_block(x, w, scale, shift, *, apply_act):
    N, H, W, Ci = x.shape
    Co = w.shape[-1]
    kernel = functools.partial(_conv_block_kernel, apply_act=apply_act)
    y, stats = pl.pallas_call(
        kernel,
        out_shape=(jax.ShapeDtypeStruct((N, H, W, Co), jnp.bfloat16),
                   jax.ShapeDtypeStruct((N, 2, Co), jnp.float32)),
        grid_spec=pltpu.PrefetchScalarGridSpec(
            num_scalar_prefetch=0,
            grid=(N,),
            in_specs=[
                pl.BlockSpec((1, H, W, Ci), lambda n: (n, 0, 0, 0)),
                pl.BlockSpec((3, 3, Ci, Co), lambda n: (0, 0, 0, 0)),
                pl.BlockSpec((1, Ci), lambda n: (0, 0)),
                pl.BlockSpec((1, Ci), lambda n: (0, 0)),
            ],
            out_specs=[
                pl.BlockSpec((1, H, W, Co), lambda n: (n, 0, 0, 0)),
                pl.BlockSpec((1, 2, Co), lambda n: (n, 0, 0)),
            ],
            scratch_shapes=[pltpu.VMEM((H + 2, W + 2, Ci), jnp.float32)]),
        compiler_params=pltpu.CompilerParams(
            dimension_semantics=("parallel",),      # batch axis shards across v7x's 2 TCs
            vmem_limit_bytes=VMEM_LIMIT),
    )(x, w, scale, shift)
    return y, stats


def _bn_relu_crop(y, scale, shift, cout):
    N, H, W, Cp = y.shape
    return pl.pallas_call(
        _bn_relu_crop_kernel,
        out_shape=jax.ShapeDtypeStruct((N, H, W, cout), jnp.float32),
        grid_spec=pltpu.PrefetchScalarGridSpec(
            num_scalar_prefetch=0,
            grid=(N,),
            in_specs=[
                pl.BlockSpec((1, H, W, Cp), lambda n: (n, 0, 0, 0)),
                pl.BlockSpec((1, cout), lambda n: (0, 0)),
                pl.BlockSpec((1, cout), lambda n: (0, 0)),
            ],
            out_specs=pl.BlockSpec((1, H, W, cout), lambda n: (n, 0, 0, 0))),
        compiler_params=pltpu.CompilerParams(
            dimension_semantics=("parallel",),
            vmem_limit_bytes=VMEM_LIMIT),
    )(y, scale, shift)


def _bn_fold(stats, gamma, beta, count):
    """Fold training-mode BN into per-channel scale/shift from accumulated sum/sumsq (f32)."""
    s = jnp.sum(stats[:, 0, :], axis=0)                       # (C,)
    ss = jnp.sum(stats[:, 1, :], axis=0)                      # (C,)
    mean = s / count
    var = jnp.maximum(ss / count - mean * mean, 0.0)
    scale = gamma * lax.rsqrt(var + BN_EPS)
    shift = beta - mean * scale
    return scale, shift


def _pad_last(a, target):
    pad = target - a.shape[-1]
    if pad == 0:
        return a
    return jnp.pad(a, [(0, 0)] * (a.ndim - 1) + [(0, pad)])


def _pad_weight(w, ci_p, co_p):
    return jnp.pad(w, [(0, 0), (0, 0), (0, ci_p - w.shape[2]), (0, co_p - w.shape[3])])


@jax.jit
def double_conv(x_nchw, params):
    """Pallas DoubleConv forward. Input/Output: NCHW (PyTorch convention)."""
    N, Cin, H, W = x_nchw.shape
    Cout = params["g1"].shape[0]
    ci_p = _round_up(Cin, LANE)
    co_p = _round_up(Cout, LANE)

    # NCHW -> NHWC once, channels zero-padded to a multiple of 128, bf16 in HBM.
    x = jnp.transpose(x_nchw, (0, 2, 3, 1)).astype(jnp.float32)
    x = _pad_last(x, ci_p).astype(jnp.bfloat16)

    w1 = _pad_weight(params["w1"].astype(jnp.float32), ci_p, co_p).astype(jnp.bfloat16)
    w2 = _pad_weight(params["w2"].astype(jnp.float32), co_p, co_p).astype(jnp.bfloat16)
    g1 = _pad_last(params["g1"].astype(jnp.float32), co_p)
    bt1 = _pad_last(params["beta1"].astype(jnp.float32), co_p)
    g2 = _pad_last(params["g2"].astype(jnp.float32), co_p)
    bt2 = _pad_last(params["beta2"].astype(jnp.float32), co_p)
    # params["b1"] / params["b2"] (conv biases) are intentionally unused: a per-channel constant
    # is exactly cancelled by training-mode BN mean subtraction.

    dummy = jnp.zeros((1, ci_p), jnp.float32)
    count = float(N * H * W)

    # Block 1: conv1 (no input activation), raw bf16 output + f32 stats.
    y1, st1 = _conv_block(x, w1, dummy, dummy, apply_act=False)
    scale1, shift1 = _bn_fold(st1, g1, bt1, count)

    # Block 2: BN1+ReLU fused into conv2's input path, raw bf16 output + f32 stats.
    y2, st2 = _conv_block(y1, w2, scale1.reshape(1, -1), shift1.reshape(1, -1), apply_act=True)
    scale2, shift2 = _bn_fold(st2, g2, bt2, count)

    # Final folded BN2 + ReLU with the channel crop fused into the kernel's store.
    out = _bn_relu_crop(y2, scale2[:Cout].reshape(1, -1), shift2[:Cout].reshape(1, -1), Cout)
    # NHWC -> NCHW on the already-cropped (small) activation.
    return jnp.transpose(out, (0, 3, 1, 2))


# ---------------------------------------------------------------------------
# References
# ---------------------------------------------------------------------------
@jax.jit
def double_conv_ref_f32(x_nchw, params):
    """Pure-f32 JAX reference with exact PyTorch semantics (incl. conv bias)."""
    def block(x, w, b, g, bt):
        y = lax.conv_general_dilated(
            x, w, window_strides=(1, 1), padding="SAME",
            dimension_numbers=("NHWC", "HWIO", "NHWC")) + b
        m = jnp.mean(y, axis=(0, 1, 2), keepdims=True)
        v = jnp.mean((y - m) ** 2, axis=(0, 1, 2), keepdims=True)
        return jnp.maximum((y - m) * lax.rsqrt(v + BN_EPS) * g + bt, 0.0)

    x = jnp.transpose(x_nchw, (0, 2, 3, 1)).astype(jnp.float32)
    y = block(x, params["w1"], params["b1"], params["g1"], params["beta1"])
    y = block(y, params["w2"], params["b2"], params["g2"], params["beta2"])
    return jnp.transpose(y, (0, 3, 1, 2))


@jax.jit
def double_conv_ref_bf16(x_nchw, params):
    """JAX reference mirroring the kernel's bf16 quantization points (tight check)."""
    def conv(xb, w):
        return lax.conv_general_dilated(
            xb, w.astype(jnp.bfloat16), window_strides=(1, 1), padding="SAME",
            dimension_numbers=("NHWC", "HWIO", "NHWC"),
            preferred_element_type=jnp.float32)

    def fold(y, g, bt):
        m = jnp.mean(y, axis=(0, 1, 2))
        v = jnp.maximum(jnp.mean(jnp.square(y), axis=(0, 1, 2)) - m * m, 0.0)
        sc = g * lax.rsqrt(v + BN_EPS)
        return sc, bt - m * sc

    x = jnp.transpose(x_nchw, (0, 2, 3, 1)).astype(jnp.float32).astype(jnp.bfloat16)
    y1 = conv(x, params["w1"])                                # bias cancels under batch-stat BN
    sc1, sh1 = fold(y1, params["g1"], params["beta1"])
    t = jnp.maximum(y1.astype(jnp.bfloat16).astype(jnp.float32) * sc1 + sh1, 0.0)
    y2 = conv(t.astype(jnp.bfloat16), params["w2"])
    sc2, sh2 = fold(y2, params["g2"], params["beta2"])
    out = jnp.maximum(y2.astype(jnp.bfloat16).astype(jnp.float32) * sc2 + sh2, 0.0)
    return jnp.transpose(out, (0, 3, 1, 2))


if __name__ == "__main__":
    # Small DoubleConv-consistent shapes: N=2, in_channels=4, out_channels=8, 16x16 spatial.
    N, Cin, Cout, H, W = 2, 4, 8, 16, 16
    key = jax.random.PRNGKey(0)
    ks = jax.random.split(key, 9)

    params = {
        "w1": 0.1 * jax.random.normal(ks[0], (3, 3, Cin, Cout), jnp.float32),   # HWIO
        "b1": 0.1 * jax.random.normal(ks[1], (Cout,), jnp.float32),
        "g1": 1.0 + 0.1 * jax.random.normal(ks[2], (Cout,), jnp.float32),
        "beta1": 0.1 * jax.random.normal(ks[3], (Cout,), jnp.float32),
        "w2": 0.1 * jax.random.normal(ks[4], (3, 3, Cout, Cout), jnp.float32),  # HWIO
        "b2": 0.1 * jax.random.normal(ks[5], (Cout,), jnp.float32),
        "g2": 1.0 + 0.1 * jax.random.normal(ks[6], (Cout,), jnp.float32),
        "beta2": 0.1 * jax.random.normal(ks[7], (Cout,), jnp.float32),
    }
    x = jax.random.normal(ks[8], (N, Cin, H, W), jnp.float32)   # NCHW, like PyTorch

    out = jax.block_until_ready(double_conv(x, params))
    assert out.shape == (N, Cout, H, W), out.shape

    # Tight check against a reference with matching bf16 quantization points.
    ref_b = jax.block_until_ready(double_conv_ref_bf16(x, params))
    err_b = float(jnp.max(jnp.abs(out - ref_b)))
    assert jnp.allclose(out, ref_b, atol=2e-2, rtol=2e-2), f"bf16-matched max abs err {err_b}"

    # Semantics check against the exact f32 PyTorch-equivalent module (bf16-sized tolerance).
    ref_f = jax.block_until_ready(double_conv_ref_f32(x, params))
    err_f = float(jnp.max(jnp.abs(out - ref_f)))
    assert jnp.allclose(out, ref_f, atol=1e-1, rtol=5e-2), f"f32-ref max abs err {err_f}"

    print("KERNEL_OK")
</pallas_src>

<mosaic_0001>
module attributes {stable_mosaic.version = 11 : i64} {
  func.func @_bn_relu_crop_kernel(%arg0: i32, %arg1: memref<1x16x16x128xbf16, #tpu.memory_space<vmem>>, %arg2: memref<1x8xf32, #tpu.memory_space<vmem>>, %arg3: memref<1x8xf32, #tpu.memory_space<vmem>>, %arg4: memref<1x16x16x8xf32, #tpu.memory_space<vmem>>) attributes {dimension_semantics = [#tpu.dimension_semantics<parallel>], iteration_bounds = array<i64: 2>, scalar_prefetch = 0 : i64, scratch_operands = 0 : i64, tpu.core_type = #tpu.core_type<tc>, window_params = [{transform_indices = @transform_0, window_bounds = array<i64: 1, 16, 16, 128>}, {pipeline_mode = #tpu.pipeline_mode<synchronous>, transform_indices = @transform_1, window_bounds = array<i64: 1, 8>}, {pipeline_mode = #tpu.pipeline_mode<synchronous>, transform_indices = @transform_2, window_bounds = array<i64: 1, 8>}, {transform_indices = @transform_3, window_bounds = array<i64: 1, 16, 16, 8>}]} {
    %c0 = arith.constant 0 : index
    %c0_0 = arith.constant 0 : index
    %c0_1 = arith.constant 0 : index
    %c0_2 = arith.constant 0 : index
    %0 = vector.load %arg1[%c0, %c0_0, %c0_1, %c0_2] : memref<1x16x16x128xbf16, #tpu.memory_space<vmem>>, vector<1x16x16x128xbf16>
    %1 = vector.extract_strided_slice %0 {offsets = [0, 0, 0, 0], sizes = [1, 16, 16, 8], strides = [1, 1, 1, 1]} : vector<1x16x16x128xbf16> to vector<1x16x16x8xbf16>
    %2 = arith.extf %1 : vector<1x16x16x8xbf16> to vector<1x16x16x8xf32>
    %c0_3 = arith.constant 0 : index
    %c0_4 = arith.constant 0 : index
    %3 = vector.load %arg2[%c0_3, %c0_4] : memref<1x8xf32, #tpu.memory_space<vmem>>, vector<1x8xf32>
    %4 = vector.shape_cast %3 : vector<1x8xf32> to vector<8xf32>
    %5 = vector.shape_cast %4 : vector<8xf32> to vector<1x1x1x8xf32>
    %6 = vector.broadcast %5 : vector<1x1x1x8xf32> to vector<1x16x16x8xf32>
    %7 = arith.mulf %2, %6 : vector<1x16x16x8xf32>
    %c0_5 = arith.constant 0 : index
    %c0_6 = arith.constant 0 : index
    %8 = vector.load %arg3[%c0_5, %c0_6] : memref<1x8xf32, #tpu.memory_space<vmem>>, vector<1x8xf32>
    %9 = vector.shape_cast %8 : vector<1x8xf32> to vector<8xf32>
    %10 = vector.shape_cast %9 : vector<8xf32> to vector<1x1x1x8xf32>
    %11 = vector.broadcast %10 : vector<1x1x1x8xf32> to vector<1x16x16x8xf32>
    %12 = arith.addf %7, %11 : vector<1x16x16x8xf32>
    %cst = arith.constant 0.000000e+00 : f32
    %13 = vector.broadcast %cst : f32 to vector<1x16x16x8xf32>
    %14 = arith.maximumf %12, %13 : vector<1x16x16x8xf32>
    %c0_7 = arith.constant 0 : index
    %c0_8 = arith.constant 0 : index
    %c0_9 = arith.constant 0 : index
    %c0_10 = arith.constant 0 : index
    %15 = vector.load %arg4[%c0_7, %c0_8, %c0_9, %c0_10] : memref<1x16x16x8xf32, #tpu.memory_space<vmem>>, vector<1x16x16x8xf32>
    tpu.vector_store %arg4[%c0_7, %c0_8, %c0_9, %c0_10], %14 {strides = array<i32>} : memref<1x16x16x8xf32, #tpu.memory_space<vmem>>, vector<1x16x16x8xf32>,
    return
  }
  func.func @transform_0(%arg0: i32) -> (i32, i32, i32, i32) {
    %c0_i32 = arith.constant 0 : i32
    %c0_i32_0 = arith.constant 0 : i32
    %c0_i32_1 = arith.constant 0 : i32
    %c0_i32_2 = arith.constant 0 : i32
    return %arg0, %c0_i32, %c0_i32_0, %c0_i32_1 : i32, i32, i32, i32
  }
  func.func @transform_1(%arg0: i32) -> (i32, i32) {
    %c0_i32 = arith.constant 0 : i32
    %c0_i32_0 = arith.constant 0 : i32
    %c0_i32_1 = arith.constant 0 : i32
    return %c0_i32, %c0_i32_0 : i32, i32
  }
  func.func @transform_2(%arg0: i32) -> (i32, i32) {
    %c0_i32 = arith.constant 0 : i32
    %c0_i32_0 = arith.constant 0 : i32
    %c0_i32_1 = arith.constant 0 : i32
    return %c0_i32, %c0_i32_0 : i32, i32
  }
  func.func @transform_3(%arg0: i32) -> (i32, i32, i32, i32) {
    %c0_i32 = arith.constant 0 : i32
    %c0_i32_0 = arith.constant 0 : i32
    %c0_i32_1 = arith.constant 0 : i32
    %c0_i32_2 = arith.constant 0 : i32
    return %arg0, %c0_i32, %c0_i32_0, %c0_i32_1 : i32, i32, i32, i32
  }
}

module attributes {stable_mosaic.version = 11 : i64} {
  func.func @_conv_block_kernel(%arg0: i32, %arg1: memref<1x16x16x128xbf16, #tpu.memory_space<vmem>>, %arg2: memref<3x3x128x128xbf16, #tpu.memory_space<vmem>>, %arg3: memref<1x128xf32, #tpu.memory_space<vmem>>, %arg4: memref<1x128xf32, #tpu.memory_space<vmem>>, %arg5: memref<1x16x16x128xbf16, #tpu.memory_space<vmem>>, %arg6: memref<1x2x128xf32, #tpu.memory_space<vmem>>, %arg7: memref<18x18x128xf32, #tpu.memory_space<vmem>>) attributes {dimension_semantics = [#tpu.dimension_semantics<parallel>], iteration_bounds = array<i64: 2>, scalar_prefetch = 0 : i64, scratch_operands = 1 : i64, tpu.core_type = #tpu.core_type<tc>, window_params = [{transform_indices = @transform_0, window_bounds = array<i64: 1, 16, 16, 128>}, {pipeline_mode = #tpu.pipeline_mode<synchronous>, transform_indices = @transform_1, window_bounds = array<i64: 3, 3, 128, 128>}, {pipeline_mode = #tpu.pipeline_mode<synchronous>, transform_indices = @transform_2, window_bounds = array<i64: 1, 128>}, {pipeline_mode = #tpu.pipeline_mode<synchronous>, transform_indices = @transform_3, window_bounds = array<i64: 1, 128>}, {transform_indices = @transform_4, window_bounds = array<i64: 1, 16, 16, 128>}, {transform_indices = @transform_5, window_bounds = array<i64: 1, 2, 128>}]} {
    %c0 = arith.constant 0 : index
    %c0_0 = arith.constant 0 : index
    %c0_1 = arith.constant 0 : index
    %c0_2 = arith.constant 0 : index
    %0 = vector.load %arg1[%c0, %c0_0, %c0_1, %c0_2] : memref<1x16x16x128xbf16, #tpu.memory_space<vmem>>, vector<1x16x16x128xbf16>
    %1 = vector.shape_cast %0 : vector<1x16x16x128xbf16> to vector<16x16x128xbf16>
    %2 = arith.extf %1 : vector<16x16x128xbf16> to vector<16x16x128xf32>
    %cst = arith.constant 0.000000e+00 : f32
    %3 = vector.broadcast %cst : f32 to vector<1x18x128xf32>
    %c0_3 = arith.constant 0 : index
    %c0_4 = arith.constant 0 : index
    %c0_5 = arith.constant 0 : index
    %4 = vector.load %arg7[%c0_3, %c0_4, %c0_5] : memref<18x18x128xf32, #tpu.memory_space<vmem>>, vector<1x18x128xf32>
    tpu.vector_store %arg7[%c0_3, %c0_4, %c0_5], %3 {strides = array<i32>} : memref<18x18x128xf32, #tpu.memory_space<vmem>>, vector<1x18x128xf32>,
    %cst_6 = arith.constant 0.000000e+00 : f32
    %5 = vector.broadcast %cst_6 : f32 to vector<1x18x128xf32>
    %c17 = arith.constant 17 : index
    %c0_7 = arith.constant 0 : index
    %c0_8 = arith.constant 0 : index
    %6 = vector.load %arg7[%c17, %c0_7, %c0_8] : memref<18x18x128xf32, #tpu.memory_space<vmem>>, vector<1x18x128xf32>
    tpu.vector_store %arg7[%c17, %c0_7, %c0_8], %5 {strides = array<i32>} : memref<18x18x128xf32, #tpu.memory_space<vmem>>, vector<1x18x128xf32>,
    %cst_9 = arith.constant 0.000000e+00 : f32
    %7 = vector.broadcast %cst_9 : f32 to vector<16x1x128xf32>
    %c1 = arith.constant 1 : index
    %c0_10 = arith.constant 0 : index
    %c0_11 = arith.constant 0 : index
    %8 = vector.load %arg7[%c1, %c0_10, %c0_11] : memref<18x18x128xf32, #tpu.memory_space<vmem>>, vector<16x1x128xf32>
    tpu.vector_store %arg7[%c1, %c0_10, %c0_11], %7 {strides = array<i32>} : memref<18x18x128xf32, #tpu.memory_space<vmem>>, vector<16x1x128xf32>,
    %cst_12 = arith.constant 0.000000e+00 : f32
    %9 = vector.broadcast %cst_12 : f32 to vector<16x1x128xf32>
    %c1_13 = arith.constant 1 : index
    %c17_14 = arith.constant 17 : index
    %c0_15 = arith.constant 0 : index
    %10 = vector.load %arg7[%c1_13, %c17_14, %c0_15] : memref<18x18x128xf32, #tpu.memory_space<vmem>>, vector<16x1x128xf32>
    tpu.vector_store %arg7[%c1_13, %c17_14, %c0_15], %9 {strides = array<i32>} : memref<18x18x128xf32, #tpu.memory_space<vmem>>, vector<16x1x128xf32>,
    %c1_16 = arith.constant 1 : index
    %c1_17 = arith.constant 1 : index
    %c0_18 = arith.constant 0 : index
    %11 = vector.load %arg7[%c1_16, %c1_17, %c0_18] : memref<18x18x128xf32, #tpu.memory_space<vmem>>, vector<16x16x128xf32>
    tpu.vector_store %arg7[%c1_16, %c1_17, %c0_18], %2 {strides = array<i32>} : memref<18x18x128xf32, #tpu.memory_space<vmem>>, vector<16x16x128xf32>,
    %cst_19 = arith.constant 0.000000e+00 : f32
    %12 = vector.broadcast %cst_19 : f32 to vector<256x128xf32>
    %c0_20 = arith.constant 0 : index
    %c0_21 = arith.constant 0 : index
    %c0_22 = arith.constant 0 : index
    %13 = vector.load %arg7[%c0_20, %c0_21, %c0_22] : memref<18x18x128xf32, #tpu.memory_space<vmem>>, vector<16x16x128xf32>
    %14 = vector.shape_cast %13 : vector<16x16x128xf32> to vector<256x128xf32>
    %15 = arith.truncf %14 : vector<256x128xf32> to vector<256x128xbf16>
    %c0_23 = arith.constant 0 : index
    %c0_24 = arith.constant 0 : index
    %c0_25 = arith.constant 0 : index
    %c0_26 = arith.constant 0 : index
    %16 = vector.load %arg2[%c0_23, %c0_24, %c0_25, %c0_26] : memref<3x3x128x128xbf16, #tpu.memory_space<vmem>>, vector<1x1x128x128xbf16>
    %17 = vector.shape_cast %16 : vector<1x1x128x128xbf16> to vector<128x128xbf16>
    %cst_27 = arith.constant dense<0.000000e+00> : vector<256x128xf32>
    %18 = tpu.matmul %15, %17, %cst_27 {dimension_numbers = #tpu.dot_dimension_numbers<[1], [0], [0], [1], [0, 0, 1, 1], [], []>} : vector<256x128xbf16>, vector<128x128xbf16>, vector<256x128xf32> -> vector<256x128xf32>
    %19 = arith.addf %12, %18 : vector<256x128xf32>
    %c0_28 = arith.constant 0 : index
    %c1_29 = arith.constant 1 : index
    %c0_30 = arith.constant 0 : index
    %20 = vector.load %arg7[%c0_28, %c1_29, %c0_30] : memref<18x18x128xf32, #tpu.memory_space<vmem>>, vector<16x16x128xf32>
    %21 = vector.shape_cast %20 : vector<16x16x128xf32> to vector<256x128xf32>
    %22 = arith.truncf %21 : vector<256x128xf32> to vector<256x128xbf16>
    %c0_31 = arith.constant 0 : index
    %c1_32 = arith.constant 1 : index
    %c0_33 = arith.constant 0 : index
    %c0_34 = arith.constant 0 : index
    %23 = vector.load %arg2[%c0_31, %c1_32, %c0_33, %c0_34] : memref<3x3x128x128xbf16, #tpu.memory_space<vmem>>, vector<1x1x128x128xbf16>
    %24 = vector.shape_cast %23 : vector<1x1x128x128xbf16> to vector<128x128xbf16>
    %cst_35 = arith.constant dense<0.000000e+00> : vector<256x128xf32>
    %25 = tpu.matmul %22, %24, %cst_35 {dimension_numbers = #tpu.dot_dimension_numbers<[1], [0], [0], [1], [0, 0, 1, 1], [], []>} : vector<256x128xbf16>, vector<128x128xbf16>, vector<256x128xf32> -> vector<256x128xf32>
    %26 = arith.addf %19, %25 : vector<256x128xf32>
    %c0_36 = arith.constant 0 : index
    %c2 = arith.constant 2 : index
    %c0_37 = arith.constant 0 : index
    %27 = vector.load %arg7[%c0_36, %c2, %c0_37] : memref<18x18x128xf32, #tpu.memory_space<vmem>>, vector<16x16x128xf32>
    %28 = vector.shape_cast %27 : vector<16x16x128xf32> to vector<256x128xf32>
    %29 = arith.truncf %28 : vector<256x128xf32> to vector<256x128xbf16>
    %c0_38 = arith.constant 0 : index
    %c2_39 = arith.constant 2 : index
    %c0_40 = arith.constant 0 : index
    %c0_41 = arith.constant 0 : index
    %30 = vector.load %arg2[%c0_38, %c2_39, %c0_40, %c0_41] : memref<3x3x128x128xbf16, #tpu.memory_space<vmem>>, vector<1x1x128x128xbf16>
    %31 = vector.shape_cast %30 : vector<1x1x128x128xbf16> to vector<128x128xbf16>
    %cst_42 = arith.constant dense<0.000000e+00> : vector<256x128xf32>
    %32 = tpu.matmul %29, %31, %cst_42 {dimension_numbers = #tpu.dot_dimension_numbers<[1], [0], [0], [1], [0, 0, 1, 1], [], []>} : vector<256x128xbf16>, vector<128x128xbf16>, vector<256x128xf32> -> vector<256x128xf32>
    %33 = arith.addf %26, %32 : vector<256x128xf32>
    %c1_43 = arith.constant 1 : index
    %c0_44 = arith.constant 0 : index
    %c0_45 = arith.constant 0 : index
    %34 = vector.load %arg7[%c1_43, %c0_44, %c0_45] : memref<18x18x128xf32, #tpu.memory_space<vmem>>, vector<16x16x128xf32>
    %35 = vector.shape_cast %34 : vector<16x16x128xf32> to vector<256x128xf32>
    %36 = arith.truncf %35 : vector<256x128xf32> to vector<256x128xbf16>
    %c1_46 = arith.constant 1 : index
    %c0_47 = arith.constant 0 : index
    %c0_48 = arith.constant 0 : index
    %c0_49 = arith.constant 0 : index
    %37 = vector.load %arg2[%c1_46, %c0_47, %c0_48, %c0_49] : memref<3x3x128x128xbf16, #tpu.memory_space<vmem>>, vector<1x1x128x128xbf16>
    %38 = vector.shape_cast %37 : vector<1x1x128x128xbf16> to vector<128x128xbf16>
    %cst_50 = arith.constant dense<0.000000e+00> : vector<256x128xf32>
    %39 = tpu.matmul %36, %38, %cst_50 {dimension_numbers = #tpu.dot_dimension_numbers<[1], [0], [0], [1], [0, 0, 1, 1], [], []>} : vector<256x128xbf16>, vector<128x128xbf16>, vector<256x128xf32> -> vector<256x128xf32>
    %40 = arith.addf %33, %39 : vector<256x128xf32>
    %c1_51 = arith.constant 1 : index
    %c1_52 = arith.constant 1 : index
    %c0_53 = arith.constant 0 : index
    %41 = vector.load %arg7[%c1_51, %c1_52, %c0_53] : memref<18x18x128xf32, #tpu.memory_space<vmem>>, vector<16x16x128xf32>
    %42 = vector.shape_cast %41 : vector<16x16x128xf32> to vector<256x128xf32>
    %43 = arith.truncf %42 : vector<256x128xf32> to vector<256x128xbf16>
    %c1_54 = arith.constant 1 : index
    %c1_55 = arith.constant 1 : index
    %c0_56 = arith.constant 0 : index
    %c0_57 = arith.constant 0 : index
    %44 = vector.load %arg2[%c1_54, %c1_55, %c0_56, %c0_57] : memref<3x3x128x128xbf16, #tpu.memory_space<vmem>>, vector<1x1x128x128xbf16>
    %45 = vector.shape_cast %44 : vector<1x1x128x128xbf16> to vector<128x128xbf16>
    %cst_58 = arith.constant dense<0.000000e+00> : vector<256x128xf32>
    %46 = tpu.matmul %43, %45, %cst_58 {dimension_numbers = #tpu.dot_dimension_numbers<[1], [0], [0], [1], [0, 0, 1, 1], [], []>} : vector<256x128xbf16>, vector<128x128xbf16>, vector<256x128xf32> -> vector<256x128xf32>
    %47 = arith.addf %40, %46 : vector<256x128xf32>
    %c1_59 = arith.constant 1 : index
    %c2_60 = arith.constant 2 : index
    %c0_61 = arith.constant 0 : index
    %48 = vector.load %arg7[%c1_59, %c2_60, %c0_61] : memref<18x18x128xf32, #tpu.memory_space<vmem>>, vector<16x16x128xf32>
    %49 = vector.shape_cast %48 : vector<16x16x128xf32> to vector<256x128xf32>
    %50 = arith.truncf %49 : vector<256x128xf32> to vector<256x128xbf16>
    %c1_62 = arith.constant 1 : index
    %c2_63 = arith.constant 2 : index
    %c0_64 = arith.constant 0 : index
    %c0_65 = arith.constant 0 : index
    %51 = vector.load %arg2[%c1_62, %c2_63, %c0_64, %c0_65] : memref<3x3x128x128xbf16, #tpu.memory_space<vmem>>, vector<1x1x128x128xbf16>
    %52 = vector.shape_cast %51 : vector<1x1x128x128xbf16> to vector<128x128xbf16>
    %cst_66 = arith.constant dense<0.000000e+00> : vector<256x128xf32>
    %53 = tpu.matmul %50, %52, %cst_66 {dimension_numbers = #tpu.dot_dimension_numbers<[1], [0], [0], [1], [0, 0, 1, 1], [], []>} : vector<256x128xbf16>, vector<128x128xbf16>, vector<256x128xf32> -> vector<256x128xf32>
    %54 = arith.addf %47, %53 : vector<256x128xf32>
    %c2_67 = arith.constant 2 : index
    %c0_68 = arith.constant 0 : index
    %c0_69 = arith.constant 0 : index
    %55 = vector.load %arg7[%c2_67, %c0_68, %c0_69] : memref<18x18x128xf32, #tpu.memory_space<vmem>>, vector<16x16x128xf32>
    %56 = vector.shape_cast %55 : vector<16x16x128xf32> to vector<256x128xf32>
    %57 = arith.truncf %56 : vector<256x128xf32> to vector<256x128xbf16>
    %c2_70 = arith.constant 2 : index
    %c0_71 = arith.constant 0 : index
    %c0_72 = arith.constant 0 : index
    %c0_73 = arith.constant 0 : index
    %58 = vector.load %arg2[%c2_70, %c0_71, %c0_72, %c0_73] : memref<3x3x128x128xbf16, #tpu.memory_space<vmem>>, vector<1x1x128x128xbf16>
    %59 = vector.shape_cast %58 : vector<1x1x128x128xbf16> to vector<128x128xbf16>
    %cst_74 = arith.constant dense<0.000000e+00> : vector<256x128xf32>
    %60 = tpu.matmul %57, %59, %cst_74 {dimension_numbers = #tpu.dot_dimension_numbers<[1], [0], [0], [1], [0, 0, 1, 1], [], []>} : vector<256x128xbf16>, vector<128x128xbf16>, vector<256x128xf32> -> vector<256x128xf32>
    %61 = arith.addf %54, %60 : vector<256x128xf32>
    %c2_75 = arith.constant 2 : index
    %c1_76 = arith.constant 1 : index
    %c0_77 = arith.constant 0 : index
    %62 = vector.load %arg7[%c2_75, %c1_76, %c0_77] : memref<18x18x128xf32, #tpu.memory_space<vmem>>, vector<16x16x128xf32>
    %63 = vector.shape_cast %62 : vector<16x16x128xf32> to vector<256x128xf32>
    %64 = arith.truncf %63 : vector<256x128xf32> to vector<256x128xbf16>
    %c2_78 = arith.constant 2 : index
    %c1_79 = arith.constant 1 : index
    %c0_80 = arith.constant 0 : index
    %c0_81 = arith.constant 0 : index
    %65 = vector.load %arg2[%c2_78, %c1_79, %c0_80, %c0_81] : memref<3x3x128x128xbf16, #tpu.memory_space<vmem>>, vector<1x1x128x128xbf16>
    %66 = vector.shape_cast %65 : vector<1x1x128x128xbf16> to vector<128x128xbf16>
    %cst_82 = arith.constant dense<0.000000e+00> : vector<256x128xf32>
    %67 = tpu.matmul %64, %66, %cst_82 {dimension_numbers = #tpu.dot_dimension_numbers<[1], [0], [0], [1], [0, 0, 1, 1], [], []>} : vector<256x128xbf16>, vector<128x128xbf16>, vector<256x128xf32> -> vector<256x128xf32>
    %68 = arith.addf %61, %67 : vector<256x128xf32>
    %c2_83 = arith.constant 2 : index
    %c2_84 = arith.constant 2 : index
    %c0_85 = arith.constant 0 : index
    %69 = vector.load %arg7[%c2_83, %c2_84, %c0_85] : memref<18x18x128xf32, #tpu.memory_space<vmem>>, vector<16x16x128xf32>
    %70 = vector.shape_cast %69 : vector<16x16x128xf32> to vector<256x128xf32>
    %71 = arith.truncf %70 : vector<256x128xf32> to vector<256x128xbf16>
    %c2_86 = arith.constant 2 : index
    %c2_87 = arith.constant 2 : index
    %c0_88 = arith.constant 0 : index
    %c0_89 = arith.constant 0 : index
    %72 = vector.load %arg2[%c2_86, %c2_87, %c0_88, %c0_89] : memref<3x3x128x128xbf16, #tpu.memory_space<vmem>>, vector<1x1x128x128xbf16>
    %73 = vector.shape_cast %72 : vector<1x1x128x128xbf16> to vector<128x128xbf16>
    %cst_90 = arith.constant dense<0.000000e+00> : vector<256x128xf32>
    %74 = tpu.matmul %71, %73, %cst_90 {dimension_numbers = #tpu.dot_dimension_numbers<[1], [0], [0], [1], [0, 0, 1, 1], [], []>} : vector<256x128xbf16>, vector<128x128xbf16>, vector<256x128xf32> -> vector<256x128xf32>
    %75 = arith.addf %68, %74 : vector<256x128xf32>
    %76 = vector.shape_cast %75 : vector<256x128xf32> to vector<1x16x16x128xf32>
    %77 = arith.truncf %76 : vector<1x16x16x128xf32> to vector<1x16x16x128xbf16>
    %c0_91 = arith.constant 0 : index
    %c0_92 = arith.constant 0 : index
    %c0_93 = arith.constant 0 : index
    %c0_94 = arith.constant 0 : index
    %78 = vector.load %arg5[%c0_91, %c0_92, %c0_93, %c0_94] : memref<1x16x16x128xbf16, #tpu.memory_space<vmem>>, vector<1x16x16x128xbf16>
    tpu.vector_store %arg5[%c0_91, %c0_92, %c0_93, %c0_94], %77 {strides = array<i32>} : memref<1x16x16x128xbf16, #tpu.memory_space<vmem>>, vector<1x16x16x128xbf16>,
    %cst_95 = arith.constant dense<0.000000e+00> : vector<128xf32>
    %79 = vector.multi_reduction <add>, %75, %cst_95 [0] : vector<256x128xf32> to vector<128xf32>
    %80 = vector.shape_cast %79 : vector<128xf32> to vector<1x128xf32>
    %81 = arith.mulf %75, %75 : vector<256x128xf32>
    %cst_96 = arith.constant dense<0.000000e+00> : vector<128xf32>
    %82 = vector.multi_reduction <add>, %81, %cst_96 [0] : vector<256x128xf32> to vector<128xf32>
    %83 = vector.shape_cast %82 : vector<128xf32> to vector<1x128xf32>
    %84 = tpu.concatenate %80, %83 in 0 : vector<1x128xf32>, vector<1x128xf32> -> vector<2x128xf32>
    %85 = vector.shape_cast %84 : vector<2x128xf32> to vector<1x2x128xf32>
    %c0_97 = arith.constant 0 : index
    %c0_98 = arith.constant 0 : index
    %c0_99 = arith.constant 0 : index
    %86 = vector.load %arg6[%c0_97, %c0_98, %c0_99] : memref<1x2x128xf32, #tpu.memory_space<vmem>>, vector<1x2x128xf32>
    tpu.vector_store %arg6[%c0_97, %c0_98, %c0_99], %85 {strides = array<i32>} : memref<1x2x128xf32, #tpu.memory_space<vmem>>, vector<1x2x128xf32>,
    return
  }
  func.func @transform_0(%arg0: i32) -> (i32, i32, i32, i32) {
    %c0_i32 = arith.constant 0 : i32
    %c0_i32_0 = arith.constant 0 : i32
    %c0_i32_1 = arith.constant 0 : i32
    %c0_i32_2 = arith.constant 0 : i32
    return %arg0, %c0_i32, %c0_i32_0, %c0_i32_1 : i32, i32, i32, i32
  }
  func.func @transform_1(%arg0: i32) -> (i32, i32, i32, i32) {
    %c0_i32 = arith.constant 0 : i32
    %c0_i32_0 = arith.constant 0 : i32
    %c0_i32_1 = arith.constant 0 : i32
    %c0_i32_2 = arith.constant 0 : i32
    %c0_i32_3 = arith.constant 0 : i32
    return %c0_i32, %c0_i32_0, %c0_i32_1, %c0_i32_2 : i32, i32, i32, i32
  }
  func.func @transform_2(%arg0: i32) -> (i32, i32) {
    %c0_i32 = arith.constant 0 : i32
    %c0_i32_0 = arith.constant 0 : i32
    %c0_i32_1 = arith.constant 0 : i32
    return %c0_i32, %c0_i32_0 : i32, i32
  }
  func.func @transform_3(%arg0: i32) -> (i32, i32) {
    %c0_i32 = arith.constant 0 : i32
    %c0_i32_0 = arith.constant 0 : i32
    %c0_i32_1 = arith.constant 0 : i32
    return %c0_i32, %c0_i32_0 : i32, i32
  }
  func.func @transform_4(%arg0: i32) -> (i32, i32, i32, i32) {
    %c0_i32 = arith.constant 0 : i32
    %c0_i32_0 = arith.constant 0 : i32
    %c0_i32_1 = arith.constant 0 : i32
    %c0_i32_2 = arith.constant 0 : i32
    return %arg0, %c0_i32, %c0_i32_0, %c0_i32_1 : i32, i32, i32, i32
  }
  func.func @transform_5(%arg0: i32) -> (i32, i32, i32) {
    %c0_i32 = arith.constant 0 : i32
    %c0_i32_0 = arith.constant 0 : i32
    %c0_i32_1 = arith.constant 0 : i32
    return %arg0, %c0_i32, %c0_i32_0 : i32, i32, i32
  }
}

module attributes {stable_mosaic.version = 11 : i64} {
  func.func @_conv_block_kernel(%arg0: i32, %arg1: memref<1x16x16x128xbf16, #tpu.memory_space<vmem>>, %arg2: memref<3x3x128x128xbf16, #tpu.memory_space<vmem>>, %arg3: memref<1x128xf32, #tpu.memory_space<vmem>>, %arg4: memref<1x128xf32, #tpu.memory_space<vmem>>, %arg5: memref<1x16x16x128xbf16, #tpu.memory_space<vmem>>, %arg6: memref<1x2x128xf32, #tpu.memory_space<vmem>>, %arg7: memref<18x18x128xf32, #tpu.memory_space<vmem>>) attributes {dimension_semantics = [#tpu.dimension_semantics<parallel>], iteration_bounds = array<i64: 2>, scalar_prefetch = 0 : i64, scratch_operands = 1 : i64, tpu.core_type = #tpu.core_type<tc>, window_params = [{transform_indices = @transform_0, window_bounds = array<i64: 1, 16, 16, 128>}, {pipeline_mode = #tpu.pipeline_mode<synchronous>, transform_indices = @transform_1, window_bounds = array<i64: 3, 3, 128, 128>}, {pipeline_mode = #tpu.pipeline_mode<synchronous>, transform_indices = @transform_2, window_bounds = array<i64: 1, 128>}, {pipeline_mode = #tpu.pipeline_mode<synchronous>, transform_indices = @transform_3, window_bounds = array<i64: 1, 128>}, {transform_indices = @transform_4, window_bounds = array<i64: 1, 16, 16, 128>}, {transform_indices = @transform_5, window_bounds = array<i64: 1, 2, 128>}]} {
    %c0 = arith.constant 0 : index
    %c0_0 = arith.constant 0 : index
    %c0_1 = arith.constant 0 : index
    %c0_2 = arith.constant 0 : index
    %0 = vector.load %arg1[%c0, %c0_0, %c0_1, %c0_2] : memref<1x16x16x128xbf16, #tpu.memory_space<vmem>>, vector<1x16x16x128xbf16>
    %1 = vector.shape_cast %0 : vector<1x16x16x128xbf16> to vector<16x16x128xbf16>
    %2 = arith.extf %1 : vector<16x16x128xbf16> to vector<16x16x128xf32>
    %c0_3 = arith.constant 0 : index
    %c0_4 = arith.constant 0 : index
    %3 = vector.load %arg3[%c0_3, %c0_4] : memref<1x128xf32, #tpu.memory_space<vmem>>, vector<1x128xf32>
    %4 = vector.shape_cast %3 : vector<1x128xf32> to vector<128xf32>
    %5 = vector.shape_cast %4 : vector<128xf32> to vector<1x1x128xf32>
    %6 = vector.broadcast %5 : vector<1x1x128xf32> to vector<16x16x128xf32>
    %7 = arith.mulf %2, %6 : vector<16x16x128xf32>
    %c0_5 = arith.constant 0 : index
    %c0_6 = arith.constant 0 : index
    %8 = vector.load %arg4[%c0_5, %c0_6] : memref<1x128xf32, #tpu.memory_space<vmem>>, vector<1x128xf32>
    %9 = vector.shape_cast %8 : vector<1x128xf32> to vector<128xf32>
    %10 = vector.shape_cast %9 : vector<128xf32> to vector<1x1x128xf32>
    %11 = vector.broadcast %10 : vector<1x1x128xf32> to vector<16x16x128xf32>
    %12 = arith.addf %7, %11 : vector<16x16x128xf32>
    %cst = arith.constant 0.000000e+00 : f32
    %13 = vector.broadcast %cst : f32 to vector<16x16x128xf32>
    %14 = arith.maximumf %12, %13 : vector<16x16x128xf32>
    %cst_7 = arith.constant 0.000000e+00 : f32
    %15 = vector.broadcast %cst_7 : f32 to vector<1x18x128xf32>
    %c0_8 = arith.constant 0 : index
    %c0_9 = arith.constant 0 : index
    %c0_10 = arith.constant 0 : index
    %16 = vector.load %arg7[%c0_8, %c0_9, %c0_10] : memref<18x18x128xf32, #tpu.memory_space<vmem>>, vector<1x18x128xf32>
    tpu.vector_store %arg7[%c0_8, %c0_9, %c0_10], %15 {strides = array<i32>} : memref<18x18x128xf32, #tpu.memory_space<vmem>>, vector<1x18x128xf32>,
    %cst_11 = arith.constant 0.000000e+00 : f32
    %17 = vector.broadcast %cst_11 : f32 to vector<1x18x128xf32>
    %c17 = arith.constant 17 : index
    %c0_12 = arith.constant 0 : index
    %c0_13 = arith.constant 0 : index
    %18 = vector.load %arg7[%c17, %c0_12, %c0_13] : memref<18x18x128xf32, #tpu.memory_space<vmem>>, vector<1x18x128xf32>
    tpu.vector_store %arg7[%c17, %c0_12, %c0_13], %17 {strides = array<i32>} : memref<18x18x128xf32, #tpu.memory_space<vmem>>, vector<1x18x128xf32>,
    %cst_14 = arith.constant 0.000000e+00 : f32
    %19 = vector.broadcast %cst_14 : f32 to vector<16x1x128xf32>
    %c1 = arith.constant 1 : index
    %c0_15 = arith.constant 0 : index
    %c0_16 = arith.constant 0 : index
    %20 = vector.load %arg7[%c1, %c0_15, %c0_16] : memref<18x18x128xf32, #tpu.memory_space<vmem>>, vector<16x1x128xf32>
    tpu.vector_store %arg7[%c1, %c0_15, %c0_16], %19 {strides = array<i32>} : memref<18x18x128xf32, #tpu.memory_space<vmem>>, vector<16x1x128xf32>,
    %cst_17 = arith.constant 0.000000e+00 : f32
    %21 = vector.broadcast %cst_17 : f32 to vector<16x1x128xf32>
    %c1_18 = arith.constant 1 : index
    %c17_19 = arith.constant 17 : index
    %c0_20 = arith.constant 0 : index
    %22 = vector.load %arg7[%c1_18, %c17_19, %c0_20] : memref<18x18x128xf32, #tpu.memory_space<vmem>>, vector<16x1x128xf32>
    tpu.vector_store %arg7[%c1_18, %c17_19, %c0_20], %21 {strides = array<i32>} : memref<18x18x128xf32, #tpu.memory_space<vmem>>, vector<16x1x128xf32>,
    %c1_21 = arith.constant 1 : index
    %c1_22 = arith.constant 1 : index
    %c0_23 = arith.constant 0 : index
    %23 = vector.load %arg7[%c1_21, %c1_22, %c0_23] : memref<18x18x128xf32, #tpu.memory_space<vmem>>, vector<16x16x128xf32>
    tpu.vector_store %arg7[%c1_21, %c1_22, %c0_23], %14 {strides = array<i32>} : memref<18x18x128xf32, #tpu.memory_space<vmem>>, vector<16x16x128xf32>,
    %cst_24 = arith.constant 0.000000e+00 : f32
    %24 = vector.broadcast %cst_24 : f32 to vector<256x128xf32>
    %c0_25 = arith.constant 0 : index
    %c0_26 = arith.constant 0 : index
    %c0_27 = arith.constant 0 : index
    %25 = vector.load %arg7[%c0_25, %c0_26, %c0_27] : memref<18x18x128xf32, #tpu.memory_space<vmem>>, vector<16x16x128xf32>
    %26 = vector.shape_cast %25 : vector<16x16x128xf32> to vector<256x128xf32>
    %27 = arith.truncf %26 : vector<256x128xf32> to vector<256x128xbf16>
    %c0_28 = arith.constant 0 : index
    %c0_29 = arith.constant 0 : index
    %c0_30 = arith.constant 0 : index
    %c0_31 = arith.constant 0 : index
    %28 = vector.load %arg2[%c0_28, %c0_29, %c0_30, %c0_31] : memref<3x3x128x128xbf16, #tpu.memory_space<vmem>>, vector<1x1x128x128xbf16>
    %29 = vector.shape_cast %28 : vector<1x1x128x128xbf16> to vector<128x128xbf16>
    %cst_32 = arith.constant dense<0.000000e+00> : vector<256x128xf32>
    %30 = tpu.matmul %27, %29, %cst_32 {dimension_numbers = #tpu.dot_dimension_numbers<[1], [0], [0], [1], [0, 0, 1, 1], [], []>} : vector<256x128xbf16>, vector<128x128xbf16>, vector<256x128xf32> -> vector<256x128xf32>
    %31 = arith.addf %24, %30 : vector<256x128xf32>
    %c0_33 = arith.constant 0 : index
    %c1_34 = arith.constant 1 : index
    %c0_35 = arith.constant 0 : index
    %32 = vector.load %arg7[%c0_33, %c1_34, %c0_35] : memref<18x18x128xf32, #tpu.memory_space<vmem>>, vector<16x16x128xf32>
    %33 = vector.shape_cast %32 : vector<16x16x128xf32> to vector<256x128xf32>
    %34 = arith.truncf %33 : vector<256x128xf32> to vector<256x128xbf16>
    %c0_36 = arith.constant 0 : index
    %c1_37 = arith.constant 1 : index
    %c0_38 = arith.constant 0 : index
    %c0_39 = arith.constant 0 : index
    %35 = vector.load %arg2[%c0_36, %c1_37, %c0_38, %c0_39] : memref<3x3x128x128xbf16, #tpu.memory_space<vmem>>, vector<1x1x128x128xbf16>
    %36 = vector.shape_cast %35 : vector<1x1x128x128xbf16> to vector<128x128xbf16>
    %cst_40 = arith.constant dense<0.000000e+00> : vector<256x128xf32>
    %37 = tpu.matmul %34, %36, %cst_40 {dimension_numbers = #tpu.dot_dimension_numbers<[1], [0], [0], [1], [0, 0, 1, 1], [], []>} : vector<256x128xbf16>, vector<128x128xbf16>, vector<256x128xf32> -> vector<256x128xf32>
    %38 = arith.addf %31, %37 : vector<256x128xf32>
    %c0_41 = arith.constant 0 : index
    %c2 = arith.constant 2 : index
    %c0_42 = arith.constant 0 : index
    %39 = vector.load %arg7[%c0_41, %c2, %c0_42] : memref<18x18x128xf32, #tpu.memory_space<vmem>>, vector<16x16x128xf32>
    %40 = vector.shape_cast %39 : vector<16x16x128xf32> to vector<256x128xf32>
    %41 = arith.truncf %40 : vector<256x128xf32> to vector<256x128xbf16>
    %c0_43 = arith.constant 0 : index
    %c2_44 = arith.constant 2 : index
    %c0_45 = arith.constant 0 : index
    %c0_46 = arith.constant 0 : index
    %42 = vector.load %arg2[%c0_43, %c2_44, %c0_45, %c0_46] : memref<3x3x128x128xbf16, #tpu.memory_space<vmem>>, vector<1x1x128x128xbf16>
    %43 = vector.shape_cast %42 : vector<1x1x128x128xbf16> to vector<128x128xbf16>
    %cst_47 = arith.constant dense<0.000000e+00> : vector<256x128xf32>
    %44 = tpu.matmul %41, %43, %cst_47 {dimension_numbers = #tpu.dot_dimension_numbers<[1], [0], [0], [1], [0, 0, 1, 1], [], []>} : vector<256x128xbf16>, vector<128x128xbf16>, vector<256x128xf32> -> vector<256x128xf32>
    %45 = arith.addf %38, %44 : vector<256x128xf32>
    %c1_48 = arith.constant 1 : index
    %c0_49 = arith.constant 0 : index
    %c0_50 = arith.constant 0 : index
    %46 = vector.load %arg7[%c1_48, %c0_49, %c0_50] : memref<18x18x128xf32, #tpu.memory_space<vmem>>, vector<16x16x128xf32>
    %47 = vector.shape_cast %46 : vector<16x16x128xf32> to vector<256x128xf32>
    %48 = arith.truncf %47 : vector<256x128xf32> to vector<256x128xbf16>
    %c1_51 = arith.constant 1 : index
    %c0_52 = arith.constant 0 : index
    %c0_53 = arith.constant 0 : index
    %c0_54 = arith.constant 0 : index
    %49 = vector.load %arg2[%c1_51, %c0_52, %c0_53, %c0_54] : memref<3x3x128x128xbf16, #tpu.memory_space<vmem>>, vector<1x1x128x128xbf16>
    %50 = vector.shape_cast %49 : vector<1x1x128x128xbf16> to vector<128x128xbf16>
    %cst_55 = arith.constant dense<0.000000e+00> : vector<256x128xf32>
    %51 = tpu.matmul %48, %50, %cst_55 {dimension_numbers = #tpu.dot_dimension_numbers<[1], [0], [0], [1], [0, 0, 1, 1], [], []>} : vector<256x128xbf16>, vector<128x128xbf16>, vector<256x128xf32> -> vector<256x128xf32>
    %52 = arith.addf %45, %51 : vector<256x128xf32>
    %c1_56 = arith.constant 1 : index
    %c1_57 = arith.constant 1 : index
    %c0_58 = arith.constant 0 : index
    %53 = vector.load %arg7[%c1_56, %c1_57, %c0_58] : memref<18x18x128xf32, #tpu.memory_space<vmem>>, vector<16x16x128xf32>
    %54 = vector.shape_cast %53 : vector<16x16x128xf32> to vector<256x128xf32>
    %55 = arith.truncf %54 : vector<256x128xf32> to vector<256x128xbf16>
    %c1_59 = arith.constant 1 : index
    %c1_60 = arith.constant 1 : index
    %c0_61 = arith.constant 0 : index
    %c0_62 = arith.constant 0 : index
    %56 = vector.load %arg2[%c1_59, %c1_60, %c0_61, %c0_62] : memref<3x3x128x128xbf16, #tpu.memory_space<vmem>>, vector<1x1x128x128xbf16>
    %57 = vector.shape_cast %56 : vector<1x1x128x128xbf16> to vector<128x128xbf16>
    %cst_63 = arith.constant dense<0.000000e+00> : vector<256x128xf32>
    %58 = tpu.matmul %55, %57, %cst_63 {dimension_numbers = #tpu.dot_dimension_numbers<[1], [0], [0], [1], [0, 0, 1, 1], [], []>} : vector<256x128xbf16>, vector<128x128xbf16>, vector<256x128xf32> -> vector<256x128xf32>
    %59 = arith.addf %52, %58 : vector<256x128xf32>
    %c1_64 = arith.constant 1 : index
    %c2_65 = arith.constant 2 : index
    %c0_66 = arith.constant 0 : index
    %60 = vector.load %arg7[%c1_64, %c2_65, %c0_66] : memref<18x18x128xf32, #tpu.memory_space<vmem>>, vector<16x16x128xf32>
    %61 = vector.shape_cast %60 : vector<16x16x128xf32> to vector<256x128xf32>
    %62 = arith.truncf %61 : vector<256x128xf32> to vector<256x128xbf16>
    %c1_67 = arith.constant 1 : index
    %c2_68 = arith.constant 2 : index
    %c0_69 = arith.constant 0 : index
    %c0_70 = arith.constant 0 : index
    %63 = vector.load %arg2[%c1_67, %c2_68, %c0_69, %c0_70] : memref<3x3x128x128xbf16, #tpu.memory_space<vmem>>, vector<1x1x128x128xbf16>
    %64 = vector.shape_cast %63 : vector<1x1x128x128xbf16> to vector<128x128xbf16>
    %cst_71 = arith.constant dense<0.000000e+00> : vector<256x128xf32>
    %65 = tpu.matmul %62, %64, %cst_71 {dimension_numbers = #tpu.dot_dimension_numbers<[1], [0], [0], [1], [0, 0, 1, 1], [], []>} : vector<256x128xbf16>, vector<128x128xbf16>, vector<256x128xf32> -> vector<256x128xf32>
    %66 = arith.addf %59, %65 : vector<256x128xf32>
    %c2_72 = arith.constant 2 : index
    %c0_73 = arith.constant 0 : index
    %c0_74 = arith.constant 0 : index
    %67 = vector.load %arg7[%c2_72, %c0_73, %c0_74] : memref<18x18x128xf32, #tpu.memory_space<vmem>>, vector<16x16x128xf32>
    %68 = vector.shape_cast %67 : vector<16x16x128xf32> to vector<256x128xf32>
    %69 = arith.truncf %68 : vector<256x128xf32> to vector<256x128xbf16>
    %c2_75 = arith.constant 2 : index
    %c0_76 = arith.constant 0 : index
    %c0_77 = arith.constant 0 : index
    %c0_78 = arith.constant 0 : index
    %70 = vector.load %arg2[%c2_75, %c0_76, %c0_77, %c0_78] : memref<3x3x128x128xbf16, #tpu.memory_space<vmem>>, vector<1x1x128x128xbf16>
    %71 = vector.shape_cast %70 : vector<1x1x128x128xbf16> to vector<128x128xbf16>
    %cst_79 = arith.constant dense<0.000000e+00> : vector<256x128xf32>
    %72 = tpu.matmul %69, %71, %cst_79 {dimension_numbers = #tpu.dot_dimension_numbers<[1], [0], [0], [1], [0, 0, 1, 1], [], []>} : vector<256x128xbf16>, vector<128x128xbf16>, vector<256x128xf32> -> vector<256x128xf32>
    %73 = arith.addf %66, %72 : vector<256x128xf32>
    %c2_80 = arith.constant 2 : index
    %c1_81 = arith.constant 1 : index
    %c0_82 = arith.constant 0 : index
    %74 = vector.load %arg7[%c2_80, %c1_81, %c0_82] : memref<18x18x128xf32, #tpu.memory_space<vmem>>, vector<16x16x128xf32>
    %75 = vector.shape_cast %74 : vector<16x16x128xf32> to vector<256x128xf32>
    %76 = arith.truncf %75 : vector<256x128xf32> to vector<256x128xbf16>
    %c2_83 = arith.constant 2 : index
    %c1_84 = arith.constant 1 : index
    %c0_85 = arith.constant 0 : index
    %c0_86 = arith.constant 0 : index
    %77 = vector.load %arg2[%c2_83, %c1_84, %c0_85, %c0_86] : memref<3x3x128x128xbf16, #tpu.memory_space<vmem>>, vector<1x1x128x128xbf16>
    %78 = vector.shape_cast %77 : vector<1x1x128x128xbf16> to vector<128x128xbf16>
    %cst_87 = arith.constant dense<0.000000e+00> : vector<256x128xf32>
    %79 = tpu.matmul %76, %78, %cst_87 {dimension_numbers = #tpu.dot_dimension_numbers<[1], [0], [0], [1], [0, 0, 1, 1], [], []>} : vector<256x128xbf16>, vector<128x128xbf16>, vector<256x128xf32> -> vector<256x128xf32>
    %80 = arith.addf %73, %79 : vector<256x128xf32>
    %c2_88 = arith.constant 2 : index
    %c2_89 = arith.constant 2 : index
    %c0_90 = arith.constant 0 : index
    %81 = vector.load %arg7[%c2_88, %c2_89, %c0_90] : memref<18x18x128xf32, #tpu.memory_space<vmem>>, vector<16x16x128xf32>
    %82 = vector.shape_cast %81 : vector<16x16x128xf32> to vector<256x128xf32>
    %83 = arith.truncf %82 : vector<256x128xf32> to vector<256x128xbf16>
    %c2_91 = arith.constant 2 : index
    %c2_92 = arith.constant 2 : index
    %c0_93 = arith.constant 0 : index
    %c0_94 = arith.constant 0 : index
    %84 = vector.load %arg2[%c2_91, %c2_92, %c0_93, %c0_94] : memref<3x3x128x128xbf16, #tpu.memory_space<vmem>>, vector<1x1x128x128xbf16>
    %85 = vector.shape_cast %84 : vector<1x1x128x128xbf16> to vector<128x128xbf16>
    %cst_95 = arith.constant dense<0.000000e+00> : vector<256x128xf32>
    %86 = tpu.matmul %83, %85, %cst_95 {dimension_numbers = #tpu.dot_dimension_numbers<[1], [0], [0], [1], [0, 0, 1, 1], [], []>} : vector<256x128xbf16>, vector<128x128xbf16>, vector<256x128xf32> -> vector<256x128xf32>
    %87 = arith.addf %80, %86 : vector<256x128xf32>
    %88 = vector.shape_cast %87 : vector<256x128xf32> to vector<1x16x16x128xf32>
    %89 = arith.truncf %88 : vector<1x16x16x128xf32> to vector<1x16x16x128xbf16>
    %c0_96 = arith.constant 0 : index
    %c0_97 = arith.constant 0 : index
    %c0_98 = arith.constant 0 : index
    %c0_99 = arith.constant 0 : index
    %90 = vector.load %arg5[%c0_96, %c0_97, %c0_98, %c0_99] : memref<1x16x16x128xbf16, #tpu.memory_space<vmem>>, vector<1x16x16x128xbf16>
    tpu.vector_store %arg5[%c0_96, %c0_97, %c0_98, %c0_99], %89 {strides = array<i32>} : memref<1x16x16x128xbf16, #tpu.memory_space<vmem>>, vector<1x16x16x128xbf16>,
    %cst_100 = arith.constant dense<0.000000e+00> : vector<128xf32>
    %91 = vector.multi_reduction <add>, %87, %cst_100 [0] : vector<256x128xf32> to vector<128xf32>
    %92 = vector.shape_cast %91 : vector<128xf32> to vector<1x128xf32>
    %93 = arith.mulf %87, %87 : vector<256x128xf32>
    %cst_101 = arith.constant dense<0.000000e+00> : vector<128xf32>
    %94 = vector.multi_reduction <add>, %93, %cst_101 [0] : vector<256x128xf32> to vector<128xf32>
    %95 = vector.shape_cast %94 : vector<128xf32> to vector<1x128xf32>
    %96 = tpu.concatenate %92, %95 in 0 : vector<1x128xf32>, vector<1x128xf32> -> vector<2x128xf32>
    %97 = vector.shape_cast %96 : vector<2x128xf32> to vector<1x2x128xf32>
    %c0_102 = arith.constant 0 : index
    %c0_103 = arith.constant 0 : index
    %c0_104 = arith.constant 0 : index
    %98 = vector.load %arg6[%c0_102, %c0_103, %c0_104] : memref<1x2x128xf32, #tpu.memory_space<vmem>>, vector<1x2x128xf32>
    tpu.vector_store %arg6[%c0_102, %c0_103, %c0_104], %97 {strides = array<i32>} : memref<1x2x128xf32, #tpu.memory_space<vmem>>, vector<1x2x128xf32>,
    return
  }
  func.func @transform_0(%arg0: i32) -> (i32, i32, i32, i32) {
    %c0_i32 = arith.constant 0 : i32
    %c0_i32_0 = arith.constant 0 : i32
    %c0_i32_1 = arith.constant 0 : i32
    %c0_i32_2 = arith.constant 0 : i32
    return %arg0, %c0_i32, %c0_i32_0, %c0_i32_1 : i32, i32, i32, i32
  }
  func.func @transform_1(%arg0: i32) -> (i32, i32, i32, i32) {
    %c0_i32 = arith.constant 0 : i32
    %c0_i32_0 = arith.constant 0 : i32
    %c0_i32_1 = arith.constant 0 : i32
    %c0_i32_2 = arith.constant 0 : i32
    %c0_i32_3 = arith.constant 0 : i32
    return %c0_i32, %c0_i32_0, %c0_i32_1, %c0_i32_2 : i32, i32, i32, i32
  }
  func.func @transform_2(%arg0: i32) -> (i32, i32) {
    %c0_i32 = arith.constant 0 : i32
    %c0_i32_0 = arith.constant 0 : i32
    %c0_i32_1 = arith.constant 0 : i32
    return %c0_i32, %c0_i32_0 : i32, i32
  }
  func.func @transform_3(%arg0: i32) -> (i32, i32) {
    %c0_i32 = arith.constant 0 : i32
    %c0_i32_0 = arith.constant 0 : i32
    %c0_i32_1 = arith.constant 0 : i32
    return %c0_i32, %c0_i32_0 : i32, i32
  }
  func.func @transform_4(%arg0: i32) -> (i32, i32, i32, i32) {
    %c0_i32 = arith.constant 0 : i32
    %c0_i32_0 = arith.constant 0 : i32
    %c0_i32_1 = arith.constant 0 : i32
    %c0_i32_2 = arith.constant 0 : i32
    return %arg0, %c0_i32, %c0_i32_0, %c0_i32_1 : i32, i32, i32, i32
  }
  func.func @transform_5(%arg0: i32) -> (i32, i32, i32) {
    %c0_i32 = arith.constant 0 : i32
    %c0_i32_0 = arith.constant 0 : i32
    %c0_i32_1 = arith.constant 0 : i32
    return %arg0, %c0_i32, %c0_i32_0 : i32, i32, i32
  }
}

</mosaic_0001>

<bundles_post_ra>
// kernel: double_conv.5
= control target key start
LH: loop header
LB: loop body
LE: loop exit
PB: predicated region body
PF: predicated region fallthrough
CT: control target
= control target key end

     0   :  { %s557_s12 = smov 0   ;;  %s736_s0 = inlined_call_operand.vmem [shape: bf16[2,16,16,128], index: 0, kind: input, shape index: {}]   ;;  %s737_s1 = inlined_call_operand.vmem [shape: f32[1,8], index: 1, kind: input, shape index: {}]   ;;  %s738_s2 = inlined_call_operand.vmem [shape: f32[1,8], index: 2, kind: input, shape index: {}]   ;;  %s739_s3 = inlined_call_operand.vmem [shape: f32[2,16,16,8], index: 3, kind: output, shape index: {}]  }
   0x1 LB: > { %s427_s13 = sadd.s32 4294967295, %s535_s12   ;;  %p431_p0 = scmp.ge.s32.totalorder %s535_s12, 1  ;;  %s535_s12 = sphi %s557_s12, %s13_s12  }
   0x2   : > { %p137_p1 = scmp.lt.s32.totalorder %s535_s12, 3 }
   0x4   : > { %p138_p2 = pnand %p431_p0, %p137_p1 }
   0x5   : > { %p161_p3 = scmp.lt.s32.totalorder (!%p138_p2), %s427_s13, 1 }
   0x6   : > { %141 = sbr.rel (%p138_p2) target bundleno = 55 (0x37), region = 32 }
   0xb   : > { %s741_s13 = smov (!%p161_p3, %s427_s13), 1  ;;  %v576_v0 = vld [vmem:[%s737_s1] ss:$0 sm:$0xff]  ;;  %vm339_vm0 = vcmask 64512  }
   0xc   : > { %s438_s14 = sshll.u32 %s741_s13, 7  ;;  %v584_v5 = vld [vmem:[%s738_s2] ss:$0 sm:$0xff]  ;;  %s439_s22 = sshll.u32 %s741_s13, 8 }
   0xd   : > { %s571_s17 = scalar_lea.vmem %s736_s0, %s438_s14  ;;  %s603_s25 = scalar_lea.vmem %s739_s3, %s439_s22 }
   0xe   : > { %v441_v1 = vld [vmem:[%s571_s17] sm:$0xff]   ;;  %v504_v2 = vld [vmem:[%s571_s17 + $0x8] sm:$0xff]   ;;  %v505_v3 = vld [vmem:[%s571_s17 + $0x10] sm:$0xff]  }
   0xf   : > { %v442_v4 = vunpack.c.l.bf16 %v441_v1  ;;  %v443_v6 = vunpack.c.h.bf16 %v441_v1  ;;  %v446_v7 = vunpack.c.l.bf16 %v504_v2  ;;  %v447_v8 = vunpack.c.h.bf16 %v504_v2  ;;  %v506_v9 = vld [vmem:[%s571_s17 + $0x18] sm:$0xff]   ;;  %v507_v30 = vld [vmem:[%s571_s17 + $0x20] sm:$0xff]   ;;  %v508_v31 = vld [vmem:[%s571_s17 + $0x28] sm:$0xff]  }
  0x10   : > { %v450_v10 = vunpack.c.l.bf16 %v505_v3  ;;  %v451_v11 = vunpack.c.h.bf16 %v505_v3  ;;  %v454_v12 = vunpack.c.l.bf16 %v506_v9  ;;  %v455_v13 = vunpack.c.h.bf16 %v506_v9  ;;  %v509_v36 = vld [vmem:[%s571_s17 + $0x30] sm:$0xff]   ;;  %v510_v37 = vld [vmem:[%s571_s17 + $0x38] sm:$0xff]   ;;  %v511_v3 = vld [vmem:[%s571_s17 + $0x40] sm:$0xff]  }
  0x11   : > { %v239_v14 = vmul.f32 %v576_v0, %v442_v4  ;;  %v240_v15 = vmul.f32 %v576_v0, %v443_v6  ;;  %v241_v16 = vmul.f32 %v576_v0, %v446_v7  ;;  %v242_v17 = vmul.f32 %v576_v0, %v447_v8  ;;  %v512_v4 = vld [vmem:[%s571_s17 + $0x48] sm:$0xff]   ;;  %v513_v6 = vld [vmem:[%s571_s17 + $0x50] sm:$0xff]  }
  0x12   : > { %v243_v18 = vmul.f32 %v576_v0, %v450_v10  ;;  %v244_v19 = vmul.f32 %v576_v0, %v451_v11  ;;  %v245_v20 = vmul.f32 %v576_v0, %v454_v12  ;;  %v246_v21 = vmul.f32 %v576_v0, %v455_v13  ;;  %v514_v11 = vld [vmem:[%s571_s17 + $0x58] sm:$0xff]  }
  0x13   : > { %v275_v22 = vadd.f32 %v584_v5, %v239_v14  ;;  %v276_v23 = vadd.f32 %v584_v5, %v240_v15  ;;  %v277_v24 = vadd.f32 %v584_v5, %v241_v16  ;;  %v278_v25 = vadd.f32 %v584_v5, %v242_v17 }
  0x14   : > { %v279_v26 = vadd.f32 %v584_v5, %v243_v18  ;;  %v280_v27 = vadd.f32 %v584_v5, %v244_v19  ;;  %v281_v28 = vadd.f32 %v584_v5, %v245_v20  ;;  %v282_v29 = vadd.f32 %v584_v5, %v246_v21 }
  0x15   : > { %v307_v32 = vmax.f32 %v275_v22, 0.0  ;;  %v308_v33 = vmax.f32 %v276_v23, 0.0  ;;  %v309_v34 = vmax.f32 %v277_v24, 0.0  ;;  %v310_v35 = vmax.f32 %v278_v25, 0.0 }
  0x16   : > { %v311_v38 = vmax.f32 %v279_v26, 0.0  ;;  %v312_v39 = vmax.f32 %v280_v27, 0.0  ;;  %v313_v40 = vmax.f32 %v281_v28, 0.0  ;;  %v314_v41 = vmax.f32 %v282_v29, 0.0 }
  0x17   : > { %340 = vst.msk [vmem:[%s603_s25] sm:$0xff] %vm339_vm0, %v307_v32  ;;  %v458_v42 = vunpack.c.l.bf16 %v507_v30  ;;  %v459_v43 = vunpack.c.h.bf16 %v507_v30  ;;  %v462_v44 = vunpack.c.l.bf16 %v508_v31  ;;  %v463_v45 = vunpack.c.h.bf16 %v508_v31 }
  0x18   : > { %341 = vst.msk [vmem:[%s603_s25 + $0x8] sm:$0xff] %vm339_vm0, %v308_v33  ;;  %v466_v46 = vunpack.c.l.bf16 %v509_v36  ;;  %v467_v47 = vunpack.c.h.bf16 %v509_v36  ;;  %v470_v48 = vunpack.c.l.bf16 %v510_v37  ;;  %v471_v49 = vunpack.c.h.bf16 %v510_v37 }
  0x19   : > { %342 = vst.msk [vmem:[%s603_s25 + $0x10] sm:$0xff] %vm339_vm0, %v309_v34  ;;  %v247_v50 = vmul.f32 %v576_v0, %v458_v42  ;;  %v248_v51 = vmul.f32 %v576_v0, %v459_v43  ;;  %v249_v52 = vmul.f32 %v576_v0, %v462_v44  ;;  %v250_v53 = vmul.f32 %v576_v0, %v463_v45  ;;  %v517_v42 = vld [vmem:[%s571_s17 + $0x70] sm:$0xff]  }
  0x1a   : > { %343 = vst.msk [vmem:[%s603_s25 + $0x18] sm:$0xff] %vm339_vm0, %v310_v35  ;;  %v251_v54 = vmul.f32 %v576_v0, %v466_v46  ;;  %v252_v55 = vmul.f32 %v576_v0, %v467_v47  ;;  %v253_v56 = vmul.f32 %v576_v0, %v470_v48  ;;  %v254_v57 = vmul.f32 %v576_v0, %v471_v49  ;;  %v518_v47 = vld [vmem:[%s571_s17 + $0x78] sm:$0xff]  }
  0x1b   : > { %344 = vst.msk [vmem:[%s603_s25 + $0x20] sm:$0xff] %vm339_vm0, %v311_v38  ;;  %v283_v58 = vadd.f32 %v584_v5, %v247_v50  ;;  %v284_v59 = vadd.f32 %v584_v5, %v248_v51  ;;  %v285_v60 = vadd.f32 %v584_v5, %v249_v52  ;;  %v286_v61 = vadd.f32 %v584_v5, %v250_v53 }
  0x1c   : > { %345 = vst.msk [vmem:[%s603_s25 + $0x28] sm:$0xff] %vm339_vm0, %v312_v39  ;;  %v287_v62 = vadd.f32 %v584_v5, %v251_v54  ;;  %v288_v63 = vadd.f32 %v584_v5, %v252_v55  ;;  %v289_v1 = vadd.f32 %v584_v5, %v253_v56  ;;  %v290_v2 = vadd.f32 %v584_v5, %v254_v57 }
  0x1d   : > { %346 = vst.msk [vmem:[%s603_s25 + $0x30] sm:$0xff] %vm339_vm0, %v313_v40  ;;  %v315_v7 = vmax.f32 %v283_v58, 0.0  ;;  %v316_v8 = vmax.f32 %v284_v59, 0.0  ;;  %v317_v9 = vmax.f32 %v285_v60, 0.0  ;;  %v318_v10 = vmax.f32 %v286_v61, 0.0  ;;  %v515_v40 = vld [vmem:[%s571_s17 + $0x60] sm:$0xff]  }
  0x1e   : > { %347 = vst.msk [vmem:[%s603_s25 + $0x38] sm:$0xff] %vm339_vm0, %v314_v41  ;;  %v319_v12 = vmax.f32 %v287_v62, 0.0  ;;  %v320_v13 = vmax.f32 %v288_v63, 0.0  ;;  %v321_v14 = vmax.f32 %v289_v1, 0.0  ;;  %v322_v15 = vmax.f32 %v290_v2, 0.0  ;;  %v516_v41 = vld [vmem:[%s571_s17 + $0x68] sm:$0xff]  }
  0x1f   : > { %348 = vst.msk [vmem:[%s603_s25 + $0x40] sm:$0xff] %vm339_vm0, %v315_v7  ;;  %v474_v16 = vunpack.c.l.bf16 %v511_v3  ;;  %v475_v17 = vunpack.c.h.bf16 %v511_v3  ;;  %v478_v18 = vunpack.c.l.bf16 %v512_v4  ;;  %v479_v19 = vunpack.c.h.bf16 %v512_v4 }
  0x20   : > { %349 = vst.msk [vmem:[%s603_s25 + $0x48] sm:$0xff] %vm339_vm0, %v316_v8  ;;  %v482_v20 = vunpack.c.l.bf16 %v513_v6  ;;  %v483_v21 = vunpack.c.h.bf16 %v513_v6  ;;  %v486_v22 = vunpack.c.l.bf16 %v514_v11  ;;  %v487_v23 = vunpack.c.h.bf16 %v514_v11 }
  0x21   : > { %350 = vst.msk [vmem:[%s603_s25 + $0x50] sm:$0xff] %vm339_vm0, %v317_v9  ;;  %v255_v24 = vmul.f32 %v576_v0, %v474_v16  ;;  %v256_v25 = vmul.f32 %v576_v0, %v475_v17  ;;  %v257_v26 = vmul.f32 %v576_v0, %v478_v18  ;;  %v258_v27 = vmul.f32 %v576_v0, %v479_v19 }
  0x22   : > { %351 = vst.msk [vmem:[%s603_s25 + $0x58] sm:$0xff] %vm339_vm0, %v318_v10  ;;  %v259_v28 = vmul.f32 %v576_v0, %v482_v20  ;;  %v260_v29 = vmul.f32 %v576_v0, %v483_v21  ;;  %v261_v30 = vmul.f32 %v576_v0, %v486_v22  ;;  %v262_v31 = vmul.f32 %v576_v0, %v487_v23 }
  0x23   : > { %352 = vst.msk [vmem:[%s603_s25 + $0x60] sm:$0xff] %vm339_vm0, %v319_v12  ;;  %v291_v32 = vadd.f32 %v584_v5, %v255_v24  ;;  %v292_v33 = vadd.f32 %v584_v5, %v256_v25  ;;  %v293_v34 = vadd.f32 %v584_v5, %v257_v26  ;;  %v294_v35 = vadd.f32 %v584_v5, %v258_v27 }
  0x24   : > { %353 = vst.msk [vmem:[%s603_s25 + $0x68] sm:$0xff] %vm339_vm0, %v320_v13  ;;  %v295_v36 = vadd.f32 %v584_v5, %v259_v28  ;;  %v296_v37 = vadd.f32 %v584_v5, %v260_v29  ;;  %v297_v38 = vadd.f32 %v584_v5, %v261_v30  ;;  %v298_v39 = vadd.f32 %v584_v5, %v262_v31 }
  0x25   : > { %354 = vst.msk [vmem:[%s603_s25 + $0x70] sm:$0xff] %vm339_vm0, %v321_v14  ;;  %v323_v43 = vmax.f32 %v291_v32, 0.0  ;;  %v324_v44 = vmax.f32 %v292_v33, 0.0  ;;  %v325_v45 = vmax.f32 %v293_v34, 0.0  ;;  %v326_v46 = vmax.f32 %v294_v35, 0.0 }
  0x26   : > { %355 = vst.msk [vmem:[%s603_s25 + $0x78] sm:$0xff] %vm339_vm0, %v322_v15  ;;  %v327_v48 = vmax.f32 %v295_v36, 0.0  ;;  %v328_v49 = vmax.f32 %v296_v37, 0.0  ;;  %v329_v50 = vmax.f32 %v297_v38, 0.0  ;;  %v330_v51 = vmax.f32 %v298_v39, 0.0 }
  0x27   : > { %356 = vst.msk [vmem:[%s603_s25 + $0x80] sm:$0xff] %vm339_vm0, %v323_v43  ;;  %v490_v52 = vunpack.c.l.bf16 %v515_v40  ;;  %v491_v53 = vunpack.c.h.bf16 %v515_v40  ;;  %v494_v54 = vunpack.c.l.bf16 %v516_v41  ;;  %v495_v55 = vunpack.c.h.bf16 %v516_v41 }
  0x28   : > { %357 = vst.msk [vmem:[%s603_s25 + $0x88] sm:$0xff] %vm339_vm0, %v324_v44  ;;  %v498_v56 = vunpack.c.l.bf16 %v517_v42  ;;  %v499_v57 = vunpack.c.h.bf16 %v517_v42  ;;  %v502_v58 = vunpack.c.l.bf16 %v518_v47  ;;  %v503_v59 = vunpack.c.h.bf16 %v518_v47 }
  0x29   : > { %358 = vst.msk [vmem:[%s603_s25 + $0x90] sm:$0xff] %vm339_vm0, %v325_v45  ;;  %v263_v60 = vmul.f32 %v576_v0, %v490_v52  ;;  %v264_v61 = vmul.f32 %v576_v0, %v491_v53  ;;  %v265_v62 = vmul.f32 %v576_v0, %v494_v54  ;;  %v266_v63 = vmul.f32 %v576_v0, %v495_v55 }
  0x2a   : > { %359 = vst.msk [vmem:[%s603_s25 + $0x98] sm:$0xff] %vm339_vm0, %v326_v46  ;;  %v267_v1 = vmul.f32 %v576_v0, %v498_v56  ;;  %v268_v2 = vmul.f32 %v576_v0, %v499_v57  ;;  %v269_v3 = vmul.f32 %v576_v0, %v502_v58  ;;  %v270_v4 = vmul.f32 %v576_v0, %v503_v59 }
  0x2b   : > { %360 = vst.msk [vmem:[%s603_s25 + $0xa0] sm:$0xff] %vm339_vm0, %v327_v48  ;;  %v299_v6 = vadd.f32 %v584_v5, %v263_v60  ;;  %v300_v7 = vadd.f32 %v584_v5, %v264_v61  ;;  %v301_v8 = vadd.f32 %v584_v5, %v265_v62  ;;  %v302_v9 = vadd.f32 %v584_v5, %v266_v63 }
  0x2c   : > { %361 = vst.msk [vmem:[%s603_s25 + $0xa8] sm:$0xff] %vm339_vm0, %v328_v49  ;;  %v303_v10 = vadd.f32 %v584_v5, %v267_v1  ;;  %v304_v0 = vadd.f32 %v584_v5, %v268_v2  ;;  %v305_v14 = vadd.f32 %v584_v5, %v269_v3  ;;  %v306_v16 = vadd.f32 %v584_v5, %v270_v4 }
  0x2d   : > { %362 = vst.msk [vmem:[%s603_s25 + $0xb0] sm:$0xff] %vm339_vm0, %v329_v50  ;;  %v331_v11 = vmax.f32 %v299_v6, 0.0  ;;  %v332_v12 = vmax.f32 %v300_v7, 0.0  ;;  %v333_v13 = vmax.f32 %v301_v8, 0.0  ;;  %v334_v15 = vmax.f32 %v302_v9, 0.0 }
  0x2e   : > { %363 = vst.msk [vmem:[%s603_s25 + $0xb8] sm:$0xff] %vm339_vm0, %v330_v51  ;;  %v335_v17 = vmax.f32 %v303_v10, 0.0  ;;  %v336_v18 = vmax.f32 %v304_v0, 0.0  ;;  %v337_v19 = vmax.f32 %v305_v14, 0.0  ;;  %v338_v20 = vmax.f32 %v306_v16, 0.0 }
  0x2f   : > { %364 = vst.msk [vmem:[%s603_s25 + $0xc0] sm:$0xff] %vm339_vm0, %v331_v11 }
  0x30   : > { %365 = vst.msk [vmem:[%s603_s25 + $0xc8] sm:$0xff] %vm339_vm0, %v332_v12 }
  0x31   : > { %366 = vst.msk [vmem:[%s603_s25 + $0xd0] sm:$0xff] %vm339_vm0, %v333_v13 }
  0x32   : > { %367 = vst.msk [vmem:[%s603_s25 + $0xd8] sm:$0xff] %vm339_vm0, %v334_v15 }
  0x33   : > { %368 = vst.msk [vmem:[%s603_s25 + $0xe0] sm:$0xff] %vm339_vm0, %v335_v17 }
  0x34   : > { %369 = vst.msk [vmem:[%s603_s25 + $0xe8] sm:$0xff] %vm339_vm0, %v336_v18 }
  0x35   : > { %370 = vst.msk [vmem:[%s603_s25 + $0xf0] sm:$0xff] %vm339_vm0, %v337_v19 }
  0x36   : > { %371 = vst.msk [vmem:[%s603_s25 + $0xf8] sm:$0xff] %vm339_vm0, %v338_v20 }
  0x37 PF: > { %s13_s12 = sadd.s32 1, %s535_s12  }
  0x38   : > { %p10_p4 = scmp.ge.s32.totalorder %s13_s12, 4  }
  0x3a   :  { %12 = sbr.rel (!%p10_p4) target bundleno = 1 (0x1), region = 62 }

// kernel: double_conv.4
= control target key start
LH: loop header
LB: loop body
LE: loop exit
PB: predicated region body
PF: predicated region fallthrough
CT: control target
= control target key end

     0   :  { %s3531_s18 = smov 0   ;;  %s4286_s0 = inlined_call_operand.vmem [shape: bf16[2,16,16,128], index: 0, kind: input, shape index: {}]   ;;  %s4287_s1 = inlined_call_operand.vmem [shape: bf16[3,3,128,128], index: 1, kind: input, shape index: {}]   ;;  %s4288_s2 = inlined_call_operand.vmem [shape: f32[1,128], index: 2, kind: input, shape index: {}]   ;;  %s4289_s3 = inlined_call_operand.vmem [shape: f32[1,128], index: 3, kind: input, shape index: {}]   ;;  %s4290_s4 = inlined_call_operand.vmem [shape: bf16[2,16,16,128], index: 4, kind: output, shape index: {0}]   ;;  %s4291_s5 = inlined_call_operand.vmem [shape: f32[2,2,128], index: 5, kind: output, shape index: {1}]  }
   0x1 LB: > { %s2777_s19 = sadd.s32 4294967295, %s3497_s18   ;;  %p2781_p0 = scmp.ge.s32.totalorder %s3497_s18, 1  ;;  %s3497_s18 = sphi %s3531_s18, %s16_s18  }
   0x2   : > { %p190_p1 = scmp.lt.s32.totalorder %s3497_s18, 3 }
   0x4   : > { %p191_p2 = pnand %p2781_p0, %p190_p1 }
   0x6   : > { %194 = sbr.rel (%p191_p2) target bundleno = 767 (0x2ff), region = 36 }
   0xb   : > { %v3222_v0 = vld [vmem:[%s4287_s1 + $0x78] sm:$0xff]  ;;  %p222_p3 = scmp.lt.s32.totalorder %s2777_s19, 1  ;;  %v3499_v1 = vmov 0.0   ;;  %v3221_v2 = vld [vmem:[%s4287_s1 + $0x70] sm:$0xff]  ;;  %v3220_v3 = vld [vmem:[%s4287_s1 + $0x68] sm:$0xff]  ;;  %vm2688_vm0 = vcmask 1040384  }
   0xc   : > { %404 = vst [vmem:[#allocation2] sm:$0xff] %v3499_v1  ;;  %3453 = vmatpush.bf16.msra.mxu1 %v3222_v0  ;;  %3454 = vmatpush.bf16.msra.mxu2 %v3222_v0  ;;  %v3564_v4 = vld [vmem:[%s4288_s2] ss:$0 sm:$0xff]  ;;  %v3218_v28 = vld [vmem:[%s4287_s1 + $0x58] sm:$0xff]  ;;  %v3217_v34 = vld [vmem:[%s4287_s1 + $0x50] sm:$0xff] }
   0xd   : > { %s4312_s19 = smov (!%p222_p3, %s2777_s19), 1  ;;  %405 = vst [vmem:[#allocation2 + $0x8] sm:$0xff] %v3499_v1  ;;  %3455 = vmatpush.bf16.msra.mxu3 %v3222_v0  ;;  %653 = vmatpush.bf16.msra.mxu0 %v3222_v0  ;;  %v3574_v10 = vld [vmem:[%s4289_s3] ss:$0 sm:$0xff]  ;;  %v3216_v36 = vld [vmem:[%s4287_s1 + $0x48] sm:$0xff]  ;;  %v3230_v45 = vld [vmem:[%s4287_s1 + $0xb8] sm:$0xff] }
   0xe   : > { %s3205_s24 = sshll.u32 %s4312_s19, 7  ;;  %406 = vst [vmem:[#allocation2 + $0x10] sm:$0x3] %v3499_v1  ;;  %v3219_v19 = vld [vmem:[%s4287_s1 + $0x60] sm:$0xff]  ;;  %v3238_v47 = vld [vmem:[%s4287_s1 + $0xf8] sm:$0xff]  ;;  %v3229_v60 = vld [vmem:[%s4287_s1 + $0xb0] sm:$0xff] }
   0xf   : > { %s3559_s29 = scalar_lea.vmem %s4286_s0, %s3205_s24  ;;  %408 = vst [vmem:[#allocation2 + $0x198] sm:$0xff] %v3499_v1  ;;  %v3215_v40 = vld [vmem:[%s4287_s1 + $0x40] sm:$0xff]  ;;  %v3214_v58 = vld [vmem:[%s4287_s1 + $0x38] sm:$0xff]  ;;  %v3237_v61 = vld [vmem:[%s4287_s1 + $0xf0] sm:$0xff]  ;;  %s4226_s30 = scalar_lea.vmem %s4290_s4, %s3205_s24 }
  0x10   : > { %3456 = vmatpush.bf16.msra.mxu1 %v3221_v2  ;;  %3457 = vmatpush.bf16.msra.mxu2 %v3221_v2  ;;  %v3425_v5 = vld [vmem:[%s3559_s29 + $0x18] sm:$0xff]   ;;  %409 = vst [vmem:[#allocation2 + $0x1a0] sm:$0xff] %v3499_v1  ;;  %v3426_v39 = vld [vmem:[%s3559_s29 + $0x20] sm:$0xff]   ;;  %s2786_s24 = sshll.u32 %s4312_s19, 1 }
  0x11   : > { %v3429_v6 = vld [vmem:[%s3559_s29 + $0x38] sm:$0xff]   ;;  %3458 = vmatpush.bf16.msra.mxu3 %v3221_v2  ;;  %654 = vmatpush.bf16.msra.mxu0 %v3221_v2  ;;  %v3293_v8 = vunpack.c.l.bf16 %v3425_v5  ;;  %v3294_v9 = vunpack.c.h.bf16 %v3425_v5  ;;  %410 = vst [vmem:[#allocation2 + $0x1a8] sm:$0x3] %v3499_v1  ;;  %v3430_v41 = vld [vmem:[%s3559_s29 + $0x40] sm:$0xff]   ;;  %v3297_v48 = vunpack.c.l.bf16 %v3426_v39  ;;  %v3298_v49 = vunpack.c.h.bf16 %v3426_v39  ;;  %s235_s8 = scalar_lea.vmem %s4291_s5, %s2786_s24 }
  0x12   : > { %v3433_v7 = vld [vmem:[%s3559_s29 + $0x58] sm:$0xff]   ;;  %v3309_v11 = vunpack.c.l.bf16 %v3429_v6  ;;  %v3310_v12 = vunpack.c.h.bf16 %v3429_v6  ;;  %412 = vst [vmem:[#allocation2 + $0x18] sm:$0x1] %v3499_v1  ;;  %v3434_v42 = vld [vmem:[%s3559_s29 + $0x60] sm:$0xff]   ;;  %v3313_v51 = vunpack.c.l.bf16 %v3430_v41  ;;  %v3314_v52 = vunpack.c.h.bf16 %v3430_v41 }
  0x13   : > { %v3325_v13 = vunpack.c.l.bf16 %v3433_v7  ;;  %v3326_v14 = vunpack.c.h.bf16 %v3433_v7  ;;  %v310_v15 = vmul.f32 %v3564_v4, %v3293_v8  ;;  %v311_v16 = vmul.f32 %v3564_v4, %v3294_v9  ;;  %413 = vst [vmem:[#allocation2 + $0x30] sm:$0x1] %v3499_v1  ;;  %v3280_v43 = vld [vmem:[%s3559_s29] sm:$0xff]   ;;  %v3246_v59 = vld [vmem:[%s4287_s1 + $0x138] sm:$0xff]  ;;  %v3213_v8 = vld [vmem:[%s4287_s1 + $0x30] sm:$0xff] }
  0x14   : > { %v318_v17 = vmul.f32 %v3564_v4, %v3309_v11  ;;  %v319_v18 = vmul.f32 %v3564_v4, %v3310_v12  ;;  %3459 = vmatpush.bf16.msra.mxu1 %v3220_v3  ;;  %3460 = vmatpush.bf16.msra.mxu2 %v3220_v3  ;;  %414 = vst [vmem:[#allocation2 + $0x48] sm:$0x1] %v3499_v1  ;;  %v540_v37 = vld [vmem:[#allocation2 + $0x1] sm:$0xff]  ;;  %v3329_v53 = vunpack.c.l.bf16 %v3434_v42  ;;  %v3330_v55 = vunpack.c.h.bf16 %v3434_v42  ;;  %v3245_v9 = vld [vmem:[%s4287_s1 + $0x130] sm:$0xff] }
  0x15   : > { %v326_v20 = vmul.f32 %v3564_v4, %v3325_v13  ;;  %v327_v21 = vmul.f32 %v3564_v4, %v3326_v14  ;;  %3461 = vmatpush.bf16.msra.mxu3 %v3220_v3  ;;  %655 = vmatpush.bf16.msra.mxu0 %v3220_v3  ;;  %v346_v22 = vadd.f32 %v3574_v10, %v310_v15  ;;  %v541_v38 = vld [vmem:[#allocation2 + $0x9] sm:$0xff]  ;;  %v3281_v56 = vunpack.c.l.bf16 %v3280_v43  ;;  %v3211_v39 = vld [vmem:[%s4287_s1 + $0x20] sm:$0xff] }
  0x16   : > { %v347_v23 = vadd.f32 %v3574_v10, %v311_v16  ;;  %v354_v24 = vadd.f32 %v3574_v10, %v318_v17  ;;  %415 = vst [vmem:[#allocation2 + $0x60] sm:$0x1] %v3499_v1  ;;  %v355_v25 = vadd.f32 %v3574_v10, %v319_v18  ;;  %v572_v46 = vpack.c.bf16 %v541_v38, %v540_v37  ;;  %v3228_v12 = vld [vmem:[%s4287_s1 + $0xa8] sm:$0xff] }
  0x17   : > { %416 = vst [vmem:[#allocation2 + $0x78] sm:$0x1] %v3499_v1  ;;  %v378_v26 = vmax.f32 %v346_v22, 0.0  ;;  %v3596_v27 = vadd.f32 %v3574_v10, %v326_v20  ;;  %v363_v30 = vadd.f32 %v3574_v10, %v327_v21  ;;  %v3282_v57 = vunpack.c.h.bf16 %v3280_v43  ;;  %v3236_v13 = vld [vmem:[%s4287_s1 + $0xe8] sm:$0xff]  ;;  %v3243_v43 = vld [vmem:[%s4287_s1 + $0x120] sm:$0xff] }
  0x18   : > { %417 = vst [vmem:[#allocation2 + $0x90] sm:$0x1] %v3499_v1  ;;  %3462 = vmatpush.bf16.msra.mxu1 %v3219_v19  ;;  %3463 = vmatpush.bf16.msra.mxu2 %v3219_v19  ;;  %v379_v29 = vmax.f32 %v347_v23, 0.0  ;;  %v386_v31 = vmax.f32 %v354_v24, 0.0  ;;  %v387_v32 = vmax.f32 %v355_v25, 0.0  ;;  %v312_v62 = vmul.f32 %v3564_v4, %v3297_v48  ;;  %v3427_v14 = vld [vmem:[%s3559_s29 + $0x28] sm:$0xff]  }
  0x19   : > { %418 = vst [vmem:[#allocation2 + $0xa8] sm:$0x1] %v3499_v1  ;;  %3464 = vmatpush.bf16.msra.mxu3 %v3219_v19  ;;  %656 = vmatpush.bf16.msra.mxu0 %v3219_v19  ;;  %v394_v33 = vmax.f32 %v3596_v27, 0.0  ;;  %v395_v35 = vmax.f32 %v363_v30, 0.0  ;;  %v313_v63 = vmul.f32 %v3564_v4, %v3298_v49  ;;  %v320_v0 = vmul.f32 %v3564_v4, %v3313_v51  ;;  %v3431_v22 = vld [vmem:[%s3559_s29 + $0x48] sm:$0xff]   ;;  %v3227_v27 = vld [vmem:[%s4287_s1 + $0xa0] sm:$0xff] }
  0x1a   : > { %450 = vst [vmem:[#allocation2 + $0x61] sm:$0xff] %v378_v26  ;;  %v3625_v44 = vpack.c.bf16 %v379_v29, %v378_v26  ;;  %v580_v50 = vpack.c.bf16 %v387_v32, %v386_v31  ;;  %v321_v2 = vmul.f32 %v3564_v4, %v3314_v52  ;;  %v328_v3 = vmul.f32 %v3564_v4, %v3329_v53  ;;  %v3212_v23 = vld [vmem:[%s4287_s1 + $0x28] sm:$0xff]  ;;  %v3234_v48 = vld [vmem:[%s4287_s1 + $0xd8] sm:$0xff]  ;;  %v3428_v53 = vld [vmem:[%s3559_s29 + $0x30] sm:$0xff]  }
  0x1b   : > { %451 = vst [vmem:[#allocation2 + $0x69] sm:$0xff] %v379_v29  ;;  %v584_v54 = vpack.c.bf16 %v395_v35, %v394_v33  ;;  %v329_v5 = vmul.f32 %v3564_v4, %v3330_v55  ;;  %v304_v6 = vmul.f32 %v3564_v4, %v3281_v56  ;;  %v305_v7 = vmul.f32 %v3564_v4, %v3282_v57  ;;  %v3244_v24 = vld [vmem:[%s4287_s1 + $0x128] sm:$0xff] }
  0x1c   : > { %458 = vst [vmem:[#allocation2 + $0xc1] sm:$0xff] %v386_v31  ;;  %3465 = vmatpush.bf16.msra.mxu1 %v3218_v28  ;;  %3466 = vmatpush.bf16.msra.mxu2 %v3218_v28  ;;  %v348_v11 = vadd.f32 %v3574_v10, %v312_v62  ;;  %v349_v15 = vadd.f32 %v3574_v10, %v313_v63  ;;  %v3301_v25 = vunpack.c.l.bf16 %v3427_v14  ;;  %v3302_v29 = vunpack.c.h.bf16 %v3427_v14  ;;  %v3423_v42 = vld [vmem:[%s3559_s29 + $0x8] sm:$0xff]  }
  0x1d   : > { %459 = vst [vmem:[#allocation2 + $0xc9] sm:$0xff] %v387_v32  ;;  %3467 = vmatpush.bf16.msra.mxu3 %v3218_v28  ;;  %657 = vmatpush.bf16.msra.mxu0 %v3218_v28  ;;  %v3680_v16 = vadd.f32 %v3574_v10, %v320_v0  ;;  %v3683_v17 = vadd.f32 %v3574_v10, %v321_v2  ;;  %v3235_v28 = vld [vmem:[%s4287_s1 + $0xe0] sm:$0xff]  ;;  %v3318_v41 = vunpack.c.h.bf16 %v3431_v22  ;;  %v3285_v56 = vunpack.c.l.bf16 %v3423_v42  ;;  %v3225_v0 = vld [vmem:[%s4287_s1 + $0x90] sm:$0xff] }
  0x1e   : > { %466 = vst [vmem:[#allocation2 + $0x121] sm:$0xff] %v394_v33  ;;  %v3687_v18 = vadd.f32 %v3574_v10, %v328_v3  ;;  %v3690_v19 = vadd.f32 %v3574_v10, %v329_v5  ;;  %v3693_v20 = vadd.f32 %v3574_v10, %v304_v6  ;;  %v3696_v21 = vadd.f32 %v3574_v10, %v305_v7  ;;  %v3233_v2 = vld [vmem:[%s4287_s1 + $0xd0] sm:$0xff] }
  0x1f   : > { %467 = vst [vmem:[#allocation2 + $0x129] sm:$0xff] %v395_v35  ;;  %v380_v26 = vmax.f32 %v348_v11, 0.0  ;;  %v381_v30 = vmax.f32 %v349_v15, 0.0  ;;  %v388_v31 = vmax.f32 %v3680_v16, 0.0  ;;  %v389_v32 = vmax.f32 %v3683_v17, 0.0  ;;  %v3209_v15 = vld [vmem:[%s4287_s1 + $0x10] sm:$0xff] }
  0x20   : > { %419 = vst [vmem:[#allocation2 + $0xc0] sm:$0x1] %v3499_v1  ;;  %3468 = vmatpush.bf16.msra.mxu1 %v3217_v34  ;;  %3469 = vmatpush.bf16.msra.mxu2 %v3217_v34  ;;  %v3317_v33 = vunpack.c.l.bf16 %v3431_v22  ;;  %v396_v35 = vmax.f32 %v3687_v18, 0.0  ;;  %v372_v37 = vmax.f32 %v3693_v20, 0.0  ;;  %v373_v38 = vmax.f32 %v3696_v21, 0.0  ;;  %v3424_v17 = vld [vmem:[%s3559_s29 + $0x10] sm:$0xff]  }
  0x21   : > { %420 = vst [vmem:[#allocation2 + $0xd8] sm:$0x1] %v3499_v1  ;;  %3470 = vmatpush.bf16.msra.mxu3 %v3217_v34  ;;  %658 = vmatpush.bf16.msra.mxu0 %v3217_v34  ;;  %v3435_v34 = vld [vmem:[%s3559_s29 + $0x68] sm:$0xff]   ;;  %v3740_v49 = vpack.c.bf16 %v381_v30, %v380_v26  ;;  %v3286_v57 = vunpack.c.h.bf16 %v3423_v42  ;;  %v3305_v3 = vunpack.c.l.bf16 %v3428_v53  ;;  %v3306_v7 = vunpack.c.h.bf16 %v3428_v53  ;;  %v3241_v18 = vld [vmem:[%s4287_s1 + $0x110] sm:$0xff]  ;;  %v3231_v42 = vld [vmem:[%s4287_s1 + $0xc0] sm:$0xff] }
  0x22   : > { %421 = vst [vmem:[#allocation2 + $0xf0] sm:$0x1] %v3499_v1  ;;  %v322_v51 = vmul.f32 %v3564_v4, %v3317_v33  ;;  %v3334_v52 = vunpack.c.h.bf16 %v3435_v34  ;;  %v3750_v55 = vpack.c.bf16 %v373_v38, %v372_v37  ;;  %v3289_v33 = vunpack.c.l.bf16 %v3424_v17 }
  0x23   : > { %422 = vst [vmem:[#allocation2 + $0x108] sm:$0x1] %v3499_v1  ;;  %v307_v11 = vmul.f32 %v3564_v4, %v3286_v57  ;;  %v3239_v57 = vld [vmem:[%s4287_s1 + $0x100] sm:$0xff] }
  0x24   : > { %423 = vst [vmem:[#allocation2 + $0x120] sm:$0x1] %v3499_v1  ;;  %3471 = vmatpush.bf16.msra.mxu1 %v3216_v36  ;;  %3472 = vmatpush.bf16.msra.mxu2 %v3216_v36  ;;  %v3776_v5 = vadd.f32 %v3574_v10, %v322_v51  ;;  %v331_v6 = vmul.f32 %v3564_v4, %v3334_v52 }
  0x25   : > { %424 = vst [vmem:[#allocation2 + $0x138] sm:$0x1] %v3499_v1  ;;  %3473 = vmatpush.bf16.msra.mxu3 %v3216_v36  ;;  %659 = vmatpush.bf16.msra.mxu0 %v3216_v36  ;;  %v397_v36 = vmax.f32 %v3690_v19, 0.0  ;;  %v308_v52 = vmul.f32 %v3564_v4, %v3289_v33 }
  0x26   : > { %425 = vst [vmem:[#allocation2 + $0x150] sm:$0x1] %v3499_v1  ;;  %v390_v20 = vmax.f32 %v3776_v5, 0.0 }
  0x27   : > { %426 = vst [vmem:[#allocation2 + $0x168] sm:$0x1] %v3499_v1 }
  0x28   : > { %427 = vst [vmem:[#allocation2 + $0x180] sm:$0x1] %v3499_v1  ;;  %3474 = vmatpush.bf16.msra.mxu1 %v3215_v40  ;;  %3475 = vmatpush.bf16.msra.mxu2 %v3215_v40 }
  0x29   : > { %428 = vst [vmem:[#allocation2 + $0x29] sm:$0x1] %v3499_v1  ;;  %3476 = vmatpush.bf16.msra.mxu3 %v3215_v40  ;;  %660 = vmatpush.bf16.msra.mxu0 %v3215_v40  ;;  %v314_v40 = vmul.f32 %v3564_v4, %v3301_v25  ;;  %v3224_v25 = vld [vmem:[%s4287_s1 + $0x88] sm:$0xff] }
  0x2a   : > { %429 = vst [vmem:[#allocation2 + $0x41] sm:$0x1] %v3499_v1 }
  0x2b   : > { %430 = vst [vmem:[#allocation2 + $0x59] sm:$0x1] %v3499_v1  ;;  %681 = vmatmul.bf16.vlgmr.msra.gmra.mxu1 %v3625_v44  ;;  %701 = vmatmul.bf16.vlgmr.msra.gmra.mxu2 %v580_v50  ;;  %v3742_v50 = vpack.c.bf16 %v389_v32, %v388_v31 }
  0x2c   : > { %992 = vmatpush.bf16.msrb.mxu2 %v3230_v45  ;;  %431 = vst [vmem:[#allocation2 + $0x71] sm:$0x1] %v3499_v1  ;;  %721 = vmatmul.bf16.vlgmr.msra.gmra.mxu3 %v584_v54  ;;  %v315_v45 = vmul.f32 %v3564_v4, %v3302_v29  ;;  %v585_v54 = vpack.c.bf16 %v397_v36, %v396_v35 }
  0x2d   : > { %1226 = vmatpush.bf16.msrb.mxu3 %v3238_v47  ;;  %661 = vmatmul.bf16.vlgmr.msra.gmra.mxu0 %v572_v46  ;;  %432 = vst [vmem:[#allocation2 + $0x89] sm:$0x1] %v3499_v1  ;;  %v3333_v46 = vunpack.c.l.bf16 %v3435_v34  ;;  %v3226_v47 = vld [vmem:[%s4287_s1 + $0x98] sm:$0xff] }
  0x2e   : > { %433 = vst [vmem:[#allocation2 + $0xa1] sm:$0x1] %v3499_v1  ;;  %790 = vmatpush.bf16.msrb.mxu1 %v3214_v58  ;;  %1460 = vmatpush.bf16.msrb.mxu0 %v3246_v59  ;;  %v323_v58 = vmul.f32 %v3564_v4, %v3318_v41  ;;  %v3210_v59 = vld [vmem:[%s4287_s1 + $0x18] sm:$0xff]  ;;  %v3764_v62 = vadd.f32 %v3574_v10, %v315_v45  ;;  %v3223_v41 = vld [vmem:[%s4287_s1 + $0x80] sm:$0xff] }
  0x2f   : > { %434 = vst [vmem:[#allocation2 + $0xb9] sm:$0x1] %v3499_v1  ;;  %v330_v63 = vmul.f32 %v3564_v4, %v3333_v46 }
  0x30   : > { %993 = vmatpush.bf16.msrb.mxu2 %v3229_v60  ;;  %435 = vst [vmem:[#allocation2 + $0xd1] sm:$0x1] %v3499_v1  ;;  %v3242_v60 = vld [vmem:[%s4287_s1 + $0x118] sm:$0xff]  ;;  %v3785_v14 = vadd.f32 %v3574_v10, %v323_v58  ;;  %v383_v19 = vmax.f32 %v3764_v62, 0.0 }
  0x31   : > { %1227 = vmatpush.bf16.msrb.mxu3 %v3237_v61  ;;  %436 = vst [vmem:[#allocation2 + $0xe9] sm:$0x1] %v3499_v1  ;;  %v3432_v61 = vld [vmem:[%s3559_s29 + $0x50] sm:$0xff]   ;;  %v366_v22 = vadd.f32 %v3574_v10, %v330_v63 }
  0x32   : > { %437 = vst [vmem:[#allocation2 + $0x101] sm:$0x1] %v3499_v1  ;;  %791 = vmatpush.bf16.msrb.mxu1 %v3213_v8  ;;  %1461 = vmatpush.bf16.msrb.mxu0 %v3245_v9  ;;  %v3436_v8 = vld [vmem:[%s3559_s29 + $0x70] sm:$0xff]   ;;  %v306_v9 = vmul.f32 %v3564_v4, %v3285_v56  ;;  %v3322_v16 = vunpack.c.h.bf16 %v3432_v61  ;;  %v391_v21 = vmax.f32 %v3785_v14, 0.0  ;;  %v3207_v56 = vld [vmem:[%s4287_s1] sm:$0xff] }
  0x33   : > { %438 = vst [vmem:[#allocation2 + $0x119] sm:$0x1] %v3499_v1  ;;  %v3338_v29 = vunpack.c.h.bf16 %v3436_v8 }
  0x34   : > { %994 = vmatpush.bf16.msrb.mxu2 %v3228_v12  ;;  %439 = vst [vmem:[#allocation2 + $0x131] sm:$0x1] %v3499_v1  ;;  %v3321_v12 = vunpack.c.l.bf16 %v3432_v61  ;;  %v325_v34 = vmul.f32 %v3564_v4, %v3322_v16 }
  0x35   : > { %1228 = vmatpush.bf16.msrb.mxu3 %v3236_v13  ;;  %440 = vst [vmem:[#allocation2 + $0x149] sm:$0x1] %v3499_v1  ;;  %v333_v46 = vmul.f32 %v3564_v4, %v3338_v29  ;;  %v3277_v29 = vld [vmem:[%s4287_s1 + $0x230] sm:$0xff] }
  0x36   : > { %441 = vst [vmem:[#allocation2 + $0x161] sm:$0x1] %v3499_v1  ;;  %792 = vmatpush.bf16.msrb.mxu1 %v3212_v23  ;;  %1462 = vmatpush.bf16.msrb.mxu0 %v3244_v24  ;;  %v316_v23 = vmul.f32 %v3564_v4, %v3305_v3  ;;  %v3337_v24 = vunpack.c.l.bf16 %v3436_v8  ;;  %v361_v53 = vadd.f32 %v3574_v10, %v325_v34 }
  0x37   : > { %442 = vst [vmem:[#allocation2 + $0x179] sm:$0x1] %v3499_v1  ;;  %v369_v62 = vadd.f32 %v3574_v10, %v333_v46  ;;  %v344_v3 = vadd.f32 %v3574_v10, %v308_v52 }
  0x38   : > { %995 = vmatpush.bf16.msrb.mxu2 %v3227_v27  ;;  %443 = vst [vmem:[#allocation2 + $0x191] sm:$0x1] %v3499_v1  ;;  %v3753_v1 = vadd.f32 %v3574_v10, %v314_v40  ;;  %v367_v27 = vadd.f32 %v3574_v10, %v331_v6  ;;  %v332_v40 = vmul.f32 %v3564_v4, %v3337_v24  ;;  %v393_v5 = vmax.f32 %v361_v53, 0.0  ;;  %v887_v53 = vld [vmem:[#allocation2 + $0x62] sm:$0xff] }
  0x39   : > { %1229 = vmatpush.bf16.msrb.mxu3 %v3235_v28  ;;  %452 = vst [vmem:[#allocation2 + $0x79] sm:$0xff] %v380_v26  ;;  %v3232_v26 = vld [vmem:[%s4287_s1 + $0xc8] sm:$0xff]  ;;  %v317_v28 = vmul.f32 %v3564_v4, %v3306_v7  ;;  %v401_v7 = vmax.f32 %v369_v62, 0.0  ;;  %v376_v8 = vmax.f32 %v344_v3, 0.0  ;;  %v3251_v3 = vld [vmem:[%s4287_s1 + $0x160] sm:$0xff] }
  0x3a   : > { %453 = vst [vmem:[#allocation2 + $0x81] sm:$0xff] %v381_v30  ;;  %793 = vmatpush.bf16.msrb.mxu1 %v3211_v39  ;;  %1463 = vmatpush.bf16.msrb.mxu0 %v3243_v43  ;;  %v382_v13 = vmax.f32 %v3753_v1, 0.0  ;;  %v342_v30 = vadd.f32 %v3574_v10, %v306_v9  ;;  %v3824_v39 = vadd.f32 %v3574_v10, %v316_v23  ;;  %v399_v43 = vmax.f32 %v367_v27, 0.0  ;;  %v3262_v9 = vld [vmem:[%s4287_s1 + $0x1b8] sm:$0xff]  ;;  %v3269_v27 = vld [vmem:[%s4287_s1 + $0x1f0] sm:$0xff] }
  0x3b   : > { %460 = vst [vmem:[#allocation2 + $0xd9] sm:$0xff] %v388_v31  ;;  %686 = vmatmul.bf16.gmra.mxu1 %v3740_v49  ;;  %706 = vmatmul.bf16.gmra.mxu2 %v3742_v50  ;;  %v343_v31 = vadd.f32 %v3574_v10, %v307_v11  ;;  %v353_v45 = vadd.f32 %v3574_v10, %v317_v28  ;;  %v3254_v11 = vld [vmem:[%s4287_s1 + $0x178] sm:$0xff]  ;;  %v3253_v28 = vld [vmem:[%s4287_s1 + $0x170] sm:$0xff] }
  0x3c   : > { %996 = vmatpush.bf16.msrb.mxu2 %v3226_v47  ;;  %461 = vst [vmem:[#allocation2 + $0xe1] sm:$0xff] %v389_v32  ;;  %726 = vmatmul.bf16.gmra.mxu3 %v585_v54  ;;  %v324_v32 = vmul.f32 %v3564_v4, %v3321_v12  ;;  %v374_v47 = vmax.f32 %v342_v30, 0.0  ;;  %v384_v58 = vmax.f32 %v3824_v39, 0.0 }
  0x3d   : > { %1230 = vmatpush.bf16.msrb.mxu3 %v3234_v48  ;;  %468 = vst [vmem:[#allocation2 + $0x139] sm:$0xff] %v396_v35  ;;  %666 = vmatmul.bf16.gmra.mxu0 %v3750_v55  ;;  %v3290_v35 = vunpack.c.h.bf16 %v3424_v17  ;;  %v375_v48 = vmax.f32 %v343_v31, 0.0  ;;  %v385_v61 = vmax.f32 %v353_v45, 0.0 }
  0x3e   : > { %469 = vst [vmem:[#allocation2 + $0x141] sm:$0xff] %v397_v36  ;;  %794 = vmatpush.bf16.msrb.mxu1 %v3210_v59  ;;  %1464 = vmatpush.bf16.msrb.mxu0 %v3242_v60  ;;  %v3208_v36 = vld [vmem:[%s4287_s1 + $0x8] sm:$0xff]  ;;  %v360_v51 = vadd.f32 %v3574_v10, %v324_v32  ;;  %v368_v59 = vadd.f32 %v3574_v10, %v332_v40 }
  0x3f   : > { %444 = vst [vmem:[#allocation2 + $0x19] sm:$0xff] %v372_v37  ;;  %v3240_v37 = vld [vmem:[%s4287_s1 + $0x108] sm:$0xff]  ;;  %v309_v54 = vmul.f32 %v3564_v4, %v3290_v35  ;;  %v3849_v4 = vpack.c.bf16 %v383_v19, %v382_v13  ;;  %v3851_v60 = vpack.c.bf16 %v391_v21, %v390_v20  ;;  %v3873_v14 = vpack.c.bf16 %v385_v61, %v384_v58 }
  0x40   : > { %997 = vmatpush.bf16.msrb.mxu2 %v3225_v0  ;;  %445 = vst [vmem:[#allocation2 + $0x21] sm:$0xff] %v373_v38  ;;  %v398_v38 = vmax.f32 %v366_v22, 0.0  ;;  %v3854_v0 = vpack.c.bf16 %v375_v48, %v374_v47  ;;  %v400_v1 = vmax.f32 %v368_v59, 0.0  ;;  %v3260_v40 = vld [vmem:[%s4287_s1 + $0x1a8] sm:$0xff] }
  0x41   : > { %1231 = vmatpush.bf16.msrb.mxu3 %v3233_v2  ;;  %454 = vst [vmem:[#allocation2 + $0x91] sm:$0xff] %v382_v13  ;;  %v392_v2 = vmax.f32 %v360_v51, 0.0  ;;  %v345_v6 = vadd.f32 %v3574_v10, %v309_v54  ;;  %v3270_v10 = vld [vmem:[%s4287_s1 + $0x1f8] sm:$0xff]  ;;  %v888_v54 = vld [vmem:[#allocation2 + $0x6a] sm:$0xff] }
  0x42   : > { %455 = vst [vmem:[#allocation2 + $0x99] sm:$0xff] %v383_v19  ;;  %795 = vmatpush.bf16.msrb.mxu1 %v3209_v15  ;;  %1465 = vmatpush.bf16.msrb.mxu0 %v3241_v18  ;;  %v586_v63 = vpack.c.bf16 %v399_v43, %v398_v38  ;;  %v3278_v13 = vld [vmem:[%s4287_s1 + $0x238] sm:$0xff]  ;;  %v587_v16 = vpack.c.bf16 %v401_v7, %v400_v1  ;;  %v879_v18 = vld [vmem:[#allocation2 + $0x2] sm:$0xff]  ;;  %v880_v19 = vld [vmem:[#allocation2 + $0xa] sm:$0xff] }
  0x43   : > { %462 = vst [vmem:[#allocation2 + $0xf1] sm:$0xff] %v390_v20  ;;  %v377_v12 = vmax.f32 %v345_v6, 0.0  ;;  %v3875_v15 = vpack.c.bf16 %v393_v5, %v392_v2  ;;  %v911_v24 = vpack.c.bf16 %v880_v19, %v879_v18  ;;  %v3261_v20 = vld [vmem:[%s4287_s1 + $0x1b0] sm:$0xff]  ;;  %v3275_v6 = vld [vmem:[%s4287_s1 + $0x220] sm:$0xff] }
  0x44   : > { %998 = vmatpush.bf16.msrb.mxu2 %v3224_v25  ;;  %463 = vst [vmem:[#allocation2 + $0xf9] sm:$0xff] %v391_v21 }
  0x45   : > { %1232 = vmatpush.bf16.msrb.mxu3 %v3232_v26  ;;  %470 = vst [vmem:[#allocation2 + $0x151] sm:$0xff] %v398_v38  ;;  %v575_v17 = vpack.c.bf16 %v377_v12, %v376_v8  ;;  %v3500_v26 = vmov 0.0|0.0  }
  0x46   : > { %471 = vst [vmem:[#allocation2 + $0x159] sm:$0xff] %v399_v43  ;;  %796 = vmatpush.bf16.msrb.mxu1 %v3208_v36  ;;  %1466 = vmatpush.bf16.msrb.mxu0 %v3240_v37  ;;  %v1113_v22 = vld [vmem:[#allocation2 + $0x18] sm:$0xff]  ;;  %v3276_v43 = vld [vmem:[%s4287_s1 + $0x228] sm:$0xff] }
  0x47   : > { %446 = vst [vmem:[#allocation2 + $0x31] sm:$0xff] %v374_v47  ;;  %v1114_v23 = vld [vmem:[#allocation2 + $0x20] sm:$0xff] }
  0x48   : > { %999 = vmatpush.bf16.msrb.mxu2 %v3223_v41  ;;  %447 = vst [vmem:[#allocation2 + $0x39] sm:$0xff] %v375_v48  ;;  %v1145_v25 = vpack.c.bf16 %v1114_v23, %v1113_v22  ;;  %v882_v30 = vld [vmem:[#allocation2 + $0x22] sm:$0xff] }
  0x49   : > { %1233 = vmatpush.bf16.msrb.mxu3 %v3231_v42  ;;  %456 = vst [vmem:[#allocation2 + $0xa9] sm:$0xff] %v384_v58  ;;  %v3268_v41 = vld [vmem:[%s4287_s1 + $0x1e8] sm:$0xff]  ;;  %v1119_v47 = vld [vmem:[#allocation2 + $0x60] sm:$0xff]  ;;  %v3919_v58 = vpack.c.bf16 %v888_v54, %v887_v53 }
  0x4a   : > { %457 = vst [vmem:[#allocation2 + $0xb1] sm:$0xff] %v385_v61  ;;  %797 = vmatpush.bf16.msrb.mxu1 %v3207_v56  ;;  %1467 = vmatpush.bf16.msrb.mxu0 %v3239_v57  ;;  %v3252_v42 = vld [vmem:[%s4287_s1 + $0x168] sm:$0xff]  ;;  %v1121_v56 = vld [vmem:[#allocation2 + $0x78] sm:$0xff]  ;;  %v1122_v57 = vld [vmem:[#allocation2 + $0x80] sm:$0xff] }
  0x4b   : > { %464 = vst [vmem:[#allocation2 + $0x109] sm:$0xff] %v392_v2  ;;  %691 = vmatmul.bf16.gmra.mxu1 %v3849_v4  ;;  %711 = vmatmul.bf16.gmra.mxu2 %v3851_v60  ;;  %v1120_v48 = vld [vmem:[#allocation2 + $0x68] sm:$0xff]  ;;  %v1149_v61 = vpack.c.bf16 %v1122_v57, %v1121_v56 }
  0x4c   : > { %465 = vst [vmem:[#allocation2 + $0x111] sm:$0xff] %v393_v5  ;;  %731 = vmatmul.bf16.gmra.mxu3 %v586_v63  ;;  %1929 = vmatpush.bf16.msra.mxu2 %v3262_v9  ;;  %v1148_v52 = vpack.c.bf16 %v1120_v48, %v1119_v47  ;;  %v3267_v63 = vld [vmem:[%s4287_s1 + $0x1e0] sm:$0xff]  ;;  %v1124_v9 = vld [vmem:[#allocation2 + $0x98] sm:$0xff] }
  0x4d   : > { %671 = vmatmul.bf16.gmra.mxu0 %v3854_v0  ;;  %472 = vst [vmem:[#allocation2 + $0x169] sm:$0xff] %v400_v1  ;;  %2163 = vmatpush.bf16.msra.mxu3 %v3270_v10  ;;  %v889_v1 = vld [vmem:[#allocation2 + $0x7a] sm:$0xff] }
  0x4e   : > { %473 = vst [vmem:[#allocation2 + $0x171] sm:$0xff] %v401_v7  ;;  %1694 = vmatpush.bf16.msra.mxu1 %v3254_v11  ;;  %2397 = vmatpush.bf16.msra.mxu0 %v3278_v13  ;;  %v1115_v31 = vld [vmem:[#allocation2 + $0x30] sm:$0xff]  ;;  %v890_v7 = vld [vmem:[#allocation2 + $0x82] sm:$0xff] }
  0x4f   : > { %448 = vst [vmem:[#allocation2 + $0x49] sm:$0xff] %v376_v8  ;;  %v1116_v32 = vld [vmem:[#allocation2 + $0x38] sm:$0xff]  ;;  %v1123_v8 = vld [vmem:[#allocation2 + $0x90] sm:$0xff] }
  0x50   : > { %449 = vst [vmem:[#allocation2 + $0x51] sm:$0xff] %v377_v12  ;;  %1930 = vmatpush.bf16.msra.mxu2 %v3261_v20  ;;  %v3894_v21 = vpack.c.bf16 %v1116_v32, %v1115_v31  ;;  %v883_v34 = vld [vmem:[#allocation2 + $0x32] sm:$0xff]  ;;  %v884_v35 = vld [vmem:[#allocation2 + $0x3a] sm:$0xff]  ;;  %v3951_v12 = vpack.c.bf16 %v890_v7, %v889_v1  ;;  %v896_v1 = vld [vmem:[#allocation2 + $0xca] sm:$0xff] }
  0x51   : > { %2164 = vmatpush.bf16.msra.mxu3 %v3269_v27  ;;  %v3899_v38 = vpack.c.bf16 %v884_v35, %v883_v34  ;;  %v1126_v20 = vld [vmem:[#allocation2 + $0xb0] sm:$0xff]  ;;  %v3258_v31 = vld [vmem:[%s4287_s1 + $0x198] sm:$0xff] }
  0x52   : > { %1695 = vmatpush.bf16.msra.mxu1 %v3253_v28  ;;  %2398 = vmatpush.bf16.msra.mxu0 %v3277_v29  ;;  %v3266_v32 = vld [vmem:[%s4287_s1 + $0x1d8] sm:$0xff] }
  0x53   : > { %v1129_v7 = vld [vmem:[#allocation2 + $0xd8] sm:$0xff] }
  0x54   : > { %1931 = vmatpush.bf16.msra.mxu2 %v3260_v40  ;;  %v893_v40 = vld [vmem:[#allocation2 + $0xaa] sm:$0xff] }
  0x55   : > { %2165 = vmatpush.bf16.msra.mxu3 %v3268_v41  ;;  %v894_v41 = vld [vmem:[#allocation2 + $0xb2] sm:$0xff] }
  0x56   : > { %v1117_v36 = vld [vmem:[#allocation2 + $0x48] sm:$0xff]  ;;  %1696 = vmatpush.bf16.msra.mxu1 %v3252_v42  ;;  %2399 = vmatpush.bf16.msra.mxu0 %v3276_v43  ;;  %v1127_v42 = vld [vmem:[#allocation2 + $0xc0] sm:$0xff] }
  0x57   : > { %v1118_v37 = vld [vmem:[#allocation2 + $0x50] sm:$0xff]  ;;  %v1128_v43 = vld [vmem:[#allocation2 + $0xc8] sm:$0xff] }
  0x58   : > { %v1147_v39 = vpack.c.bf16 %v1118_v37, %v1117_v36  ;;  %v885_v45 = vld [vmem:[#allocation2 + $0x4a] sm:$0xff]  ;;  %v886_v46 = vld [vmem:[#allocation2 + $0x52] sm:$0xff]  ;;  %v1152_v54 = vpack.c.bf16 %v1128_v43, %v1127_v42 }
  0x59   : > { %v3915_v51 = vpack.c.bf16 %v886_v46, %v885_v45  ;;  %2166 = vmatpush.bf16.msra.mxu3 %v3267_v63  ;;  %v1361_v45 = vld [vmem:[#allocation2 + $0xc1] sm:$0xff]  ;;  %v1362_v46 = vld [vmem:[#allocation2 + $0xc9] sm:$0xff] }
  0x5a   : > { %1697 = vmatpush.bf16.msra.mxu1 %v3251_v3  ;;  %2400 = vmatpush.bf16.msra.mxu0 %v3275_v6  ;;  %v1386_v56 = vpack.c.bf16 %v1362_v46, %v1361_v45  ;;  %v895_v6 = vld [vmem:[#allocation2 + $0xc2] sm:$0xff]  ;;  %v3273_v45 = vld [vmem:[%s4287_s1 + $0x210] sm:$0xff] }
  0x5b   : > { %696 = vmatmul.bf16.gmra.mxu1 %v3873_v14  ;;  %716 = vmatmul.bf16.gmra.mxu2 %v3875_v15 }
  0x5c   : > { %736 = vmatmul.bf16.gmra.mxu3 %v587_v16  ;;  %v1150_v16 = vpack.c.bf16 %v1124_v9, %v1123_v8  ;;  %v1130_v8 = vld [vmem:[#allocation2 + $0xe0] sm:$0xff] }
  0x5d   : > { %676 = vmatmul.bf16.gmra.mxu0 %v575_v17  ;;  %2167 = vmatpush.bf16.msra.mxu3 %v3266_v32  ;;  %v3265_v32 = vld [vmem:[%s4287_s1 + $0x1d0] sm:$0xff] }
  0x61   : > { %2168 = vmatpush.bf16.msra.mxu3 %v3265_v32 }
  0x6b   : > { %798 = vmatmul.bf16.vlgmr.msrb.gmra.mxu1 %v3500_v26  ;;  %1000 = vmatmul.bf16.vlgmr.msrb.gmra.mxu2 %v911_v24  ;;  %v891_v24 = vld [vmem:[#allocation2 + $0x92] sm:$0xff]  ;;  %v1125_v26 = vld [vmem:[#allocation2 + $0xa8] sm:$0xff] }
  0x6c   : > { %1234 = vmatmul.bf16.vlgmr.msrb.gmra.mxu3 %v1145_v25 }
  0x6d   : > { %1468 = vmatmul.bf16.vlgmr.msrb.gmra.mxu0 %v3750_v55  ;;  %v881_v55 = vld [vmem:[#allocation2 + $0x1a] sm:$0xff] }
  0x6e   : > { %v3892_v33 = vpack.c.bf16 %v882_v30, %v881_v55 }
  0x7b   : > { %803 = vmatmul.bf16.gmra.mxu1 %v1145_v25  ;;  %1005 = vmatmul.bf16.gmra.mxu2 %v3892_v33  ;;  %v892_v25 = vld [vmem:[#allocation2 + $0x9a] sm:$0xff] }
  0x7c   : > { %1239 = vmatmul.bf16.gmra.mxu3 %v3894_v21  ;;  %v3971_v29 = vpack.c.bf16 %v892_v25, %v891_v24  ;;  %v4022_v24 = vpack.c.bf16 %v896_v1, %v895_v6  ;;  %v1131_v6 = vld [vmem:[#allocation2 + $0xf0] sm:$0xff]  ;;  %v1132_v1 = vld [vmem:[#allocation2 + $0xf8] sm:$0xff] }
  0x7d   : > { %1473 = vmatmul.bf16.gmra.mxu0 %v3854_v0 }
  0x8b   : > { %808 = vmatmul.bf16.gmra.mxu1 %v3894_v21  ;;  %1010 = vmatmul.bf16.gmra.mxu2 %v3899_v38 }
  0x8c   : > { %1244 = vmatmul.bf16.gmra.mxu3 %v1147_v39 }
  0x8d   : > { %1478 = vmatmul.bf16.gmra.mxu0 %v575_v17 }
  0x9b   : > { %813 = vmatmul.bf16.gmra.mxu1 %v1147_v39  ;;  %1015 = vmatmul.bf16.gmra.mxu2 %v3915_v51  ;;  %v3274_v39 = vld [vmem:[%s4287_s1 + $0x218] sm:$0xff] }
  0x9c   : > { %1249 = vmatmul.bf16.gmra.mxu3 %v1148_v52  ;;  %2401 = vmatpush.bf16.msra.mxu0 %v3274_v39 }
  0x9d   : > { %1483 = vmatmul.bf16.gmra.mxu0 %v3625_v44  ;;  %v3259_v44 = vld [vmem:[%s4287_s1 + $0x1a0] sm:$0xff] }
  0x9e   : > { %1932 = vmatpush.bf16.msra.mxu2 %v3259_v44 }
  0xa0   : > { %2402 = vmatpush.bf16.msra.mxu0 %v3273_v45 }
  0xa2   : > { %1933 = vmatpush.bf16.msra.mxu2 %v3258_v31  ;;  %v3257_v31 = vld [vmem:[%s4287_s1 + $0x190] sm:$0xff] }
  0xa6   : > { %1934 = vmatpush.bf16.msra.mxu2 %v3257_v31  ;;  %v4044_v31 = vpack.c.bf16 %v1132_v1, %v1131_v6  ;;  %v1133_v6 = vld [vmem:[#allocation2 + $0x108] sm:$0xff]  ;;  %v1134_v1 = vld [vmem:[#allocation2 + $0x110] sm:$0xff] }
  0xa8   : > { %v3921_v59 = vpop.f32.mrf.mxu1 }
  0xaa   : > { %v3923_v62 = vpop.f32.mrf.mxu0 }
  0xab   : > { %818 = vmatmul.bf16.gmra.mxu1 %v1148_v52  ;;  %1020 = vmatmul.bf16.gmra.mxu2 %v3919_v58  ;;  %v4003_v52 = vpack.c.bf16 %v894_v41, %v893_v40 }
  0xac   : > { %1254 = vmatmul.bf16.gmra.mxu3 %v1149_v61 }
  0xad   : > { %1488 = vmatmul.bf16.gmra.mxu0 %v3740_v49 }
  0xae   : > { %v3933_v0 = vpop.f32.mrf.mxu2 }
  0xaf   : > { %v3935_v2 = vpop.f32.mrf.mxu3 }
  0xb0   : > { %v3940_v5 = vpop.f32.mrf.mxu1 }
  0xb2   : > { %v3942_v49 = vpop.f32.mrf.mxu0 }
  0xb6   : > { %v3947_v10 = vpop.f32.mrf.mxu2 }
  0xb7   : > { %v3949_v11 = vpop.f32.mrf.mxu3 }
  0xb8   : > { %v3953_v13 = vpop.f32.mrf.mxu1 }
  0xba   : > { %v3955_v17 = vpop.f32.mrf.mxu0 }
  0xbb   : > { %823 = vmatmul.bf16.gmra.mxu1 %v1149_v61  ;;  %1025 = vmatmul.bf16.gmra.mxu2 %v3951_v12 }
  0xbc   : > { %1259 = vmatmul.bf16.gmra.mxu3 %v1150_v16 }
  0xbd   : > { %1493 = vmatmul.bf16.gmra.mxu0 %v3849_v4  ;;  %v1151_v4 = vpack.c.bf16 %v1126_v20, %v1125_v26  ;;  %v1153_v26 = vpack.c.bf16 %v1130_v8, %v1129_v7 }
  0xbe   : > { %v3959_v18 = vpop.f32.mrf.mxu2 }
  0xbf   : > { %v3961_v19 = vpop.f32.mrf.mxu3 }
  0xc0   : > { %v3963_v22 = vpop.f32.mrf.mxu1 }
  0xc2   : > { %v3965_v23 = vpop.f32.mrf.mxu0 }
  0xc6   : > { %v3967_v27 = vpop.f32.mrf.mxu2 }
  0xc7   : > { %v3969_v28 = vpop.f32.mrf.mxu3 }
  0xc8   : > { %v3973_v55 = vpop.f32.mrf.mxu1 }
  0xca   : > { %v3975_v30 = vpop.f32.mrf.mxu0 }
  0xcb   : > { %828 = vmatmul.bf16.gmra.mxu1 %v1150_v16  ;;  %1030 = vmatmul.bf16.gmra.mxu2 %v3971_v29 }
  0xcc   : > { %1264 = vmatmul.bf16.gmra.mxu3 %v1151_v4 }
  0xcd   : > { %1498 = vmatmul.bf16.gmra.mxu0 %v3873_v14  ;;  %v3250_v14 = vld [vmem:[%s4287_s1 + $0x158] sm:$0xff] }
  0xce   : > { %v3985_v34 = vpop.f32.mrf.mxu2  ;;  %1698 = vmatpush.bf16.msra.mxu1 %v3250_v14 }
  0xcf   : > { %v3987_v35 = vpop.f32.mrf.mxu3 }
  0xd0   : > { %v3989_v36 = vpop.f32.mrf.mxu1 }
  0xd2   : > { %v3991_v37 = vpop.f32.mrf.mxu0 }
  0xd6   : > { %v3999_v47 = vpop.f32.mrf.mxu2 }
  0xd7   : > { %v4001_v48 = vpop.f32.mrf.mxu3 }
  0xd8   : > { %v4005_v53 = vpop.f32.mrf.mxu1 }
  0xda   : > { %v4007_v57 = vpop.f32.mrf.mxu0 }
  0xdb   : > { %833 = vmatmul.bf16.gmra.mxu1 %v1151_v4  ;;  %1035 = vmatmul.bf16.gmra.mxu2 %v4003_v52 }
  0xdc   : > { %1269 = vmatmul.bf16.gmra.mxu3 %v1152_v54 }
  0xdd   : > { %1503 = vmatmul.bf16.gmra.mxu0 %v1386_v56  ;;  %v898_v56 = vld [vmem:[#allocation2 + $0xe2] sm:$0xff] }
  0xde   : > { %v4010_v61 = vpop.f32.mrf.mxu2 }
  0xdf   : > { %v4012_v44 = vpop.f32.mrf.mxu3 }
  0xe0   : > { %v4014_v63 = vpop.f32.mrf.mxu1 }
  0xe2   : > { %v4016_v3 = vpop.f32.mrf.mxu0 }
  0xe6   : > { %v4018_v9 = vpop.f32.mrf.mxu2 }
  0xe7   : > { %v4020_v16 = vpop.f32.mrf.mxu3 }
  0xe8   : > { %v799_v25 = vpop.f32.mrf.mxu1 }
  0xe9   : > { %v800_v20 = vadd.f32 %v799_v25, %v3923_v62 }
  0xea   : > { %v1469_v4 = vpop.f32.mrf.mxu0 }
  0xeb   : > { %838 = vmatmul.bf16.gmra.mxu1 %v1152_v54  ;;  %1040 = vmatmul.bf16.gmra.mxu2 %v4022_v24  ;;  %v897_v54 = vld [vmem:[#allocation2 + $0xda] sm:$0xff] }
  0xec   : > { %1274 = vmatmul.bf16.gmra.mxu3 %v1153_v26  ;;  %v4042_v25 = vpack.c.bf16 %v898_v56, %v897_v54 }
  0xed   : > { %1508 = vmatmul.bf16.gmra.mxu0 %v3742_v50  ;;  %v3249_v50 = vld [vmem:[%s4287_s1 + $0x150] sm:$0xff] }
  0xee   : > { %v1001_v14 = vpop.f32.mrf.mxu2  ;;  %1699 = vmatpush.bf16.msra.mxu1 %v3249_v50 }
  0xef   : > { %v1081_v39 = vadd.f32 %v1001_v14, %v800_v20  ;;  %v1235_v62 = vpop.f32.mrf.mxu3 }
  0xf0   : > { %v801_v40 = vpop.f32.mrf.mxu1 }
  0xf1   : > { %v1315_v41 = vadd.f32 %v1235_v62, %v1081_v39  ;;  %v802_v42 = vadd.f32 %v801_v40, %v3942_v49 }
  0xf2   : > { %v1471_v43 = vpop.f32.mrf.mxu0 }
  0xf3   : > { %v4040_v46 = vadd.f32 %v1469_v4, %v1315_v41 }
  0xf6   : > { %v1003_v7 = vpop.f32.mrf.mxu2 }
  0xf7   : > { %v1082_v8 = vadd.f32 %v1003_v7, %v802_v42  ;;  %v1237_v49 = vpop.f32.mrf.mxu3 }
  0xf8   : > { %v804_v20 = vpop.f32.mrf.mxu1 }
  0xf9   : > { %v1316_v32 = vadd.f32 %v1237_v49, %v1082_v8  ;;  %v805_v14 = vadd.f32 %v804_v20, %v3955_v17  ;;  %v899_v17 = vld [vmem:[#allocation2 + $0xf2] sm:$0xff]  ;;  %v1155_v20 = vpack.c.bf16 %v1134_v1, %v1133_v6  ;;  %v901_v1 = vld [vmem:[#allocation2 + $0x10a] sm:$0xff] }
  0xfa   : > { %v1474_v39 = vpop.f32.mrf.mxu0 }
  0xfb   : > { %843 = vmatmul.bf16.gmra.mxu1 %v1153_v26  ;;  %1045 = vmatmul.bf16.gmra.mxu2 %v4042_v25  ;;  %v4048_v4 = vadd.f32 %v1471_v43, %v1316_v32  ;;  %v900_v26 = vld [vmem:[#allocation2 + $0xfa] sm:$0xff] }
  0xfc   : > { %1279 = vmatmul.bf16.gmra.mxu3 %v4044_v31  ;;  %v4055_v49 = vpack.c.bf16 %v900_v26, %v899_v17  ;;  %v3272_v26 = vld [vmem:[%s4287_s1 + $0x208] sm:$0xff] }
  0xfd   : > { %1513 = vmatmul.bf16.gmra.mxu0 %v3851_v60 }
  0xfe   : > { %v1006_v62 = vpop.f32.mrf.mxu2  ;;  %2403 = vmatpush.bf16.msra.mxu0 %v3272_v26 }
  0xff   : > { %v1083_v40 = vadd.f32 %v1006_v62, %v805_v14  ;;  %v1240_v41 = vpop.f32.mrf.mxu3 }
 0x100   : > { %v806_v42 = vpop.f32.mrf.mxu1 }
 0x101   : > { %v1317_v50 = vadd.f32 %v1240_v41, %v1083_v40  ;;  %v807_v45 = vadd.f32 %v806_v42, %v3965_v23  ;;  %v3264_v40 = vld [vmem:[%s4287_s1 + $0x1c8] sm:$0xff] }
 0x102   : > { %v1476_v54 = vpop.f32.mrf.mxu0  ;;  %2169 = vmatpush.bf16.msra.mxu3 %v3264_v40 }
 0x103   : > { %v4053_v56 = vadd.f32 %v1474_v39, %v1317_v50  ;;  %v3256_v39 = vld [vmem:[%s4287_s1 + $0x188] sm:$0xff] }
 0x104   : > { %1935 = vmatpush.bf16.msra.mxu2 %v3256_v39 }
 0x106   : > { %v1008_v43 = vpop.f32.mrf.mxu2 }
 0x107   : > { %v1084_v7 = vadd.f32 %v1008_v43, %v807_v45  ;;  %v1242_v8 = vpop.f32.mrf.mxu3  ;;  %v902_v43 = vld [vmem:[#allocation2 + $0x112] sm:$0xff] }
 0x108   : > { %v809_v60 = vpop.f32.mrf.mxu1  ;;  %v4078_v40 = vpack.c.bf16 %v902_v43, %v901_v1 }
 0x109   : > { %v1318_v32 = vadd.f32 %v1242_v8, %v1084_v7  ;;  %v810_v14 = vadd.f32 %v809_v60, %v3975_v30  ;;  %v1135_v7 = vld [vmem:[#allocation2 + $0x120] sm:$0xff]  ;;  %v1136_v8 = vld [vmem:[#allocation2 + $0x128] sm:$0xff] }
 0x10a   : > { %v1479_v62 = vpop.f32.mrf.mxu0  ;;  %v1369_v60 = vld [vmem:[#allocation2 + $0x121] sm:$0xff] }
 0x10b   : > { %848 = vmatmul.bf16.gmra.mxu1 %v4044_v31  ;;  %1050 = vmatmul.bf16.gmra.mxu2 %v4055_v49  ;;  %v4060_v23 = vadd.f32 %v1476_v54, %v1318_v32  ;;  %v1370_v32 = vld [vmem:[#allocation2 + $0x129] sm:$0xff] }
 0x10c   : > { %1284 = vmatmul.bf16.gmra.mxu3 %v1155_v20 }
 0x10d   : > { %1518 = vmatmul.bf16.gmra.mxu0 %v3875_v15  ;;  %v3248_v15 = vld [vmem:[%s4287_s1 + $0x148] sm:$0xff] }
 0x10e   : > { %v1011_v41 = vpop.f32.mrf.mxu2  ;;  %1700 = vmatpush.bf16.msra.mxu1 %v3248_v15 }
 0x10f   : > { %v1085_v30 = vadd.f32 %v1011_v41, %v810_v14  ;;  %v1245_v42 = vpop.f32.mrf.mxu3 }
 0x110   : > { %v811_v50 = vpop.f32.mrf.mxu1 }
 0x111   : > { %v1319_v45 = vadd.f32 %v1245_v42, %v1085_v30  ;;  %v812_v54 = vadd.f32 %v811_v50, %v3991_v37  ;;  %v1156_v30 = vpack.c.bf16 %v1136_v8, %v1135_v7  ;;  %v1390_v42 = vpack.c.bf16 %v1370_v32, %v1369_v60  ;;  %v904_v60 = vld [vmem:[#allocation2 + $0x12a] sm:$0xff]  ;;  %v1138_v32 = vld [vmem:[#allocation2 + $0x140] sm:$0xff] }
 0x112   : > { %v1481_v17 = vpop.f32.mrf.mxu0 }
 0x113   : > { %v4076_v6 = vadd.f32 %v1479_v62, %v1319_v45 }
 0x115   : > { %4295 = vst [vmem:[#allocation3_spill] sm:$0xff] %v4076_v6 }
 0x116   : > { %v1013_v37 = vpop.f32.mrf.mxu2 }
 0x117   : > { %v1086_v14 = vadd.f32 %v1013_v37, %v812_v54  ;;  %v1247_v39 = vpop.f32.mrf.mxu3 }
 0x118   : > { %v814_v41 = vpop.f32.mrf.mxu1 }
 0x119   : > { %v1320_v50 = vadd.f32 %v1247_v39, %v1086_v14  ;;  %v815_v15 = vadd.f32 %v814_v41, %v4007_v57  ;;  %v903_v57 = vld [vmem:[#allocation2 + $0x122] sm:$0xff]  ;;  %v1371_v14 = vld [vmem:[#allocation2 + $0x139] sm:$0xff] }
 0x11a   : > { %v1484_v26 = vpop.f32.mrf.mxu0 }
 0x11b   : > { %853 = vmatmul.bf16.gmra.mxu1 %v1155_v20  ;;  %1055 = vmatmul.bf16.gmra.mxu2 %v4078_v40  ;;  %v4082_v62 = vadd.f32 %v1481_v17, %v1320_v50  ;;  %v1137_v20 = vld [vmem:[#allocation2 + $0x138] sm:$0xff]  ;;  %v1372_v17 = vld [vmem:[#allocation2 + $0x141] sm:$0xff]  ;;  %v4087_v50 = vpack.c.bf16 %v904_v60, %v903_v57 }
 0x11c   : > { %1289 = vmatmul.bf16.gmra.mxu3 %v1156_v30  ;;  %v3263_v57 = vld [vmem:[%s4287_s1 + $0x1c0] sm:$0xff] }
 0x11d   : > { %4296 = vst [vmem:[#allocation4_spill] sm:$0xff] %v4082_v62  ;;  %1523 = vmatmul.bf16.gmra.mxu0 %v1390_v42  ;;  %2170 = vmatpush.bf16.msra.mxu3 %v3263_v57  ;;  %v905_v57 = vld [vmem:[#allocation2 + $0x13a] sm:$0xff] }
 0x11e   : > { %v1016_v45 = vpop.f32.mrf.mxu2  ;;  %4298 = vst [vmem:[#allocation6_spill] sm:$0xff] %v4087_v50 }
 0x11f   : > { %v1087_v6 = vadd.f32 %v1016_v45, %v815_v15  ;;  %v1250_v54 = vpop.f32.mrf.mxu3  ;;  %v1157_v45 = vpack.c.bf16 %v1138_v32, %v1137_v20 }
 0x120   : > { %v816_v37 = vpop.f32.mrf.mxu1 }
 0x121   : > { %v1321_v1 = vadd.f32 %v1250_v54, %v1087_v6  ;;  %v817_v43 = vadd.f32 %v816_v37, %v4016_v3  ;;  %v1391_v6 = vpack.c.bf16 %v1372_v17, %v1371_v14  ;;  %v3437_v37 = vld [vmem:[%s3559_s29 + $0x78] sm:$0xff]  }
 0x122   : > { %v1486_v7 = vpop.f32.mrf.mxu0 }
 0x123   : > { %v4085_v8 = vadd.f32 %v1484_v26, %v1321_v1  ;;  %v3341_v26 = vunpack.c.l.bf16 %v3437_v37  ;;  %v3342_v1 = vunpack.c.h.bf16 %v3437_v37  ;;  %v3271_v37 = vld [vmem:[%s4287_s1 + $0x200] sm:$0xff] }
 0x124   : > { %2404 = vmatpush.bf16.msra.mxu0 %v3271_v37 }
 0x125   : > { %4297 = vst [vmem:[#allocation5_spill] sm:$0xff] %v4085_v8 }
 0x126   : > { %v1018_v39 = vpop.f32.mrf.mxu2 }
 0x127   : > { %v1088_v41 = vadd.f32 %v1018_v39, %v817_v43  ;;  %v1252_v42 = vpop.f32.mrf.mxu3  ;;  %v3255_v43 = vld [vmem:[%s4287_s1 + $0x180] sm:$0xff] }
 0x128   : > { %v819_v15 = vpop.f32.mrf.mxu1  ;;  %1936 = vmatpush.bf16.msra.mxu2 %v3255_v43  ;;  %v3489_v39 = vld [vmem:[%s4289_s3] ss:$0 sm:$0xff] }
 0x129   : > { %v1322_v54 = vadd.f32 %v1252_v42, %v1088_v41  ;;  %v820_v60 = vadd.f32 %v819_v15, %v3921_v59 }
 0x12a   : > { %v1489_v3 = vpop.f32.mrf.mxu0 }
 0x12b   : > { %858 = vmatmul.bf16.gmra.mxu1 %v1156_v30  ;;  %1060 = vmatmul.bf16.gmra.mxu2 %v4087_v50  ;;  %v4091_v8 = vadd.f32 %v1486_v7, %v1322_v54  ;;  %v3488_v30 = vld [vmem:[%s4288_s2] ss:$0 sm:$0xff] }
 0x12c   : > { %1294 = vmatmul.bf16.gmra.mxu3 %v1157_v45  ;;  %v334_v20 = vmul.f32 %v3488_v30, %v3341_v26  ;;  %v335_v32 = vmul.f32 %v3488_v30, %v3342_v1  ;;  %v3247_v54 = vld [vmem:[%s4287_s1 + $0x140] sm:$0xff]  ;;  %v1139_v30 = vld [vmem:[#allocation2 + $0x150] sm:$0xff] }
 0x12d   : > { %4299 = vst [vmem:[#allocation7_spill] sm:$0xff] %v4091_v8  ;;  %1528 = vmatmul.bf16.gmra.mxu0 %v1391_v6  ;;  %1701 = vmatpush.bf16.msra.mxu1 %v3247_v54 }
 0x12e   : > { %v1021_v7 = vpop.f32.mrf.mxu2  ;;  %v4106_v41 = vadd.f32 %v3489_v39, %v334_v20  ;;  %v4108_v42 = vadd.f32 %v3489_v39, %v335_v32  ;;  %v1140_v32 = vld [vmem:[#allocation2 + $0x158] sm:$0xff] }
 0x12f   : > { %v1089_v14 = vadd.f32 %v1021_v7, %v820_v60  ;;  %v1255_v17 = vpop.f32.mrf.mxu3  ;;  %v906_v60 = vld [vmem:[#allocation2 + $0x142] sm:$0xff]  ;;  %v1373_v7 = vld [vmem:[#allocation2 + $0x151] sm:$0xff] }
 0x130   : > { %v821_v59 = vpop.f32.mrf.mxu1  ;;  %v4292_v26 = vmax.f32 %v4106_v41, 0.0  ;;  %v4293_v1 = vmax.f32 %v4108_v42, 0.0  ;;  %v4125_v37 = vpack.c.bf16 %v906_v60, %v905_v57 }
 0x131   : > { %v1323_v15 = vadd.f32 %v1255_v17, %v1089_v14  ;;  %v822_v20 = vadd.f32 %v821_v59, %v3940_v5  ;;  %v1374_v14 = vld [vmem:[#allocation2 + $0x159] sm:$0xff] }
 0x132   : > { %v1491_v6 = vpop.f32.mrf.mxu0  ;;  %474 = vst [vmem:[#allocation2 + $0x181] sm:$0xff] %v4292_v26  ;;  %v1158_v26 = vpack.c.bf16 %v1140_v32, %v1139_v30  ;;  %v907_v30 = vld [vmem:[#allocation2 + $0x152] sm:$0xff]  ;;  %v908_v32 = vld [vmem:[#allocation2 + $0x15a] sm:$0xff] }
 0x133   : > { %v4120_v43 = vadd.f32 %v1489_v3, %v1323_v15  ;;  %475 = vst [vmem:[#allocation2 + $0x189] sm:$0xff] %v4293_v1  ;;  %v1392_v3 = vpack.c.bf16 %v1374_v14, %v1373_v7  ;;  %v1141_v7 = vld [vmem:[#allocation2 + $0x168] sm:$0xff]  ;;  %v1142_v14 = vld [vmem:[#allocation2 + $0x170] sm:$0xff] }
 0x135   : > { %4300 = vst [vmem:[#allocation8_spill] sm:$0xff] %v4120_v43 }
 0x136   : > { %v1023_v17 = vpop.f32.mrf.mxu2 }
 0x137   : > { %v1090_v39 = vadd.f32 %v1023_v17, %v822_v20  ;;  %v1257_v54 = vpop.f32.mrf.mxu3 }
 0x138   : > { %v824_v8 = vpop.f32.mrf.mxu1 }
 0x139   : > { %v1324_v15 = vadd.f32 %v1257_v54, %v1090_v39  ;;  %v825_v5 = vadd.f32 %v824_v8, %v3953_v13  ;;  %v1376_v39 = vld [vmem:[#allocation2 + $0x171] sm:$0xff]  ;;  %v4134_v13 = vpack.c.bf16 %v908_v32, %v907_v30 }
 0x13a   : > { %v1494_v43 = vpop.f32.mrf.mxu0 }
 0x13b   : > { %863 = vmatmul.bf16.gmra.mxu1 %v1157_v45  ;;  %1065 = vmatmul.bf16.gmra.mxu2 %v4125_v37  ;;  %v4128_v62 = vadd.f32 %v1491_v6, %v1324_v15  ;;  %v1375_v6 = vld [vmem:[#allocation2 + $0x169] sm:$0xff] }
 0x13c   : > { %1299 = vmatmul.bf16.gmra.mxu3 %v1158_v26 }
 0x13d   : > { %1533 = vmatmul.bf16.gmra.mxu0 %v1392_v3 }
 0x13e   : > { %v1026_v59 = vpop.f32.mrf.mxu2 }
 0x13f   : > { %v1091_v1 = vadd.f32 %v1026_v59, %v825_v5  ;;  %v1260_v20 = vpop.f32.mrf.mxu3  ;;  %v1159_v5 = vpack.c.bf16 %v1142_v14, %v1141_v7  ;;  %v1393_v59 = vpack.c.bf16 %v1376_v39, %v1375_v6  ;;  %v909_v7 = vld [vmem:[#allocation2 + $0x16a] sm:$0xff]  ;;  %v910_v14 = vld [vmem:[#allocation2 + $0x172] sm:$0xff]  ;;  %v1143_v6 = vld [vmem:[#allocation2 + $0x180] sm:$0xff] }
 0x140   : > { %v826_v17 = vpop.f32.mrf.mxu1  ;;  %v1144_v39 = vld [vmem:[#allocation2 + $0x188] sm:$0xff] }
 0x141   : > { %v1325_v57 = vadd.f32 %v1260_v20, %v1091_v1  ;;  %v827_v45 = vadd.f32 %v826_v17, %v3963_v22 }
 0x142   : > { %v1496_v60 = vpop.f32.mrf.mxu0 }
 0x143   : > { %v4131_v50 = vadd.f32 %v1494_v43, %v1325_v57 }
 0x145   : > { %4301 = vst [vmem:[#allocation9_spill] sm:$0xff] %v4131_v50 }
 0x146   : > { %v1028_v54 = vpop.f32.mrf.mxu2 }
 0x147   : > { %v1092_v3 = vadd.f32 %v1028_v54, %v827_v45  ;;  %v1262_v15 = vpop.f32.mrf.mxu3 }
 0x148   : > { %v829_v8 = vpop.f32.mrf.mxu1 }
 0x149   : > { %v1326_v1 = vadd.f32 %v1262_v15, %v1092_v3  ;;  %v830_v22 = vadd.f32 %v829_v8, %v3973_v55  ;;  %v1160_v8 = vpack.c.bf16 %v1144_v39, %v1143_v6  ;;  %v2050_v39 = vld [vmem:[#allocation2 + $0x31] sm:$0xff] }
 0x14a   : > { %v1499_v20 = vpop.f32.mrf.mxu0 }
 0x14b   : > { %868 = vmatmul.bf16.gmra.mxu1 %v1158_v26  ;;  %1070 = vmatmul.bf16.gmra.mxu2 %v4134_v13  ;;  %v4137_v43 = vadd.f32 %v1496_v60, %v1326_v1  ;;  %v4302_v1 = vmax.f32 %v4106_v41, 0.0 }
 0x14c   : > { %1304 = vmatmul.bf16.gmra.mxu3 %v1159_v5 }
 0x14d   : > { %1538 = vmatmul.bf16.gmra.mxu0 %v1393_v59  ;;  %v4143_v59 = vpack.c.bf16 %v910_v14, %v909_v7 }
 0x14e   : > { %v1031_v17 = vpop.f32.mrf.mxu2 }
 0x14f   : > { %v1093_v57 = vadd.f32 %v1031_v17, %v830_v22  ;;  %v1265_v45 = vpop.f32.mrf.mxu3  ;;  %v4303_v22 = vmax.f32 %v4108_v42, 0.0 }
 0x150   : > { %v831_v54 = vpop.f32.mrf.mxu1 }
 0x151   : > { %v1327_v30 = vadd.f32 %v1265_v45, %v1093_v57  ;;  %v832_v26 = vadd.f32 %v831_v54, %v3989_v36  ;;  %v1394_v17 = vpack.c.bf16 %v4303_v22, %v4302_v1 }
 0x152   : > { %v1501_v32 = vpop.f32.mrf.mxu0 }
 0x153   : > { %v4140_v50 = vadd.f32 %v1499_v20, %v1327_v30 }
 0x156   : > { %v1033_v60 = vpop.f32.mrf.mxu2 }
 0x157   : > { %v1094_v3 = vadd.f32 %v1033_v60, %v832_v26  ;;  %v1267_v15 = vpop.f32.mrf.mxu3 }
 0x158   : > { %v834_v55 = vpop.f32.mrf.mxu1 }
 0x159   : > { %v1328_v20 = vadd.f32 %v1267_v15, %v1094_v3  ;;  %v835_v45 = vadd.f32 %v834_v55, %v4005_v53 }
 0x15a   : > { %v1504_v57 = vpop.f32.mrf.mxu0 }
 0x15b   : > { %873 = vmatmul.bf16.gmra.mxu1 %v1159_v5  ;;  %1075 = vmatmul.bf16.gmra.mxu2 %v4143_v59  ;;  %v4150_v36 = vadd.f32 %v1501_v32, %v1328_v20  ;;  %v2051_v5 = vld [vmem:[#allocation2 + $0x39] sm:$0xff] }
 0x15c   : > { %1309 = vmatmul.bf16.gmra.mxu3 %v1160_v8  ;;  %v2082_v8 = vpack.c.bf16 %v2051_v5, %v2050_v39 }
 0x15d   : > { %1543 = vmatmul.bf16.gmra.mxu0 %v1394_v17 }
 0x15e   : > { %v1036_v54 = vpop.f32.mrf.mxu2 }
 0x15f   : > { %v1095_v30 = vadd.f32 %v1036_v54, %v835_v45  ;;  %v1270_v7 = vpop.f32.mrf.mxu3 }
 0x160   : > { %v836_v14 = vpop.f32.mrf.mxu1 }
 0x161   : > { %v1329_v26 = vadd.f32 %v1270_v7, %v1095_v30  ;;  %v837_v42 = vadd.f32 %v836_v14, %v4014_v63  ;;  %v1583_v30 = vld [vmem:[#allocation2 + $0x32] sm:$0xff]  ;;  %v1584_v14 = vld [vmem:[#allocation2 + $0x3a] sm:$0xff] }
 0x162   : > { %v1506_v41 = vpop.f32.mrf.mxu0 }
 0x163   : > { %v4153_v6 = vadd.f32 %v1504_v57, %v1329_v26  ;;  %v1819_v26 = vld [vmem:[#allocation2 + $0x50] sm:$0xff] }
 0x166   : > { %v1038_v60 = vpop.f32.mrf.mxu2 }
 0x167   : > { %v1096_v3 = vadd.f32 %v1038_v60, %v837_v42  ;;  %v1272_v32 = vpop.f32.mrf.mxu3  ;;  %v2053_v42 = vld [vmem:[#allocation2 + $0x51] sm:$0xff] }
 0x168   : > { %v839_v15 = vpop.f32.mrf.mxu1 }
 0x169   : > { %v1330_v1 = vadd.f32 %v1272_v32, %v1096_v3  ;;  %v840_v63 = vadd.f32 %v839_v15, %v3933_v0  ;;  %v1614_v0 = vpack.c.bf16 %v1584_v14, %v1583_v30  ;;  %v1586_v14 = vld [vmem:[#allocation2 + $0x52] sm:$0xff] }
 0x16a   : > { %v1509_v22 = vpop.f32.mrf.mxu0 }
 0x16b   : > { %1702 = vmatmul.bf16.vlgmr.msra.gmra.mxu1 %v3892_v33  ;;  %1937 = vmatmul.bf16.vlgmr.msra.gmra.mxu2 %v3894_v21  ;;  %v4158_v53 = vadd.f32 %v1506_v41, %v1330_v1  ;;  %v1818_v33 = vld [vmem:[#allocation2 + $0x48] sm:$0xff] }
 0x16c   : > { %2171 = vmatmul.bf16.vlgmr.msra.gmra.mxu3 %v2082_v8  ;;  %v2052_v41 = vld [vmem:[#allocation2 + $0x49] sm:$0xff]  ;;  %v1849_v60 = vpack.c.bf16 %v1819_v26, %v1818_v33  ;;  %v1820_v33 = vld [vmem:[#allocation2 + $0x60] sm:$0xff] }
 0x16d   : > { %2405 = vmatmul.bf16.vlgmr.msra.gmra.mxu0 %v3899_v38  ;;  %v2083_v32 = vpack.c.bf16 %v2053_v42, %v2052_v41  ;;  %v1821_v26 = vld [vmem:[#allocation2 + $0x68] sm:$0xff] }
 0x16e   : > { %v1041_v55 = vpop.f32.mrf.mxu2  ;;  %v2055_v41 = vld [vmem:[#allocation2 + $0x69] sm:$0xff] }
 0x16f   : > { %v1097_v17 = vadd.f32 %v1041_v55, %v840_v63  ;;  %v1275_v20 = vpop.f32.mrf.mxu3 }
 0x170   : > { %v841_v57 = vpop.f32.mrf.mxu1 }
 0x171   : > { %v1331_v45 = vadd.f32 %v1275_v20, %v1097_v17  ;;  %v842_v21 = vadd.f32 %v841_v57, %v3947_v10 }
 0x172   : > { %v1511_v54 = vpop.f32.mrf.mxu0 }
 0x173   : > { %v4162_v7 = vadd.f32 %v1509_v22, %v1331_v45  ;;  %v1585_v45 = vld [vmem:[#allocation2 + $0x4a] sm:$0xff] }
 0x176   : > { %v1043_v39 = vpop.f32.mrf.mxu2 }
 0x177   : > { %v1098_v38 = vadd.f32 %v1043_v39, %v842_v21  ;;  %v1277_v5 = vpop.f32.mrf.mxu3  ;;  %v2054_v21 = vld [vmem:[#allocation2 + $0x61] sm:$0xff] }
 0x178   : > { %v844_v3 = vpop.f32.mrf.mxu1 }
 0x179   : > { %v1332_v15 = vadd.f32 %v1277_v5, %v1098_v38  ;;  %v845_v10 = vadd.f32 %v844_v3, %v3959_v18  ;;  %v1615_v18 = vpack.c.bf16 %v1586_v14, %v1585_v45  ;;  %v1850_v38 = vpack.c.bf16 %v1821_v26, %v1820_v33  ;;  %v1588_v45 = vld [vmem:[#allocation2 + $0x6a] sm:$0xff]  ;;  %v1822_v14 = vld [vmem:[#allocation2 + $0x78] sm:$0xff]  ;;  %v1823_v33 = vld [vmem:[#allocation2 + $0x80] sm:$0xff] }
 0x17a   : > { %v1514_v8 = vpop.f32.mrf.mxu0  ;;  %v2056_v26 = vld [vmem:[#allocation2 + $0x79] sm:$0xff] }
 0x17b   : > { %1707 = vmatmul.bf16.gmra.mxu1 %v1614_v0  ;;  %1942 = vmatmul.bf16.gmra.mxu2 %v1849_v60  ;;  %v4165_v1 = vadd.f32 %v1511_v54, %v1332_v15  ;;  %v2084_v0 = vpack.c.bf16 %v2055_v41, %v2054_v21 }
 0x17c   : > { %2176 = vmatmul.bf16.gmra.mxu3 %v2083_v32 }
 0x17d   : > { %2410 = vmatmul.bf16.gmra.mxu0 %v3915_v51 }
 0x17e   : > { %v1046_v22 = vpop.f32.mrf.mxu2 }
 0x17f   : > { %v1099_v63 = vadd.f32 %v1046_v22, %v845_v10  ;;  %v1280_v55 = vpop.f32.mrf.mxu3 }
 0x180   : > { %v846_v17 = vpop.f32.mrf.mxu1 }
 0x181   : > { %v1333_v20 = vadd.f32 %v1280_v55, %v1099_v63  ;;  %v847_v54 = vadd.f32 %v846_v17, %v3967_v27  ;;  %v1587_v17 = vld [vmem:[#allocation2 + $0x62] sm:$0xff] }
 0x182   : > { %v1516_v57 = vpop.f32.mrf.mxu0 }
 0x183   : > { %v4169_v30 = vadd.f32 %v1514_v8, %v1333_v20 }
 0x186   : > { %v1048_v42 = vpop.f32.mrf.mxu2 }
 0x187   : > { %v1100_v51 = vadd.f32 %v1048_v42, %v847_v54  ;;  %v1282_v39 = vpop.f32.mrf.mxu3  ;;  %v2057_v54 = vld [vmem:[#allocation2 + $0x81] sm:$0xff]  ;;  %v1851_v42 = vpack.c.bf16 %v1823_v33, %v1822_v14  ;;  %v2058_v14 = vld [vmem:[#allocation2 + $0x91] sm:$0xff]  ;;  %v2059_v33 = vld [vmem:[#allocation2 + $0x99] sm:$0xff] }
 0x188   : > { %v849_v5 = vpop.f32.mrf.mxu1 }
 0x189   : > { %v1334_v60 = vadd.f32 %v1282_v39, %v1100_v51  ;;  %v850_v27 = vadd.f32 %v849_v5, %v3985_v34  ;;  %v1616_v34 = vpack.c.bf16 %v1588_v45, %v1587_v17  ;;  %v2085_v39 = vpack.c.bf16 %v2057_v54, %v2056_v26  ;;  %v1824_v17 = vld [vmem:[#allocation2 + $0x90] sm:$0xff]  ;;  %v1825_v45 = vld [vmem:[#allocation2 + $0x98] sm:$0xff] }
 0x18a   : > { %v1519_v3 = vpop.f32.mrf.mxu0  ;;  %v1852_v54 = vpack.c.bf16 %v1825_v45, %v1824_v17  ;;  %v2061_v17 = vld [vmem:[#allocation2 + $0xb1] sm:$0xff] }
 0x18b   : > { %1712 = vmatmul.bf16.gmra.mxu1 %v1615_v18  ;;  %1947 = vmatmul.bf16.gmra.mxu2 %v1850_v38  ;;  %v4172_v32 = vadd.f32 %v1516_v57, %v1334_v60 }
 0x18c   : > { %2181 = vmatmul.bf16.gmra.mxu3 %v2084_v0 }
 0x18d   : > { %2415 = vmatmul.bf16.gmra.mxu0 %v3919_v58 }
 0x18e   : > { %v1051_v15 = vpop.f32.mrf.mxu2 }
 0x18f   : > { %v1101_v8 = vadd.f32 %v1051_v15, %v850_v27  ;;  %v1285_v10 = vpop.f32.mrf.mxu3 }
 0x190   : > { %v851_v22 = vpop.f32.mrf.mxu1 }
 0x191   : > { %v1335_v63 = vadd.f32 %v1285_v10, %v1101_v8  ;;  %v852_v57 = vadd.f32 %v851_v22, %v3999_v47  ;;  %v1589_v10 = vld [vmem:[#allocation2 + $0x7a] sm:$0xff] }
 0x192   : > { %v1521_v55 = vpop.f32.mrf.mxu0 }
 0x193   : > { %v4176_v20 = vadd.f32 %v1519_v3, %v1335_v63  ;;  %v1590_v63 = vld [vmem:[#allocation2 + $0x82] sm:$0xff] }
 0x196   : > { %v1053_v21 = vpop.f32.mrf.mxu2 }
 0x197   : > { %v1102_v58 = vadd.f32 %v1053_v21, %v852_v57  ;;  %v1287_v41 = vpop.f32.mrf.mxu3 }
 0x198   : > { %v854_v51 = vpop.f32.mrf.mxu1 }
 0x199   : > { %v1336_v18 = vadd.f32 %v1287_v41, %v1102_v58  ;;  %v855_v47 = vadd.f32 %v854_v51, %v4010_v61  ;;  %v1617_v61 = vpack.c.bf16 %v1590_v63, %v1589_v10  ;;  %v2086_v58 = vpack.c.bf16 %v2059_v33, %v2058_v14  ;;  %v1827_v10 = vld [vmem:[#allocation2 + $0xb0] sm:$0xff] }
 0x19a   : > { %v1524_v38 = vpop.f32.mrf.mxu0  ;;  %v2060_v63 = vld [vmem:[#allocation2 + $0xa9] sm:$0xff] }
 0x19b   : > { %1717 = vmatmul.bf16.gmra.mxu1 %v1616_v34  ;;  %1952 = vmatmul.bf16.gmra.mxu2 %v1851_v42  ;;  %v4179_v5 = vadd.f32 %v1521_v55, %v1336_v18 }
 0x19c   : > { %2186 = vmatmul.bf16.gmra.mxu3 %v2085_v39 }
 0x19d   : > { %2420 = vmatmul.bf16.gmra.mxu0 %v3951_v12 }
 0x19e   : > { %v1056_v0 = vpop.f32.mrf.mxu2 }
 0x19f   : > { %v1103_v60 = vadd.f32 %v1056_v0, %v855_v47  ;;  %v1290_v3 = vpop.f32.mrf.mxu3 }
 0x1a0   : > { %v856_v27 = vpop.f32.mrf.mxu1 }
 0x1a1   : > { %v1337_v15 = vadd.f32 %v1290_v3, %v1103_v60  ;;  %v857_v55 = vadd.f32 %v856_v27, %v4018_v9  ;;  %v1591_v60 = vld [vmem:[#allocation2 + $0x92] sm:$0xff]  ;;  %v1592_v27 = vld [vmem:[#allocation2 + $0x9a] sm:$0xff] }
 0x1a2   : > { %v1526_v8 = vpop.f32.mrf.mxu0 }
 0x1a3   : > { %v4183_v22 = vadd.f32 %v1524_v38, %v1337_v15  ;;  %v1826_v15 = vld [vmem:[#allocation2 + $0xa8] sm:$0xff] }
 0x1a4   : > { %v1853_v14 = vpack.c.bf16 %v1827_v10, %v1826_v15 }
 0x1a6   : > { %v1058_v57 = vpop.f32.mrf.mxu2 }
 0x1a7   : > { %v1104_v12 = vadd.f32 %v1058_v57, %v857_v55  ;;  %v1292_v26 = vpop.f32.mrf.mxu3  ;;  %v2087_v57 = vpack.c.bf16 %v2061_v17, %v2060_v63 }
 0x1a8   : > { %v859_v21 = vpop.f32.mrf.mxu1 }
 0x1a9   : > { %v1338_v41 = vadd.f32 %v1292_v26, %v1104_v12  ;;  %v860_v9 = vadd.f32 %v859_v21, %v3935_v2  ;;  %v1618_v2 = vpack.c.bf16 %v1592_v27, %v1591_v60  ;;  %v2062_v60 = vld [vmem:[#allocation2 + $0xc1] sm:$0xff]  ;;  %v2063_v27 = vld [vmem:[#allocation2 + $0xc9] sm:$0xff] }
 0x1aa   : > { %v1529_v34 = vpop.f32.mrf.mxu0  ;;  %v2088_v17 = vpack.c.bf16 %v2063_v27, %v2062_v60 }
 0x1ab   : > { %1722 = vmatmul.bf16.gmra.mxu1 %v1617_v61  ;;  %1957 = vmatmul.bf16.gmra.mxu2 %v1852_v54  ;;  %v4186_v42 = vadd.f32 %v1526_v8, %v1338_v41 }
 0x1ac   : > { %2191 = vmatmul.bf16.gmra.mxu3 %v2086_v58 }
 0x1ad   : > { %2425 = vmatmul.bf16.gmra.mxu0 %v3971_v29 }
 0x1ae   : > { %v1061_v51 = vpop.f32.mrf.mxu2 }
 0x1af   : > { %v1105_v39 = vadd.f32 %v1061_v51, %v860_v9  ;;  %v1295_v18 = vpop.f32.mrf.mxu3  ;;  %v1593_v51 = vld [vmem:[#allocation2 + $0xaa] sm:$0xff] }
 0x1b0   : > { %v861_v38 = vpop.f32.mrf.mxu1 }
 0x1b1   : > { %v1339_v47 = vadd.f32 %v1295_v18, %v1105_v39  ;;  %v862_v8 = vadd.f32 %v861_v38, %v3949_v11  ;;  %v1594_v18 = vld [vmem:[#allocation2 + $0xb2] sm:$0xff]  ;;  %v1828_v38 = vld [vmem:[#allocation2 + $0xc0] sm:$0xff] }
 0x1b2   : > { %v1531_v0 = vpop.f32.mrf.mxu0 }
 0x1b3   : > { %v4190_v3 = vadd.f32 %v1529_v34, %v1339_v47  ;;  %v1829_v47 = vld [vmem:[#allocation2 + $0xc8] sm:$0xff] }
 0x1b6   : > { %v1063_v45 = vpop.f32.mrf.mxu2 }
 0x1b7   : > { %v1106_v29 = vadd.f32 %v1063_v45, %v862_v8  ;;  %v1297_v55 = vpop.f32.mrf.mxu3  ;;  %v1854_v8 = vpack.c.bf16 %v1829_v47, %v1828_v38 }
 0x1b8   : > { %v864_v33 = vpop.f32.mrf.mxu1 }
 0x1b9   : > { %v1340_v12 = vadd.f32 %v1297_v55, %v1106_v29  ;;  %v865_v11 = vadd.f32 %v864_v33, %v3961_v19  ;;  %v1619_v19 = vpack.c.bf16 %v1594_v18, %v1593_v51  ;;  %v2065_v51 = vld [vmem:[#allocation2 + $0xe1] sm:$0xff] }
 0x1ba   : > { %v1534_v26 = vpop.f32.mrf.mxu0 }
 0x1bb   : > { %1727 = vmatmul.bf16.gmra.mxu1 %v1618_v2  ;;  %1962 = vmatmul.bf16.gmra.mxu2 %v1853_v14  ;;  %v4193_v61 = vadd.f32 %v1531_v0, %v1340_v12 }
 0x1bc   : > { %2196 = vmatmul.bf16.gmra.mxu3 %v2087_v57 }
 0x1bd   : > { %2430 = vmatmul.bf16.gmra.mxu0 %v4003_v52 }
 0x1be   : > { %v1066_v54 = vpop.f32.mrf.mxu2 }
 0x1bf   : > { %v1107_v21 = vadd.f32 %v1066_v54, %v865_v11  ;;  %v1300_v58 = vpop.f32.mrf.mxu3  ;;  %v1595_v11 = vld [vmem:[#allocation2 + $0xc2] sm:$0xff] }
 0x1c0   : > { %v866_v41 = vpop.f32.mrf.mxu1 }
 0x1c1   : > { %v1341_v34 = vadd.f32 %v1300_v58, %v1107_v21  ;;  %v867_v0 = vadd.f32 %v866_v41, %v3969_v28  ;;  %v1596_v21 = vld [vmem:[#allocation2 + $0xca] sm:$0xff]  ;;  %v1830_v58 = vld [vmem:[#allocation2 + $0xd8] sm:$0xff]  ;;  %v1831_v41 = vld [vmem:[#allocation2 + $0xe0] sm:$0xff] }
 0x1c2   : > { %v1536_v9 = vpop.f32.mrf.mxu0  ;;  %v1855_v47 = vpack.c.bf16 %v1831_v41, %v1830_v58 }
 0x1c3   : > { %v4197_v39 = vadd.f32 %v1534_v26, %v1341_v34 }
 0x1c6   : > { %v1068_v15 = vpop.f32.mrf.mxu2 }
 0x1c7   : > { %v1108_v52 = vadd.f32 %v1068_v15, %v867_v0  ;;  %v1302_v10 = vpop.f32.mrf.mxu3 }
 0x1c8   : > { %v869_v63 = vpop.f32.mrf.mxu1 }
 0x1c9   : > { %v1342_v45 = vadd.f32 %v1302_v10, %v1108_v52  ;;  %v870_v28 = vadd.f32 %v869_v63, %v3987_v35  ;;  %v1620_v35 = vpack.c.bf16 %v1596_v21, %v1595_v11 }
 0x1ca   : > { %v1539_v29 = vpop.f32.mrf.mxu0 }
 0x1cb   : > { %1732 = vmatmul.bf16.gmra.mxu1 %v1619_v19  ;;  %1967 = vmatmul.bf16.gmra.mxu2 %v1854_v8  ;;  %v4200_v55 = vadd.f32 %v1536_v9, %v1342_v45  ;;  %v2064_v9 = vld [vmem:[#allocation2 + $0xd9] sm:$0xff] }
 0x1cc   : > { %2201 = vmatmul.bf16.gmra.mxu3 %v2088_v17  ;;  %v2089_v60 = vpack.c.bf16 %v2065_v51, %v2064_v9 }
 0x1cd   : > { %2435 = vmatmul.bf16.gmra.mxu0 %v4022_v24 }
 0x1ce   : > { %v1071_v2 = vpop.f32.mrf.mxu2 }
 0x1cf   : > { %v1109_v14 = vadd.f32 %v1071_v2, %v870_v28  ;;  %v1305_v33 = vpop.f32.mrf.mxu3  ;;  %v2066_v2 = vld [vmem:[#allocation2 + $0xf1] sm:$0xff] }
 0x1d0   : > { %v871_v57 = vpop.f32.mrf.mxu1 }
 0x1d1   : > { %v1343_v12 = vadd.f32 %v1305_v33, %v1109_v14  ;;  %v872_v34 = vadd.f32 %v871_v57, %v4001_v48  ;;  %v2067_v14 = vld [vmem:[#allocation2 + $0xf9] sm:$0xff] }
 0x1d2   : > { %v1541_v26 = vpop.f32.mrf.mxu0  ;;  %v2090_v11 = vpack.c.bf16 %v2067_v14, %v2066_v2 }
 0x1d3   : > { %v4204_v54 = vadd.f32 %v1539_v29, %v1343_v12 }
 0x1d6   : > { %v1073_v18 = vpop.f32.mrf.mxu2 }
 0x1d7   : > { %v1110_v24 = vadd.f32 %v1073_v18, %v872_v34  ;;  %v1307_v38 = vpop.f32.mrf.mxu3 }
 0x1d8   : > { %v874_v0 = vpop.f32.mrf.mxu1 }
 0x1d9   : > { %v1344_v27 = vadd.f32 %v1307_v38, %v1110_v24  ;;  %v875_v48 = vadd.f32 %v874_v0, %v4012_v44  ;;  %v1599_v24 = vld [vmem:[#allocation2 + $0xf2] sm:$0xff] }
 0x1da   : > { %v1544_v15 = vpop.f32.mrf.mxu0  ;;  %v1835_v0 = vld [vmem:[#allocation2 + $0x110] sm:$0xff] }
 0x1db   : > { %1737 = vmatmul.bf16.gmra.mxu1 %v1620_v35  ;;  %1972 = vmatmul.bf16.gmra.mxu2 %v1855_v47  ;;  %v4207_v52 = vadd.f32 %v1541_v26, %v1344_v27  ;;  %v1600_v35 = vld [vmem:[#allocation2 + $0xfa] sm:$0xff]  ;;  %v1834_v47 = vld [vmem:[#allocation2 + $0x108] sm:$0xff] }
 0x1dc   : > { %2206 = vmatmul.bf16.gmra.mxu3 %v2089_v60  ;;  %v2069_v60 = vld [vmem:[#allocation2 + $0x111] sm:$0xff] }
 0x1dd   : > { %2440 = vmatmul.bf16.gmra.mxu0 %v4042_v25 }
 0x1de   : > { %v1076_v10 = vpop.f32.mrf.mxu2 }
 0x1df   : > { %v1111_v19 = vadd.f32 %v1076_v10, %v875_v48  ;;  %v1310_v8 = vpop.f32.mrf.mxu3  ;;  %v1622_v48 = vpack.c.bf16 %v1600_v35, %v1599_v24  ;;  %v2070_v35 = vld [vmem:[#allocation2 + $0x121] sm:$0xff] }
 0x1e0   : > { %v876_v63 = vpop.f32.mrf.mxu1 }
 0x1e1   : > { %v1345_v17 = vadd.f32 %v1310_v8, %v1111_v19  ;;  %v877_v28 = vadd.f32 %v876_v63, %v4020_v16 }
 0x1e2   : > { %v1546_v45 = vpop.f32.mrf.mxu0 }
 0x1e3   : > { %v4211_v29 = vadd.f32 %v1544_v15, %v1345_v17 }
 0x1e6   : > { %v1078_v33 = vpop.f32.mrf.mxu2 }
 0x1e7   : > { %v1112_v57 = vadd.f32 %v1078_v33, %v877_v28  ;;  %v1312_v12 = vpop.f32.mrf.mxu3 }
 0x1e8   : > { %v1703_v26 = vpop.f32.mrf.mxu1 }
 0x1e9   : > { %v1346_v21 = vadd.f32 %v1312_v12, %v1112_v57  ;;  %v1783_v16 = vadd.f32 %v1703_v26, %v4040_v46  ;;  %v1857_v46 = vpack.c.bf16 %v1835_v0, %v1834_v47  ;;  %v2071_v47 = vld [vmem:[#allocation2 + $0x129] sm:$0xff] }
 0x1ea   : > { %v2406_v58 = vpop.f32.mrf.mxu0 }
 0x1eb   : > { %1742 = vmatmul.bf16.gmra.mxu1 %v4042_v25  ;;  %1977 = vmatmul.bf16.gmra.mxu2 %v4044_v31  ;;  %v4216_v44 = vadd.f32 %v1546_v45, %v1346_v21  ;;  %v2068_v31 = vld [vmem:[#allocation2 + $0x109] sm:$0xff] }
 0x1ec   : > { %2211 = vmatmul.bf16.gmra.mxu3 %v2090_v11  ;;  %v2091_v8 = vpack.c.bf16 %v2069_v60, %v2068_v31 }
 0x1ed   : > { %2445 = vmatmul.bf16.gmra.mxu0 %v4055_v49 }
 0x1ee   : > { %v1938_v41 = vpop.f32.mrf.mxu2 }
 0x1ef   : > { %v2172_v34 = vpop.f32.mrf.mxu3  ;;  %v2018_v9 = vadd.f32 %v1938_v41, %v1783_v16 }
 0x1f0   : > { %v1705_v51 = vpop.f32.mrf.mxu1 }
 0x1f1   : > { %v2252_v38 = vadd.f32 %v2172_v34, %v2018_v9  ;;  %v1784_v25 = vadd.f32 %v1705_v51, %v4048_v4  ;;  %v1601_v34 = vld [vmem:[#allocation2 + $0x10a] sm:$0xff]  ;;  %v1602_v9 = vld [vmem:[#allocation2 + $0x112] sm:$0xff]  ;;  %v1836_v51 = vld [vmem:[#allocation2 + $0x120] sm:$0xff] }
 0x1f2   : > { %v2408_v18 = vpop.f32.mrf.mxu0  ;;  %v1623_v60 = vpack.c.bf16 %v1602_v9, %v1601_v34 }
 0x1f3   : > { %v2486_v10 = vadd.f32 %v2406_v58, %v2252_v38 }
 0x1f5   : > { %v2619_v28 = vmul.f32 %v2486_v10, %v2486_v10 }
 0x1f6   : > { %v1940_v27 = vpop.f32.mrf.mxu2 }
 0x1f7   : > { %v2019_v15 = vadd.f32 %v1940_v27, %v1784_v25  ;;  %v2174_v49 = vpop.f32.mrf.mxu3 }
 0x1f8   : > { %v1708_v19 = vpop.f32.mrf.mxu1 }
 0x1f9   : > { %v2253_v63 = vadd.f32 %v2174_v49, %v2019_v15  ;;  %v1785_v33 = vadd.f32 %v1708_v19, %v4053_v56  ;;  %v2092_v49 = vpack.c.bf16 %v2071_v47, %v2070_v35  ;;  %v4304_v19 = vld [vmem:[#allocation6_spill] sm:$0xff] }
 0x1fa   : > { %v2411_v17 = vpop.f32.mrf.mxu0 }
 0x1fb   : > { %v2487_v45 = vadd.f32 %v2408_v18, %v2253_v63  ;;  %1747 = vmatmul.bf16.gmra.mxu1 %v1622_v48  ;;  %1982 = vmatmul.bf16.gmra.mxu2 %v1857_v46  ;;  %v1837_v18 = vld [vmem:[#allocation2 + $0x128] sm:$0xff] }
 0x1fc   : > { %2216 = vmatmul.bf16.gmra.mxu3 %v2091_v8  ;;  %v1858_v27 = vpack.c.bf16 %v1837_v18, %v1836_v51  ;;  %v2072_v18 = vld [vmem:[#allocation2 + $0x139] sm:$0xff] }
 0x1fd   : > { %2450 = vmatmul.bf16.gmra.mxu0 %v4078_v40  ;;  %v3346_v4 = vpack.c.bf16 %v2487_v45, %v2486_v10  ;;  %v2582_v2 = vadd.f32 %v2487_v45, %v2486_v10  ;;  %v2620_v14 = vmul.f32 %v2487_v45, %v2487_v45 }
 0x1fe   : > { %v1943_v57 = vpop.f32.mrf.mxu2 }
 0x1ff   : > { %3347 = vst [vmem:[%s4226_s30] sm:$0xff] %v3346_v4   ;;  %v2651_v12 = vadd.f32 %v2620_v14, %v2619_v28  ;;  %v2020_v26 = vadd.f32 %v1943_v57, %v1785_v33  ;;  %v2177_v11 = vpop.f32.mrf.mxu3 }
 0x200   : > { %v1710_v21 = vpop.f32.mrf.mxu1 }
 0x201   : > { %v2254_v58 = vadd.f32 %v2177_v11, %v2020_v26  ;;  %v1786_v38 = vadd.f32 %v1710_v21, %v4060_v23  ;;  %v1603_v11 = vld [vmem:[#allocation2 + $0x122] sm:$0xff]  ;;  %v1604_v21 = vld [vmem:[#allocation2 + $0x12a] sm:$0xff] }
 0x202   : > { %v2413_v16 = vpop.f32.mrf.mxu0 }
 0x203   : > { %v2488_v41 = vadd.f32 %v2411_v17, %v2254_v58  ;;  %v4305_v17 = vld [vmem:[#allocation3_spill] sm:$0xff]  ;;  %v1838_v58 = vld [vmem:[#allocation2 + $0x138] sm:$0xff] }
 0x205   : > { %v2583_v24 = vadd.f32 %v2582_v2, %v2488_v41  ;;  %v2621_v40 = vmul.f32 %v2488_v41, %v2488_v41 }
 0x206   : > { %v1945_v56 = vpop.f32.mrf.mxu2 }
 0x207   : > { %v2652_v0 = vadd.f32 %v2651_v12, %v2621_v40  ;;  %v2021_v25 = vadd.f32 %v1945_v56, %v1786_v38  ;;  %v2179_v31 = vpop.f32.mrf.mxu3  ;;  %v1624_v56 = vpack.c.bf16 %v1604_v21, %v1603_v11 }
 0x208   : > { %v1713_v15 = vpop.f32.mrf.mxu1 }
 0x209   : > { %v2255_v48 = vadd.f32 %v2179_v31, %v2021_v25  ;;  %v1787_v45 = vadd.f32 %v1713_v15, %v4305_v17 }
 0x20a   : > { %v2416_v46 = vpop.f32.mrf.mxu0 }
 0x20b   : > { %v2489_v10 = vadd.f32 %v2413_v16, %v2255_v48  ;;  %1752 = vmatmul.bf16.gmra.mxu1 %v1623_v60  ;;  %1987 = vmatmul.bf16.gmra.mxu2 %v1858_v27  ;;  %v1839_v16 = vld [vmem:[#allocation2 + $0x140] sm:$0xff] }
 0x20c   : > { %2221 = vmatmul.bf16.gmra.mxu3 %v2092_v49 }
 0x20d   : > { %2455 = vmatmul.bf16.gmra.mxu0 %v4304_v19  ;;  %v3351_v23 = vpack.c.bf16 %v2489_v10, %v2488_v41  ;;  %v2584_v8 = vadd.f32 %v2583_v24, %v2489_v10  ;;  %v2622_v63 = vmul.f32 %v2489_v10, %v2489_v10  ;;  %v4306_v41 = vld [vmem:[#allocation4_spill] sm:$0xff]  ;;  %v2073_v24 = vld [vmem:[#allocation2 + $0x141] sm:$0xff] }
 0x20e   : > { %v1948_v28 = vpop.f32.mrf.mxu2  ;;  %v2093_v31 = vpack.c.bf16 %v2073_v24, %v2072_v18  ;;  %v4307_v10 = vld [vmem:[#allocation5_spill] sm:$0xff] }
 0x20f   : > { %3438 = vst [vmem:[%s4226_s30 + $0x8] sm:$0xff] %v3351_v23   ;;  %v2653_v4 = vadd.f32 %v2652_v0, %v2622_v63  ;;  %v2022_v2 = vadd.f32 %v1948_v28, %v1787_v45  ;;  %v2182_v14 = vpop.f32.mrf.mxu3  ;;  %v1859_v0 = vpack.c.bf16 %v1839_v16, %v1838_v58  ;;  %v2074_v58 = vld [vmem:[#allocation2 + $0x151] sm:$0xff]  ;;  %v2075_v16 = vld [vmem:[#allocation2 + $0x159] sm:$0xff] }
 0x210   : > { %v1715_v33 = vpop.f32.mrf.mxu1 }
 0x211   : > { %v2256_v57 = vadd.f32 %v2182_v14, %v2022_v2  ;;  %v1788_v51 = vadd.f32 %v1715_v33, %v4306_v41  ;;  %v1605_v14 = vld [vmem:[#allocation2 + $0x13a] sm:$0xff]  ;;  %v1606_v33 = vld [vmem:[#allocation2 + $0x142] sm:$0xff] }
 0x212   : > { %v2418_v12 = vpop.f32.mrf.mxu0  ;;  %v1625_v18 = vpack.c.bf16 %v1606_v33, %v1605_v14  ;;  %v2076_v14 = vld [vmem:[#allocation2 + $0x169] sm:$0xff]  ;;  %v2077_v33 = vld [vmem:[#allocation2 + $0x171] sm:$0xff] }
 0x213   : > { %v2490_v26 = vadd.f32 %v2416_v46, %v2256_v57  ;;  %v1840_v57 = vld [vmem:[#allocation2 + $0x150] sm:$0xff] }
 0x215   : > { %v2585_v34 = vadd.f32 %v2584_v8, %v2490_v26  ;;  %v2623_v9 = vmul.f32 %v2490_v26, %v2490_v26 }
 0x216   : > { %v1950_v40 = vpop.f32.mrf.mxu2 }
 0x217   : > { %v2654_v38 = vadd.f32 %v2653_v4, %v2623_v9  ;;  %v2023_v35 = vadd.f32 %v1950_v40, %v1788_v51  ;;  %v2184_v47 = vpop.f32.mrf.mxu3 }
 0x218   : > { %v1718_v25 = vpop.f32.mrf.mxu1 }
 0x219   : > { %v2257_v60 = vadd.f32 %v2184_v47, %v2023_v35  ;;  %v1789_v19 = vadd.f32 %v1718_v25, %v4307_v10 }
 0x21a   : > { %v2421_v27 = vpop.f32.mrf.mxu0 }
 0x21b   : > { %v2491_v15 = vadd.f32 %v2418_v12, %v2257_v60  ;;  %1757 = vmatmul.bf16.gmra.mxu1 %v1624_v56  ;;  %1992 = vmatmul.bf16.gmra.mxu2 %v1859_v0  ;;  %v1841_v12 = vld [vmem:[#allocation2 + $0x158] sm:$0xff] }
 0x21c   : > { %2226 = vmatmul.bf16.gmra.mxu3 %v2093_v31  ;;  %v1860_v24 = vpack.c.bf16 %v1841_v12, %v1840_v57  ;;  %v4309_v60 = vld [vmem:[#allocation8_spill] sm:$0xff] }
 0x21d   : > { %2460 = vmatmul.bf16.gmra.mxu0 %v4125_v37  ;;  %v3356_v49 = vpack.c.bf16 %v2491_v15, %v2490_v26  ;;  %v2586_v48 = vadd.f32 %v2585_v34, %v2491_v15  ;;  %v2624_v46 = vmul.f32 %v2491_v15, %v2491_v15  ;;  %v4308_v26 = vld [vmem:[#allocation7_spill] sm:$0xff] }
 0x21e   : > { %v1953_v23 = vpop.f32.mrf.mxu2 }
 0x21f   : > { %3439 = vst [vmem:[%s4226_s30 + $0x10] sm:$0xff] %v3356_v49   ;;  %v2655_v8 = vadd.f32 %v2654_v38, %v2624_v46  ;;  %v2024_v63 = vadd.f32 %v1953_v23, %v1789_v19  ;;  %v2187_v17 = vpop.f32.mrf.mxu3  ;;  %v2094_v38 = vpack.c.bf16 %v2075_v16, %v2074_v58  ;;  %v2095_v16 = vpack.c.bf16 %v2077_v33, %v2076_v14 }
 0x220   : > { %v1720_v45 = vpop.f32.mrf.mxu1 }
 0x221   : > { %v2258_v28 = vadd.f32 %v2187_v17, %v2024_v63  ;;  %v1790_v21 = vadd.f32 %v1720_v45, %v4308_v26  ;;  %v1607_v63 = vld [vmem:[#allocation2 + $0x152] sm:$0xff]  ;;  %v1608_v17 = vld [vmem:[#allocation2 + $0x15a] sm:$0xff]  ;;  %v1842_v45 = vld [vmem:[#allocation2 + $0x168] sm:$0xff] }
 0x222   : > { %v2423_v4 = vpop.f32.mrf.mxu0  ;;  %v1626_v26 = vpack.c.bf16 %v1608_v17, %v1607_v63  ;;  %v2313_v63 = vld [vmem:[#allocation2 + $0x18a] sm:$0xff] }
 0x223   : > { %v2492_v2 = vadd.f32 %v2421_v27, %v2258_v28  ;;  %v1843_v28 = vld [vmem:[#allocation2 + $0x170] sm:$0xff] }
 0x225   : > { %v2587_v11 = vadd.f32 %v2586_v48, %v2492_v2  ;;  %v2625_v37 = vmul.f32 %v2492_v2, %v2492_v2 }
 0x226   : > { %v1955_v34 = vpop.f32.mrf.mxu2 }
 0x227   : > { %v2656_v9 = vadd.f32 %v2655_v8, %v2625_v37  ;;  %v2025_v41 = vadd.f32 %v1955_v34, %v1790_v21  ;;  %v2189_v51 = vpop.f32.mrf.mxu3  ;;  %v1861_v21 = vpack.c.bf16 %v1843_v28, %v1842_v45 }
 0x228   : > { %v1723_v40 = vpop.f32.mrf.mxu1 }
 0x229   : > { %v2259_v35 = vadd.f32 %v2189_v51, %v2025_v41  ;;  %v1791_v27 = vadd.f32 %v1723_v40, %v4309_v60 }
 0x22a   : > { %v2426_v47 = vpop.f32.mrf.mxu0 }
 0x22b   : > { %v2493_v56 = vadd.f32 %v2423_v4, %v2259_v35  ;;  %1762 = vmatmul.bf16.gmra.mxu1 %v1625_v18  ;;  %1997 = vmatmul.bf16.gmra.mxu2 %v1860_v24  ;;  %v4310_v24 = vld [vmem:[#allocation9_spill] sm:$0xff] }
 0x22c   : > { %2231 = vmatmul.bf16.gmra.mxu3 %v2094_v38 }
 0x22d   : > { %2465 = vmatmul.bf16.gmra.mxu0 %v4134_v13  ;;  %v3361_v0 = vpack.c.bf16 %v2493_v56, %v2492_v2  ;;  %v2588_v25 = vadd.f32 %v2587_v11, %v2493_v56  ;;  %v2626_v31 = vmul.f32 %v2493_v56, %v2493_v56 }
 0x22e   : > { %v1958_v15 = vpop.f32.mrf.mxu2 }
 0x22f   : > { %3440 = vst [vmem:[%s4226_s30 + $0x18] sm:$0xff] %v3361_v0   ;;  %v2657_v49 = vadd.f32 %v2656_v9, %v2626_v31  ;;  %v2026_v48 = vadd.f32 %v1958_v15, %v1791_v27  ;;  %v2192_v46 = vpop.f32.mrf.mxu3  ;;  %v1609_v27 = vld [vmem:[#allocation2 + $0x16a] sm:$0xff]  ;;  %v1610_v15 = vld [vmem:[#allocation2 + $0x172] sm:$0xff] }
 0x230   : > { %v1725_v10 = vpop.f32.mrf.mxu1 }
 0x231   : > { %v2260_v19 = vadd.f32 %v2192_v46, %v2026_v48  ;;  %v1792_v2 = vadd.f32 %v1725_v10, %v4128_v62  ;;  %v1845_v48 = vld [vmem:[#allocation2 + $0x188] sm:$0xff] }
 0x232   : > { %v2428_v23 = vpop.f32.mrf.mxu0  ;;  %v2078_v46 = vld [vmem:[#allocation2 + $0x181] sm:$0xff] }
 0x233   : > { %v2494_v8 = vadd.f32 %v2426_v47, %v2260_v19 }
 0x235   : > { %v2589_v4 = vadd.f32 %v2588_v25, %v2494_v8  ;;  %v2627_v13 = vmul.f32 %v2494_v8, %v2494_v8 }
 0x236   : > { %v1960_v57 = vpop.f32.mrf.mxu2 }
 0x237   : > { %v2658_v12 = vadd.f32 %v2657_v49, %v2627_v13  ;;  %v2027_v11 = vadd.f32 %v1960_v57, %v1792_v2  ;;  %v2194_v37 = vpop.f32.mrf.mxu3  ;;  %v1844_v49 = vld [vmem:[#allocation2 + $0x180] sm:$0xff]  ;;  %v1627_v13 = vpack.c.bf16 %v1610_v15, %v1609_v27 }
 0x238   : > { %v1728_v58 = vpop.f32.mrf.mxu1  ;;  %v1862_v2 = vpack.c.bf16 %v1845_v48, %v1844_v49  ;;  %v3490_v15 = vld [vmem:[#allocation2] sm:$0xff] }
 0x239   : > { %v2261_v34 = vadd.f32 %v2194_v37, %v2027_v11  ;;  %v1793_v40 = vadd.f32 %v1728_v58, %v4310_v24  ;;  %v1863_v49 = vpack.c.bf16 %v3490_v15, %v3490_v15 }
 0x23a   : > { %v2431_v9 = vpop.f32.mrf.mxu0 }
 0x23b   : > { %v2495_v41 = vadd.f32 %v2428_v23, %v2261_v34  ;;  %1767 = vmatmul.bf16.gmra.mxu1 %v1626_v26  ;;  %2002 = vmatmul.bf16.gmra.mxu2 %v1861_v21  ;;  %v2079_v23 = vld [vmem:[#allocation2 + $0x189] sm:$0xff] }
 0x23c   : > { %2236 = vmatmul.bf16.gmra.mxu3 %v2095_v16  ;;  %v2096_v33 = vpack.c.bf16 %v2079_v23, %v2078_v46 }
 0x23d   : > { %2470 = vmatmul.bf16.gmra.mxu0 %v4143_v59  ;;  %v3366_v62 = vpack.c.bf16 %v2495_v41, %v2494_v8  ;;  %v2590_v51 = vadd.f32 %v2589_v4, %v2495_v41  ;;  %v2628_v18 = vmul.f32 %v2495_v41, %v2495_v41  ;;  %v2312_v8 = vld [vmem:[#allocation2 + $0x182] sm:$0xff] }
 0x23e   : > { %v1963_v38 = vpop.f32.mrf.mxu2  ;;  %v2330_v57 = vpack.c.bf16 %v2313_v63, %v2312_v8 }
 0x23f   : > { %3441 = vst [vmem:[%s4226_s30 + $0x20] sm:$0xff] %v3366_v62   ;;  %v2659_v35 = vadd.f32 %v2658_v12, %v2628_v18  ;;  %v2028_v47 = vadd.f32 %v1963_v38, %v1793_v40  ;;  %v2197_v56 = vpop.f32.mrf.mxu3  ;;  %v2080_v40 = vld [vmem:[#allocation2 + $0x199] sm:$0xff] }
 0x240   : > { %v1730_v0 = vpop.f32.mrf.mxu1 }
 0x241   : > { %v2262_v25 = vadd.f32 %v2197_v56, %v2028_v47  ;;  %v1794_v19 = vadd.f32 %v1730_v0, %v4137_v43  ;;  %v2081_v56 = vld [vmem:[#allocation2 + $0x1a1] sm:$0xff] }
 0x242   : > { %v2433_v31 = vpop.f32.mrf.mxu0  ;;  %v2314_v0 = vld [vmem:[#allocation2 + $0x19a] sm:$0xff]  ;;  %v2097_v46 = vpack.c.bf16 %v2081_v56, %v2080_v40 }
 0x243   : > { %v2496_v60 = vadd.f32 %v2431_v9, %v2262_v25  ;;  %v2315_v25 = vld [vmem:[#allocation2 + $0x1a2] sm:$0xff] }
 0x245   : > { %v2591_v59 = vadd.f32 %v2590_v51, %v2496_v60  ;;  %v2629_v10 = vmul.f32 %v2496_v60, %v2496_v60 }
 0x246   : > { %v1965_v17 = vpop.f32.mrf.mxu2 }
 0x247   : > { %v2660_v45 = vadd.f32 %v2659_v35, %v2629_v10  ;;  %v2029_v28 = vadd.f32 %v1965_v17, %v1794_v19  ;;  %v2199_v4 = vpop.f32.mrf.mxu3 }
 0x248   : > { %v1733_v14 = vpop.f32.mrf.mxu1 }
 0x249   : > { %v2263_v12 = vadd.f32 %v2199_v4, %v2029_v28  ;;  %v1795_v58 = vadd.f32 %v1733_v14, %v4140_v50 }
 0x24a   : > { %v2436_v11 = vpop.f32.mrf.mxu0 }
 0x24b   : > { %v2497_v37 = vadd.f32 %v2433_v31, %v2263_v12  ;;  %1772 = vmatmul.bf16.gmra.mxu1 %v1627_v13  ;;  %2007 = vmatmul.bf16.gmra.mxu2 %v1862_v2 }
 0x24c   : > { %2241 = vmatmul.bf16.gmra.mxu3 %v2096_v33 }
 0x24d   : > { %2475 = vmatmul.bf16.gmra.mxu0 %v2330_v57  ;;  %v3371_v43 = vpack.c.bf16 %v2497_v37, %v2496_v60  ;;  %v2592_v26 = vadd.f32 %v2591_v59, %v2497_v37  ;;  %v2630_v21 = vmul.f32 %v2497_v37, %v2497_v37  ;;  %v2331_v59 = vpack.c.bf16 %v2315_v25, %v2314_v0 }
 0x24e   : > { %v1968_v16 = vpop.f32.mrf.mxu2 }
 0x24f   : > { %3442 = vst [vmem:[%s4226_s30 + $0x28] sm:$0xff] %v3371_v43   ;;  %v2661_v34 = vadd.f32 %v2660_v45, %v2630_v21  ;;  %v2030_v9 = vadd.f32 %v1968_v16, %v1795_v58  ;;  %v2202_v41 = vpop.f32.mrf.mxu3 }
 0x250   : > { %v1735_v62 = vpop.f32.mrf.mxu1 }
 0x251   : > { %v2264_v51 = vadd.f32 %v2202_v41, %v2030_v9  ;;  %v1796_v47 = vadd.f32 %v1735_v62, %v4150_v36 }
 0x252   : > { %v2438_v18 = vpop.f32.mrf.mxu0 }
 0x253   : > { %v2498_v24 = vadd.f32 %v2436_v11, %v2264_v51 }
 0x255   : > { %v2593_v38 = vadd.f32 %v2592_v26, %v2498_v24  ;;  %v2631_v35 = vmul.f32 %v2498_v24, %v2498_v24 }
 0x256   : > { %v1970_v31 = vpop.f32.mrf.mxu2 }
 0x257   : > { %v2662_v60 = vadd.f32 %v2661_v34, %v2631_v35  ;;  %v2031_v50 = vadd.f32 %v1970_v31, %v1796_v47  ;;  %v2204_v27 = vpop.f32.mrf.mxu3 }
 0x258   : > { %v1738_v48 = vpop.f32.mrf.mxu1 }
 0x259   : > { %v2265_v10 = vadd.f32 %v2204_v27, %v2031_v50  ;;  %v1797_v17 = vadd.f32 %v1738_v48, %v4153_v6 }
 0x25a   : > { %v2441_v19 = vpop.f32.mrf.mxu0 }
 0x25b   : > { %v2499_v23 = vadd.f32 %v2438_v18, %v2265_v10  ;;  %1777 = vmatmul.bf16.gmra.mxu1 %v2330_v57  ;;  %2012 = vmatmul.bf16.gmra.mxu2 %v1863_v49 }
 0x25c   : > { %2246 = vmatmul.bf16.gmra.mxu3 %v2097_v46 }
 0x25d   : > { %2480 = vmatmul.bf16.gmra.mxu0 %v2331_v59  ;;  %v3376_v36 = vpack.c.bf16 %v2499_v23, %v2498_v24  ;;  %v2594_v8 = vadd.f32 %v2593_v38, %v2499_v23  ;;  %v2632_v63 = vmul.f32 %v2499_v23, %v2499_v23 }
 0x25e   : > { %v1973_v45 = vpop.f32.mrf.mxu2 }
 0x25f   : > { %3443 = vst [vmem:[%s4226_s30 + $0x30] sm:$0xff] %v3376_v36   ;;  %v2663_v28 = vadd.f32 %v2662_v60, %v2632_v63  ;;  %v2032_v4 = vadd.f32 %v1973_v45, %v1797_v17  ;;  %v2207_v13 = vpop.f32.mrf.mxu3 }
 0x260   : > { %v1740_v2 = vpop.f32.mrf.mxu1 }
 0x261   : > { %v2266_v14 = vadd.f32 %v2207_v13, %v2032_v4  ;;  %v1798_v37 = vadd.f32 %v1740_v2, %v4158_v53 }
 0x262   : > { %v2443_v33 = vpop.f32.mrf.mxu0 }
 0x263   : > { %v2500_v12 = vadd.f32 %v2441_v19, %v2266_v14 }
 0x265   : > { %v2595_v11 = vadd.f32 %v2594_v8, %v2500_v12  ;;  %v2633_v57 = vmul.f32 %v2500_v12, %v2500_v12 }
 0x266   : > { %v1975_v43 = vpop.f32.mrf.mxu2 }
 0x267   : > { %v2664_v26 = vadd.f32 %v2663_v28, %v2633_v57  ;;  %v2033_v21 = vadd.f32 %v1975_v43, %v1798_v37  ;;  %v2209_v58 = vpop.f32.mrf.mxu3 }
 0x268   : > { %v1743_v16 = vpop.f32.mrf.mxu1 }
 0x269   : > { %v2267_v6 = vadd.f32 %v2209_v58, %v2033_v21  ;;  %v1799_v18 = vadd.f32 %v1743_v16, %v4162_v7 }
 0x26a   : > { %v2446_v34 = vpop.f32.mrf.mxu0 }
 0x26b   : > { %v2501_v9 = vadd.f32 %v2443_v33, %v2267_v6 }
 0x26d   : > { %v3381_v41 = vpack.c.bf16 %v2501_v9, %v2500_v12  ;;  %v2596_v62 = vadd.f32 %v2595_v11, %v2501_v9  ;;  %v2634_v51 = vmul.f32 %v2501_v9, %v2501_v9 }
 0x26e   : > { %v1978_v24 = vpop.f32.mrf.mxu2 }
 0x26f   : > { %3444 = vst [vmem:[%s4226_s30 + $0x38] sm:$0xff] %v3381_v41   ;;  %v2665_v40 = vadd.f32 %v2664_v26, %v2634_v51  ;;  %v2034_v38 = vadd.f32 %v1978_v24, %v1799_v18  ;;  %v2212_v35 = vpop.f32.mrf.mxu3 }
 0x270   : > { %v1745_v47 = vpop.f32.mrf.mxu1 }
 0x271   : > { %v2268_v53 = vadd.f32 %v2212_v35, %v2034_v38  ;;  %v1800_v60 = vadd.f32 %v1745_v47, %v4165_v1 }
 0x272   : > { %v2448_v56 = vpop.f32.mrf.mxu0 }
 0x273   : > { %v2502_v0 = vadd.f32 %v2446_v34, %v2268_v53 }
 0x275   : > { %v2597_v25 = vadd.f32 %v2596_v62, %v2502_v0  ;;  %v2635_v31 = vmul.f32 %v2502_v0, %v2502_v0 }
 0x276   : > { %v1980_v50 = vpop.f32.mrf.mxu2 }
 0x277   : > { %v2666_v27 = vadd.f32 %v2665_v40, %v2635_v31  ;;  %v2035_v15 = vadd.f32 %v1980_v50, %v1800_v60  ;;  %v2214_v49 = vpop.f32.mrf.mxu3 }
 0x278   : > { %v1748_v48 = vpop.f32.mrf.mxu1 }
 0x279   : > { %v2269_v7 = vadd.f32 %v2214_v49, %v2035_v15  ;;  %v1801_v36 = vadd.f32 %v1748_v48, %v4169_v30 }
 0x27a   : > { %v2451_v46 = vpop.f32.mrf.mxu0 }
 0x27b   : > { %v2503_v59 = vadd.f32 %v2448_v56, %v2269_v7 }
 0x27d   : > { %v3386_v10 = vpack.c.bf16 %v2503_v59, %v2502_v0  ;;  %v2598_v19 = vadd.f32 %v2597_v25, %v2503_v59  ;;  %v2636_v23 = vmul.f32 %v2503_v59, %v2503_v59 }
 0x27e   : > { %v1983_v8 = vpop.f32.mrf.mxu2 }
 0x27f   : > { %3445 = vst [vmem:[%s4226_s30 + $0x40] sm:$0xff] %v3386_v10   ;;  %v2667_v63 = vadd.f32 %v2666_v27, %v2636_v23  ;;  %v2036_v17 = vadd.f32 %v1983_v8, %v1801_v36  ;;  %v2217_v45 = vpop.f32.mrf.mxu3 }
 0x280   : > { %v1750_v28 = vpop.f32.mrf.mxu1 }
 0x281   : > { %v2270_v1 = vadd.f32 %v2217_v45, %v2036_v17  ;;  %v1802_v33 = vadd.f32 %v1750_v28, %v4172_v32 }
 0x282   : > { %v2453_v4 = vpop.f32.mrf.mxu0 }
 0x283   : > { %v2504_v13 = vadd.f32 %v2451_v46, %v2270_v1 }
 0x285   : > { %v2599_v2 = vadd.f32 %v2598_v19, %v2504_v13  ;;  %v2637_v14 = vmul.f32 %v2504_v13, %v2504_v13 }
 0x286   : > { %v1985_v12 = vpop.f32.mrf.mxu2 }
 0x287   : > { %v2668_v11 = vadd.f32 %v2667_v63, %v2637_v14  ;;  %v2037_v57 = vadd.f32 %v1985_v12, %v1802_v33  ;;  %v2219_v37 = vpop.f32.mrf.mxu3 }
 0x288   : > { %v1753_v43 = vpop.f32.mrf.mxu1 }
 0x289   : > { %v2271_v30 = vadd.f32 %v2219_v37, %v2037_v57  ;;  %v1803_v34 = vadd.f32 %v1753_v43, %v4176_v20 }
 0x28a   : > { %v2456_v26 = vpop.f32.mrf.mxu0 }
 0x28b   : > { %v2505_v21 = vadd.f32 %v2453_v4, %v2271_v30 }
 0x28d   : > { %v3391_v58 = vpack.c.bf16 %v2505_v21, %v2504_v13  ;;  %v2600_v16 = vadd.f32 %v2599_v2, %v2505_v21  ;;  %v2638_v6 = vmul.f32 %v2505_v21, %v2505_v21 }
 0x28e   : > { %v1988_v9 = vpop.f32.mrf.mxu2 }
 0x28f   : > { %3446 = vst [vmem:[%s4226_s30 + $0x48] sm:$0xff] %v3391_v58   ;;  %v2669_v41 = vadd.f32 %v2668_v11, %v2638_v6  ;;  %v2038_v62 = vadd.f32 %v1988_v9, %v1803_v34  ;;  %v2222_v51 = vpop.f32.mrf.mxu3 }
 0x290   : > { %v1755_v18 = vpop.f32.mrf.mxu1 }
 0x291   : > { %v2272_v32 = vadd.f32 %v2222_v51, %v2038_v62  ;;  %v1804_v47 = vadd.f32 %v1755_v18, %v4179_v5 }
 0x292   : > { %v2458_v24 = vpop.f32.mrf.mxu0 }
 0x293   : > { %v2506_v40 = vadd.f32 %v2456_v26, %v2272_v32 }
 0x295   : > { %v2601_v38 = vadd.f32 %v2600_v16, %v2506_v40  ;;  %v2639_v35 = vmul.f32 %v2506_v40, %v2506_v40 }
 0x296   : > { %v1990_v53 = vpop.f32.mrf.mxu2 }
 0x297   : > { %v2670_v56 = vadd.f32 %v2669_v41, %v2639_v35  ;;  %v2039_v0 = vadd.f32 %v1990_v53, %v1804_v47  ;;  %v2224_v25 = vpop.f32.mrf.mxu3 }
 0x298   : > { %v1758_v31 = vpop.f32.mrf.mxu1 }
 0x299   : > { %v2273_v20 = vadd.f32 %v2224_v25, %v2039_v0  ;;  %v1805_v48 = vadd.f32 %v1758_v31, %v4183_v22 }
 0x29a   : > { %v2461_v60 = vpop.f32.mrf.mxu0 }
 0x29b   : > { %v2507_v50 = vadd.f32 %v2458_v24, %v2273_v20 }
 0x29d   : > { %v3396_v27 = vpack.c.bf16 %v2507_v50, %v2506_v40  ;;  %v2602_v15 = vadd.f32 %v2601_v38, %v2507_v50  ;;  %v2640_v49 = vmul.f32 %v2507_v50, %v2507_v50 }
 0x29e   : > { %v1993_v7 = vpop.f32.mrf.mxu2 }
 0x29f   : > { %3447 = vst [vmem:[%s4226_s30 + $0x50] sm:$0xff] %v3396_v27   ;;  %v2671_v46 = vadd.f32 %v2670_v56, %v2640_v49  ;;  %v2040_v59 = vadd.f32 %v1993_v7, %v1805_v48  ;;  %v2227_v10 = vpop.f32.mrf.mxu3 }
 0x2a0   : > { %v1760_v19 = vpop.f32.mrf.mxu1 }
 0x2a1   : > { %v2274_v5 = vadd.f32 %v2227_v10, %v2040_v59  ;;  %v1806_v17 = vadd.f32 %v1760_v19, %v4186_v42 }
 0x2a2   : > { %v2463_v23 = vpop.f32.mrf.mxu0 }
 0x2a3   : > { %v2508_v36 = vadd.f32 %v2461_v60, %v2274_v5 }
 0x2a5   : > { %v2603_v8 = vadd.f32 %v2602_v15, %v2508_v36  ;;  %v2641_v63 = vmul.f32 %v2508_v36, %v2508_v36 }
 0x2a6   : > { %v1995_v45 = vpop.f32.mrf.mxu2 }
 0x2a7   : > { %v2672_v28 = vadd.f32 %v2671_v46, %v2641_v63  ;;  %v2041_v1 = vadd.f32 %v1995_v45, %v1806_v17  ;;  %v2229_v4 = vpop.f32.mrf.mxu3 }
 0x2a8   : > { %v1763_v13 = vpop.f32.mrf.mxu1 }
 0x2a9   : > { %v2275_v22 = vadd.f32 %v2229_v4, %v2041_v1  ;;  %v1807_v57 = vadd.f32 %v1763_v13, %v4190_v3 }
 0x2aa   : > { %v2466_v2 = vpop.f32.mrf.mxu0 }
 0x2ab   : > { %v2509_v14 = vadd.f32 %v2463_v23, %v2275_v22 }
 0x2ad   : > { %v3401_v33 = vpack.c.bf16 %v2509_v14, %v2508_v36  ;;  %v2604_v12 = vadd.f32 %v2603_v8, %v2509_v14  ;;  %v2642_v11 = vmul.f32 %v2509_v14, %v2509_v14 }
 0x2ae   : > { %v1998_v37 = vpop.f32.mrf.mxu2 }
 0x2af   : > { %3448 = vst [vmem:[%s4226_s30 + $0x58] sm:$0xff] %v3401_v33   ;;  %v2673_v43 = vadd.f32 %v2672_v28, %v2642_v11  ;;  %v2042_v30 = vadd.f32 %v1998_v37, %v1807_v57  ;;  %v2232_v26 = vpop.f32.mrf.mxu3 }
 0x2b0   : > { %v1765_v21 = vpop.f32.mrf.mxu1 }
 0x2b1   : > { %v2276_v42 = vadd.f32 %v2232_v26, %v2042_v30  ;;  %v1808_v9 = vadd.f32 %v1765_v21, %v4193_v61 }
 0x2b2   : > { %v2468_v58 = vpop.f32.mrf.mxu0 }
 0x2b3   : > { %v2510_v16 = vadd.f32 %v2466_v2, %v2276_v42 }
 0x2b5   : > { %v2605_v6 = vadd.f32 %v2604_v12, %v2510_v16  ;;  %v2643_v34 = vmul.f32 %v2510_v16, %v2510_v16 }
 0x2b6   : > { %v2000_v41 = vpop.f32.mrf.mxu2 }
 0x2b7   : > { %v2674_v62 = vadd.f32 %v2673_v43, %v2643_v34  ;;  %v2043_v51 = vadd.f32 %v2000_v41, %v1808_v9  ;;  %v2234_v18 = vpop.f32.mrf.mxu3 }
 0x2b8   : > { %v1768_v32 = vpop.f32.mrf.mxu1 }
 0x2b9   : > { %v2277_v3 = vadd.f32 %v2234_v18, %v2043_v51  ;;  %v1809_v53 = vadd.f32 %v1768_v32, %v4197_v39 }
 0x2ba   : > { %v2471_v24 = vpop.f32.mrf.mxu0 }
 0x2bb   : > { %v2511_v40 = vadd.f32 %v2468_v58, %v2277_v3 }
 0x2bd   : > { %v3406_v38 = vpack.c.bf16 %v2511_v40, %v2510_v16  ;;  %v2606_v35 = vadd.f32 %v2605_v6, %v2511_v40  ;;  %v2644_v47 = vmul.f32 %v2511_v40, %v2511_v40 }
 0x2be   : > { %v2003_v56 = vpop.f32.mrf.mxu2 }
 0x2bf   : > { %3449 = vst [vmem:[%s4226_s30 + $0x60] sm:$0xff] %v3406_v38   ;;  %v2675_v0 = vadd.f32 %v2674_v62, %v2644_v47  ;;  %v2044_v25 = vadd.f32 %v2003_v56, %v1809_v53  ;;  %v2237_v31 = vpop.f32.mrf.mxu3 }
 0x2c0   : > { %v1770_v20 = vpop.f32.mrf.mxu1 }
 0x2c1   : > { %v2278_v61 = vadd.f32 %v2237_v31, %v2044_v25  ;;  %v1810_v49 = vadd.f32 %v1770_v20, %v4200_v55 }
 0x2c2   : > { %v2473_v60 = vpop.f32.mrf.mxu0 }
 0x2c3   : > { %v2512_v50 = vadd.f32 %v2471_v24, %v2278_v61 }
 0x2c5   : > { %v2607_v27 = vadd.f32 %v2606_v35, %v2512_v50  ;;  %v2645_v15 = vmul.f32 %v2512_v50, %v2512_v50 }
 0x2c6   : > { %v2005_v48 = vpop.f32.mrf.mxu2 }
 0x2c7   : > { %v2676_v7 = vadd.f32 %v2675_v0, %v2645_v15  ;;  %v2045_v46 = vadd.f32 %v2005_v48, %v1810_v49  ;;  %v2239_v59 = vpop.f32.mrf.mxu3 }
 0x2c8   : > { %v1773_v10 = vpop.f32.mrf.mxu1 }
 0x2c9   : > { %v2279_v39 = vadd.f32 %v2239_v59, %v2045_v46  ;;  %v1811_v63 = vadd.f32 %v1773_v10, %v4204_v54 }
 0x2ca   : > { %v2476_v5 = vpop.f32.mrf.mxu0 }
 0x2cb   : > { %v2513_v19 = vadd.f32 %v2473_v60, %v2279_v39 }
 0x2cd   : > { %v3411_v23 = vpack.c.bf16 %v2513_v19, %v2512_v50  ;;  %v2608_v36 = vadd.f32 %v2607_v27, %v2513_v19  ;;  %v2646_v8 = vmul.f32 %v2513_v19, %v2513_v19 }
 0x2ce   : > { %v2008_v17 = vpop.f32.mrf.mxu2 }
 0x2cf   : > { %3450 = vst [vmem:[%s4226_s30 + $0x68] sm:$0xff] %v3411_v23   ;;  %v2677_v45 = vadd.f32 %v2676_v7, %v2646_v8  ;;  %v2046_v28 = vadd.f32 %v2008_v17, %v1811_v63  ;;  %v2242_v1 = vpop.f32.mrf.mxu3 }
 0x2d0   : > { %v1775_v4 = vpop.f32.mrf.mxu1 }
 0x2d1   : > { %v2280_v55 = vadd.f32 %v2242_v1, %v2046_v28  ;;  %v1812_v14 = vadd.f32 %v1775_v4, %v4207_v52 }
 0x2d2   : > { %v2478_v33 = vpop.f32.mrf.mxu0 }
 0x2d3   : > { %v2514_v13 = vadd.f32 %v2476_v5, %v2280_v55 }
 0x2d5   : > { %v2609_v22 = vadd.f32 %v2608_v36, %v2514_v13  ;;  %v2647_v2 = vmul.f32 %v2514_v13, %v2514_v13 }
 0x2d6   : > { %v2010_v12 = vpop.f32.mrf.mxu2 }
 0x2d7   : > { %v2678_v11 = vadd.f32 %v2677_v45, %v2647_v2  ;;  %v2047_v57 = vadd.f32 %v2010_v12, %v1812_v14  ;;  %v2244_v37 = vpop.f32.mrf.mxu3 }
 0x2d8   : > { %v1778_v43 = vpop.f32.mrf.mxu1 }
 0x2d9   : > { %v2281_v54 = vadd.f32 %v2244_v37, %v2047_v57  ;;  %v1813_v58 = vadd.f32 %v1778_v43, %v4211_v29 }
 0x2da   : > { %v2481_v41 = vpop.f32.mrf.mxu0 }
 0x2db   : > { %v2515_v30 = vadd.f32 %v2478_v33, %v2281_v54 }
 0x2dd   : > { %v3416_v26 = vpack.c.bf16 %v2515_v30, %v2514_v13  ;;  %v2610_v21 = vadd.f32 %v2609_v22, %v2515_v30  ;;  %v2648_v42 = vmul.f32 %v2515_v30, %v2515_v30 }
 0x2de   : > { %v2013_v16 = vpop.f32.mrf.mxu2 }
 0x2df   : > { %3451 = vst [vmem:[%s4226_s30 + $0x70] sm:$0xff] %v3416_v26   ;;  %v2679_v6 = vadd.f32 %v2678_v11, %v2648_v42  ;;  %v2048_v34 = vadd.f32 %v2013_v16, %v1813_v58  ;;  %v2247_v9 = vpop.f32.mrf.mxu3 }
 0x2e0   : > { %v1780_v62 = vpop.f32.mrf.mxu1 }
 0x2e1   : > { %v2282_v52 = vadd.f32 %v2247_v9, %v2048_v34  ;;  %v1814_v3 = vadd.f32 %v1780_v62, %v4216_v44 }
 0x2e2   : > { %v2483_v29 = vpop.f32.mrf.mxu0 }
 0x2e3   : > { %v2516_v51 = vadd.f32 %v2481_v41, %v2282_v52 }
 0x2e5   : > { %v2611_v18 = vadd.f32 %v2610_v21, %v2516_v51  ;;  %v2649_v32 = vmul.f32 %v2516_v51, %v2516_v51 }
 0x2e6   : > { %v2015_v24 = vpop.f32.mrf.mxu2 }
 0x2e7   : > { %v2680_v40 = vadd.f32 %v2679_v6, %v2649_v32  ;;  %v2049_v38 = vadd.f32 %v2015_v24, %v1814_v3  ;;  %v2249_v35 = vpop.f32.mrf.mxu3 }
 0x2e9   : > { %v2283_v47 = vadd.f32 %v2249_v35, %v2049_v38 }
 0x2eb   : > { %v2517_v53 = vadd.f32 %v2483_v29, %v2283_v47 }
 0x2ed   : > { %v3421_v56 = vpack.c.bf16 %v2517_v53, %v2516_v51  ;;  %v2612_v0 = vadd.f32 %v2611_v18, %v2517_v53  ;;  %v2650_v25 = vmul.f32 %v2517_v53, %v2517_v53 }
 0x2ef   : > { %3452 = vst [vmem:[%s4226_s30 + $0x78] sm:$0xff] %v3421_v56   ;;  %v2613_v31 = vrot.slane %v2612_v0, 4  ;;  %v2681_v20 = vadd.f32 %v2680_v40, %v2650_v25 }
 0x2f1   : > { %v2614_v61 = vadd.f32 %v2613_v31, %v2612_v0  ;;  %v2682_v60 = vrot.slane %v2681_v20, 4 }
 0x2f3   : > { %v2615_v50 = vrot.slane %v2614_v61, 2  ;;  %v2683_v27 = vadd.f32 %v2682_v60, %v2681_v20 }
 0x2f5   : > { %v2616_v15 = vadd.f32 %v2615_v50, %v2614_v61  ;;  %v2684_v44 = vrot.slane %v2683_v27, 2 }
 0x2f7   : > { %v2617_v49 = vrot.slane %v2616_v15, 1  ;;  %v2685_v48 = vadd.f32 %v2684_v44, %v2683_v27 }
 0x2f9   : > { %v2686_v7 = vrot.slane %v2685_v48, 1  ;;  %v2618_v46 = vadd.f32 %v2617_v49, %v2616_v15 }
 0x2fb   : > { %v2687_v59 = vadd.f32 %v2686_v7, %v2685_v48 }
 0x2fd   : > { %v2689_v10 = vsel %vm2688_vm0, %v2618_v46, %v2687_v59 }
 0x2fe   : > { %2690 = vst [vmem:[%s235_s8] sm:$0x3] %v2689_v10 }
 0x2ff PF: > { %s16_s18 = sadd.s32 1, %s3497_s18  }
 0x300   : > { %p13_p4 = scmp.ge.s32.totalorder %s16_s18, 4  }
 0x302   :  { %15 = sbr.rel (!%p13_p4) target bundleno = 1 (0x1), region = 89 }

// kernel: double_conv.3
= control target key start
LH: loop header
LB: loop body
LE: loop exit
PB: predicated region body
PF: predicated region fallthrough
CT: control target
= control target key end

     0   :  { %s3439_s18 = smov 0   ;;  %s4100_s0 = inlined_call_operand.vmem [shape: bf16[2,16,16,128], index: 0, kind: input, shape index: {}]   ;;  %s4101_s1 = inlined_call_operand.vmem [shape: bf16[3,3,128,128], index: 1, kind: input, shape index: {}]   ;;  %s4102_s2 = inlined_call_operand.vmem [shape: f32[1,128], index: 2, kind: input, shape index: {}, may-alias: {2,3}]   ;;  %s4103_s3 = inlined_call_operand.vmem [shape: f32[1,128], index: 3, kind: input, shape index: {}, may-alias: {2,3}]   ;;  %s4104_s4 = inlined_call_operand.vmem [shape: bf16[2,16,16,128], index: 4, kind: output, shape index: {0}]   ;;  %s4105_s5 = inlined_call_operand.vmem [shape: f32[2,2,128], index: 5, kind: output, shape index: {1}]  }
   0x1 LB: > { %s2673_s2 = sadd.s32 4294967295, %s3405_s18   ;;  %p2677_p0 = scmp.ge.s32.totalorder %s3405_s18, 1  ;;  %s3405_s18 = sphi %s3439_s18, %s16_s18  }
   0x2   : > { %p190_p1 = scmp.lt.s32.totalorder %s3405_s18, 3 }
   0x4   : > { %p191_p2 = pnand %p2677_p0, %p190_p1 }
   0x6   : > { %194 = sbr.rel (%p191_p2) target bundleno = 767 (0x2ff), region = 36 }
   0xb   : > { %v3118_v0 = vld [vmem:[%s4101_s1 + $0x78] sm:$0xff]  ;;  %p222_p3 = scmp.lt.s32.totalorder %s2673_s2, 1  ;;  %v3407_v1 = vmov 0.0   ;;  %v3117_v2 = vld [vmem:[%s4101_s1 + $0x70] sm:$0xff]  ;;  %v3116_v3 = vld [vmem:[%s4101_s1 + $0x68] sm:$0xff]  ;;  %vm2584_vm0 = vcmask 1040384  }
   0xc   : > { %300 = vst [vmem:[#allocation2] sm:$0xff] %v3407_v1  ;;  %3349 = vmatpush.bf16.msra.mxu1 %v3118_v0  ;;  %3350 = vmatpush.bf16.msra.mxu2 %v3118_v0  ;;  %v3115_v12 = vld [vmem:[%s4101_s1 + $0x60] sm:$0xff]  ;;  %v3114_v14 = vld [vmem:[%s4101_s1 + $0x58] sm:$0xff]  ;;  %v3113_v15 = vld [vmem:[%s4101_s1 + $0x50] sm:$0xff] }
   0xd   : > { %s4128_s2 = smov (!%p222_p3, %s2673_s2), 1  ;;  %301 = vst [vmem:[#allocation2 + $0x8] sm:$0xff] %v3407_v1  ;;  %3351 = vmatpush.bf16.msra.mxu3 %v3118_v0  ;;  %549 = vmatpush.bf16.msra.mxu0 %v3118_v0  ;;  %v3112_v16 = vld [vmem:[%s4101_s1 + $0x48] sm:$0xff]  ;;  %v3111_v17 = vld [vmem:[%s4101_s1 + $0x40] sm:$0xff]  ;;  %v3126_v20 = vld [vmem:[%s4101_s1 + $0xb8] sm:$0xff] }
   0xe   : > { %302 = vst [vmem:[#allocation2 + $0x10] sm:$0x3] %v3407_v1  ;;  %s3101_s22 = sshll.u32 %s4128_s2, 7  ;;  %v3134_v21 = vld [vmem:[%s4101_s1 + $0xf8] sm:$0xff]  ;;  %v3125_v28 = vld [vmem:[%s4101_s1 + $0xb0] sm:$0xff]  ;;  %v3124_v32 = vld [vmem:[%s4101_s1 + $0xa8] sm:$0xff] }
   0xf   : > { %304 = vst [vmem:[#allocation2 + $0x198] sm:$0xff] %v3407_v1  ;;  %s3465_s25 = scalar_lea.vmem %s4100_s0, %s3101_s22  ;;  %v3110_v26 = vld [vmem:[%s4101_s1 + $0x38] sm:$0xff]  ;;  %v3133_v29 = vld [vmem:[%s4101_s1 + $0xf0] sm:$0xff]  ;;  %v3132_v33 = vld [vmem:[%s4101_s1 + $0xe8] sm:$0xff]  ;;  %s4037_s29 = scalar_lea.vmem %s4104_s4, %s3101_s22 }
  0x10   : > { %305 = vst [vmem:[#allocation2 + $0x1a0] sm:$0xff] %v3407_v1  ;;  %3352 = vmatpush.bf16.msra.mxu1 %v3117_v2  ;;  %3353 = vmatpush.bf16.msra.mxu2 %v3117_v2  ;;  %v3321_v4 = vld [vmem:[%s3465_s25 + $0x18] sm:$0xff]   ;;  %v3109_v30 = vld [vmem:[%s4101_s1 + $0x30] sm:$0xff]  ;;  %v3322_v34 = vld [vmem:[%s3465_s25 + $0x20] sm:$0xff]   ;;  %s2682_s22 = sshll.u32 %s4128_s2, 1 }
  0x11   : > { %v3325_v5 = vld [vmem:[%s3465_s25 + $0x38] sm:$0xff]   ;;  %306 = vst [vmem:[#allocation2 + $0x1a8] sm:$0x3] %v3407_v1  ;;  %3354 = vmatpush.bf16.msra.mxu3 %v3117_v2  ;;  %550 = vmatpush.bf16.msra.mxu0 %v3117_v2  ;;  %v3189_v6 = vunpack.c.l.bf16 %v3321_v4  ;;  %v3190_v7 = vunpack.c.h.bf16 %v3321_v4  ;;  %v3141_v31 = vld [vmem:[%s4101_s1 + $0x130] sm:$0xff]  ;;  %v3108_v35 = vld [vmem:[%s4101_s1 + $0x28] sm:$0xff]  ;;  %v3193_v40 = vunpack.c.l.bf16 %v3322_v34  ;;  %v3194_v41 = vunpack.c.h.bf16 %v3322_v34  ;;  %s235_s7 = scalar_lea.vmem %s4105_s5, %s2682_s22 }
  0x12   : > { %v3205_v8 = vunpack.c.l.bf16 %v3325_v5  ;;  %v3329_v9 = vld [vmem:[%s3465_s25 + $0x58] sm:$0xff]   ;;  %308 = vst [vmem:[#allocation2 + $0x18] sm:$0x1] %v3407_v1  ;;  %v3206_v10 = vunpack.c.h.bf16 %v3325_v5  ;;  %v3140_v36 = vld [vmem:[%s4101_s1 + $0x128] sm:$0xff]  ;;  %v3326_v37 = vld [vmem:[%s3465_s25 + $0x40] sm:$0xff]  }
  0x13   : > { %309 = vst [vmem:[#allocation2 + $0x30] sm:$0x1] %v3407_v1  ;;  %v3221_v11 = vunpack.c.l.bf16 %v3329_v9  ;;  %v3222_v13 = vunpack.c.h.bf16 %v3329_v9  ;;  %v3513_v22 = vld [vmem:[%s3465_s25 + $0x18] sm:$0xff]  ;;  %v3123_v38 = vld [vmem:[%s4101_s1 + $0xa0] sm:$0xff]  ;;  %v3209_v43 = vunpack.c.l.bf16 %v3326_v37  ;;  %v3210_v46 = vunpack.c.h.bf16 %v3326_v37  ;;  %v3323_v56 = vld [vmem:[%s3465_s25 + $0x28] sm:$0xff]  }
  0x14   : > { %346 = vst [vmem:[#allocation2 + $0x61] sm:$0xff] %v3189_v6  ;;  %3355 = vmatpush.bf16.msra.mxu1 %v3116_v3  ;;  %3356 = vmatpush.bf16.msra.mxu2 %v3116_v3  ;;  %v436_v18 = vld [vmem:[#allocation2 + $0x1] sm:$0xff]  ;;  %v3516_v23 = vld [vmem:[%s3465_s25 + $0x38] sm:$0xff]  ;;  %v3121_v62 = vld [vmem:[%s4101_s1 + $0x90] sm:$0xff]  ;;  %v3197_v0 = vunpack.c.l.bf16 %v3323_v56 }
  0x15   : > { %347 = vst [vmem:[#allocation2 + $0x69] sm:$0xff] %v3190_v7  ;;  %3357 = vmatpush.bf16.msra.mxu3 %v3116_v3  ;;  %551 = vmatpush.bf16.msra.mxu0 %v3116_v3  ;;  %v437_v19 = vld [vmem:[#allocation2 + $0x9] sm:$0xff]  ;;  %v3384_v24 = vld [vmem:[%s3465_s25 + $0x58] sm:$0xff]  ;;  %v3131_v39 = vld [vmem:[%s4101_s1 + $0xe0] sm:$0xff] }
  0x16   : > { %354 = vst [vmem:[#allocation2 + $0xc1] sm:$0xff] %v3205_v8  ;;  %v468_v25 = vpack.c.bf16 %v437_v19, %v436_v18  ;;  %v3142_v27 = vld [vmem:[%s4101_s1 + $0x138] sm:$0xff]  ;;  %v3330_v42 = vld [vmem:[%s3465_s25 + $0x60] sm:$0xff]   ;;  %v3327_v61 = vld [vmem:[%s3465_s25 + $0x48] sm:$0xff]  }
  0x17   : > { %355 = vst [vmem:[#allocation2 + $0xc9] sm:$0xff] %v3206_v10  ;;  %v3107_v44 = vld [vmem:[%s4101_s1 + $0x20] sm:$0xff]  ;;  %v3122_v48 = vld [vmem:[%s4101_s1 + $0x98] sm:$0xff]  ;;  %v3225_v52 = vunpack.c.l.bf16 %v3330_v42  ;;  %v3226_v53 = vunpack.c.h.bf16 %v3330_v42  ;;  %v3129_v63 = vld [vmem:[%s4101_s1 + $0xd0] sm:$0xff]  ;;  %v3213_v3 = vunpack.c.l.bf16 %v3327_v61  ;;  %v3214_v6 = vunpack.c.h.bf16 %v3327_v61 }
  0x18   : > { %362 = vst [vmem:[#allocation2 + $0x121] sm:$0xff] %v3221_v11  ;;  %3358 = vmatpush.bf16.msra.mxu1 %v3115_v12  ;;  %3359 = vmatpush.bf16.msra.mxu2 %v3115_v12  ;;  %v3139_v45 = vld [vmem:[%s4101_s1 + $0x120] sm:$0xff]  ;;  %v3130_v49 = vld [vmem:[%s4101_s1 + $0xd8] sm:$0xff]  ;;  %v3331_v2 = vld [vmem:[%s3465_s25 + $0x68] sm:$0xff]  }
  0x19   : > { %363 = vst [vmem:[#allocation2 + $0x129] sm:$0xff] %v3222_v13  ;;  %3360 = vmatpush.bf16.msra.mxu3 %v3115_v12  ;;  %552 = vmatpush.bf16.msra.mxu0 %v3115_v12  ;;  %v3176_v47 = vld [vmem:[%s3465_s25] sm:$0xff]   ;;  %v3106_v58 = vld [vmem:[%s4101_s1 + $0x18] sm:$0xff]  ;;  %v3105_v4 = vld [vmem:[%s4101_s1 + $0x10] sm:$0xff]  ;;  %v3229_v10 = vunpack.c.l.bf16 %v3331_v2  ;;  %v3230_v11 = vunpack.c.h.bf16 %v3331_v2 }
  0x1a   : > { %310 = vst [vmem:[#allocation2 + $0x48] sm:$0x1] %v3407_v1  ;;  %v3590_v50 = vld [vmem:[%s3465_s25 + $0x20] sm:$0xff]  ;;  %v3177_v57 = vunpack.c.l.bf16 %v3176_v47  ;;  %v3138_v59 = vld [vmem:[%s4101_s1 + $0x118] sm:$0xff]  ;;  %v3178_v60 = vunpack.c.h.bf16 %v3176_v47  ;;  %v3137_v5 = vld [vmem:[%s4101_s1 + $0x110] sm:$0xff] }
  0x1b   : > { %311 = vst [vmem:[#allocation2 + $0x60] sm:$0x1] %v3407_v1  ;;  %v3593_v51 = vld [vmem:[%s3465_s25 + $0x40] sm:$0xff]  ;;  %v3319_v7 = vld [vmem:[%s3465_s25 + $0x8] sm:$0xff]   ;;  %v3324_v12 = vld [vmem:[%s3465_s25 + $0x30] sm:$0xff]  }
  0x1c   : > { %312 = vst [vmem:[#allocation2 + $0x78] sm:$0x1] %v3407_v1  ;;  %3361 = vmatpush.bf16.msra.mxu1 %v3114_v14  ;;  %3362 = vmatpush.bf16.msra.mxu2 %v3114_v14  ;;  %v3387_v54 = vld [vmem:[%s3465_s25 + $0x60] sm:$0xff]  ;;  %v3120_v8 = vld [vmem:[%s4101_s1 + $0x88] sm:$0xff]  ;;  %v3181_v13 = vunpack.c.l.bf16 %v3319_v7  ;;  %v3675_v42 = vld [vmem:[%s3465_s25 + $0x30] sm:$0xff] }
  0x1d   : > { %313 = vst [vmem:[#allocation2 + $0x90] sm:$0x1] %v3407_v1  ;;  %3363 = vmatpush.bf16.msra.mxu3 %v3114_v14  ;;  %553 = vmatpush.bf16.msra.mxu0 %v3114_v14  ;;  %v3597_v55 = vld [vmem:[%s3465_s25] sm:$0xff]  ;;  %v3128_v9 = vld [vmem:[%s4101_s1 + $0xc8] sm:$0xff] }
  0x1e   : > { %314 = vst [vmem:[#allocation2 + $0xa8] sm:$0x1] %v3407_v1  ;;  %v3104_v14 = vld [vmem:[%s4101_s1 + $0x8] sm:$0xff]  ;;  %v3119_v18 = vld [vmem:[%s4101_s1 + $0x80] sm:$0xff] }
  0x1f   : > { %315 = vst [vmem:[#allocation2 + $0xc0] sm:$0x1] %v3407_v1  ;;  %v3127_v19 = vld [vmem:[%s4101_s1 + $0xc0] sm:$0xff]  ;;  %v3392_v34 = vld [vmem:[%s3465_s25 + $0x8] sm:$0xff] }
  0x20   : > { %316 = vst [vmem:[#allocation2 + $0xd8] sm:$0x1] %v3407_v1  ;;  %3364 = vmatpush.bf16.msra.mxu1 %v3113_v15  ;;  %3365 = vmatpush.bf16.msra.mxu2 %v3113_v15  ;;  %v776_v47 = vld [vmem:[#allocation2 + $0xa] sm:$0xff] }
  0x21   : > { %317 = vst [vmem:[#allocation2 + $0xf0] sm:$0x1] %v3407_v1  ;;  %3366 = vmatpush.bf16.msra.mxu3 %v3113_v15  ;;  %554 = vmatpush.bf16.msra.mxu0 %v3113_v15  ;;  %v3136_v15 = vld [vmem:[%s4101_s1 + $0x108] sm:$0xff] }
  0x22   : > { %318 = vst [vmem:[#allocation2 + $0x108] sm:$0x1] %v3407_v1 }
  0x23   : > { %319 = vst [vmem:[#allocation2 + $0x120] sm:$0x1] %v3407_v1 }
  0x24   : > { %320 = vst [vmem:[#allocation2 + $0x138] sm:$0x1] %v3407_v1  ;;  %3367 = vmatpush.bf16.msra.mxu1 %v3112_v16  ;;  %3368 = vmatpush.bf16.msra.mxu2 %v3112_v16 }
  0x25   : > { %321 = vst [vmem:[#allocation2 + $0x150] sm:$0x1] %v3407_v1  ;;  %3369 = vmatpush.bf16.msra.mxu3 %v3112_v16  ;;  %555 = vmatpush.bf16.msra.mxu0 %v3112_v16  ;;  %v3182_v16 = vunpack.c.h.bf16 %v3319_v7  ;;  %v3156_v7 = vld [vmem:[%s4101_s1 + $0x1a8] sm:$0xff] }
  0x26   : > { %322 = vst [vmem:[#allocation2 + $0x168] sm:$0x1] %v3407_v1 }
  0x27   : > { %323 = vst [vmem:[#allocation2 + $0x180] sm:$0x1] %v3407_v1 }
  0x28   : > { %324 = vst [vmem:[#allocation2 + $0x29] sm:$0x1] %v3407_v1  ;;  %3370 = vmatpush.bf16.msra.mxu1 %v3111_v17  ;;  %3371 = vmatpush.bf16.msra.mxu2 %v3111_v17 }
  0x29   : > { %325 = vst [vmem:[#allocation2 + $0x41] sm:$0x1] %v3407_v1  ;;  %3372 = vmatpush.bf16.msra.mxu3 %v3111_v17  ;;  %556 = vmatpush.bf16.msra.mxu0 %v3111_v17  ;;  %v3328_v17 = vld [vmem:[%s3465_s25 + $0x50] sm:$0xff]  }
  0x2a   : > { %326 = vst [vmem:[#allocation2 + $0x59] sm:$0x1] %v3407_v1 }
  0x2b   : > { %327 = vst [vmem:[#allocation2 + $0x71] sm:$0x1] %v3407_v1  ;;  %577 = vmatmul.bf16.vlgmr.msra.gmra.mxu1 %v3513_v22  ;;  %597 = vmatmul.bf16.vlgmr.msra.gmra.mxu2 %v3516_v23 }
  0x2c   : > { %888 = vmatpush.bf16.msrb.mxu2 %v3126_v20  ;;  %328 = vst [vmem:[#allocation2 + $0x89] sm:$0x1] %v3407_v1  ;;  %617 = vmatmul.bf16.vlgmr.msra.gmra.mxu3 %v3384_v24  ;;  %v3201_v20 = vunpack.c.l.bf16 %v3324_v12  ;;  %v3332_v24 = vld [vmem:[%s3465_s25 + $0x70] sm:$0xff]  }
  0x2d   : > { %1122 = vmatpush.bf16.msrb.mxu3 %v3134_v21  ;;  %557 = vmatmul.bf16.vlgmr.msra.gmra.mxu0 %v468_v25  ;;  %329 = vst [vmem:[#allocation2 + $0xa1] sm:$0x1] %v3407_v1  ;;  %v3202_v21 = vunpack.c.h.bf16 %v3324_v12  ;;  %v3217_v25 = vunpack.c.l.bf16 %v3328_v17 }
  0x2e   : > { %330 = vst [vmem:[#allocation2 + $0xb9] sm:$0x1] %v3407_v1  ;;  %686 = vmatpush.bf16.msrb.mxu1 %v3110_v26  ;;  %1356 = vmatpush.bf16.msrb.mxu0 %v3142_v27  ;;  %v3103_v26 = vld [vmem:[%s4101_s1] sm:$0xff] }
  0x2f   : > { %331 = vst [vmem:[#allocation2 + $0xd1] sm:$0x1] %v3407_v1  ;;  %v3135_v27 = vld [vmem:[%s4101_s1 + $0x100] sm:$0xff] }
  0x30   : > { %889 = vmatpush.bf16.msrb.mxu2 %v3125_v28  ;;  %332 = vst [vmem:[#allocation2 + $0xe9] sm:$0x1] %v3407_v1  ;;  %v3218_v28 = vunpack.c.h.bf16 %v3328_v17  ;;  %v783_v17 = vld [vmem:[#allocation2 + $0x62] sm:$0xff] }
  0x31   : > { %1123 = vmatpush.bf16.msrb.mxu3 %v3133_v29  ;;  %333 = vst [vmem:[#allocation2 + $0x101] sm:$0x1] %v3407_v1  ;;  %v3320_v29 = vld [vmem:[%s3465_s25 + $0x10] sm:$0xff]  }
  0x32   : > { %334 = vst [vmem:[#allocation2 + $0x119] sm:$0x1] %v3407_v1  ;;  %687 = vmatpush.bf16.msrb.mxu1 %v3109_v30  ;;  %1357 = vmatpush.bf16.msrb.mxu0 %v3141_v31  ;;  %v3653_v30 = vld [vmem:[%s3465_s25 + $0x28] sm:$0xff]  ;;  %v3186_v37 = vunpack.c.h.bf16 %v3320_v29 }
  0x33   : > { %335 = vst [vmem:[#allocation2 + $0x131] sm:$0x1] %v3407_v1  ;;  %v3656_v31 = vld [vmem:[%s3465_s25 + $0x48] sm:$0xff] }
  0x34   : > { %890 = vmatpush.bf16.msrb.mxu2 %v3124_v32  ;;  %336 = vst [vmem:[#allocation2 + $0x149] sm:$0x1] %v3407_v1  ;;  %v3233_v32 = vunpack.c.l.bf16 %v3332_v24 }
  0x35   : > { %1124 = vmatpush.bf16.msrb.mxu3 %v3132_v33  ;;  %337 = vst [vmem:[#allocation2 + $0x161] sm:$0x1] %v3407_v1  ;;  %v3391_v33 = vld [vmem:[%s3465_s25 + $0x68] sm:$0xff] }
  0x36   : > { %338 = vst [vmem:[#allocation2 + $0x179] sm:$0x1] %v3407_v1  ;;  %688 = vmatpush.bf16.msrb.mxu1 %v3108_v35  ;;  %1358 = vmatpush.bf16.msrb.mxu0 %v3140_v36  ;;  %v3234_v35 = vunpack.c.h.bf16 %v3332_v24  ;;  %v3185_v36 = vunpack.c.l.bf16 %v3320_v29 }
  0x37   : > { %339 = vst [vmem:[#allocation2 + $0x191] sm:$0x1] %v3407_v1  ;;  %v3198_v1 = vunpack.c.h.bf16 %v3323_v56  ;;  %v3157_v56 = vld [vmem:[%s4101_s1 + $0x1b0] sm:$0xff] }
  0x38   : > { %891 = vmatpush.bf16.msrb.mxu2 %v3123_v38  ;;  %348 = vst [vmem:[#allocation2 + $0x79] sm:$0xff] %v3193_v40  ;;  %v3158_v38 = vld [vmem:[%s4101_s1 + $0x1b8] sm:$0xff] }
  0x39   : > { %1125 = vmatpush.bf16.msrb.mxu3 %v3131_v39  ;;  %349 = vst [vmem:[#allocation2 + $0x81] sm:$0xff] %v3194_v41  ;;  %v3166_v39 = vld [vmem:[%s4101_s1 + $0x1f8] sm:$0xff] }
  0x3a   : > { %356 = vst [vmem:[#allocation2 + $0xd9] sm:$0xff] %v3209_v43  ;;  %689 = vmatpush.bf16.msrb.mxu1 %v3107_v44  ;;  %1359 = vmatpush.bf16.msrb.mxu0 %v3139_v45  ;;  %v3150_v40 = vld [vmem:[%s4101_s1 + $0x178] sm:$0xff]  ;;  %v3678_v43 = vld [vmem:[%s3465_s25 + $0x50] sm:$0xff] }
  0x3b   : > { %357 = vst [vmem:[#allocation2 + $0xe1] sm:$0xff] %v3210_v46  ;;  %582 = vmatmul.bf16.gmra.mxu1 %v3590_v50  ;;  %602 = vmatmul.bf16.gmra.mxu2 %v3593_v51  ;;  %v3174_v41 = vld [vmem:[%s4101_s1 + $0x238] sm:$0xff]  ;;  %v3395_v44 = vld [vmem:[%s3465_s25 + $0x70] sm:$0xff]  ;;  %v775_v46 = vld [vmem:[#allocation2 + $0x2] sm:$0xff] }
  0x3c   : > { %892 = vmatpush.bf16.msrb.mxu2 %v3122_v48  ;;  %364 = vst [vmem:[#allocation2 + $0x139] sm:$0xff] %v3225_v52  ;;  %622 = vmatmul.bf16.gmra.mxu3 %v3387_v54  ;;  %v3396_v45 = vld [vmem:[%s3465_s25 + $0x10] sm:$0xff]  ;;  %v807_v52 = vpack.c.bf16 %v776_v47, %v775_v46  ;;  %v3408_v54 = vmov 0.0|0.0  }
  0x3d   : > { %1126 = vmatpush.bf16.msrb.mxu3 %v3130_v49  ;;  %365 = vst [vmem:[#allocation2 + $0x141] sm:$0xff] %v3226_v53  ;;  %562 = vmatmul.bf16.gmra.mxu0 %v3597_v55 }
  0x3e   : > { %340 = vst [vmem:[#allocation2 + $0x19] sm:$0xff] %v3177_v57  ;;  %690 = vmatpush.bf16.msrb.mxu1 %v3106_v58  ;;  %1360 = vmatpush.bf16.msrb.mxu0 %v3138_v59  ;;  %v3165_v57 = vld [vmem:[%s4101_s1 + $0x1f0] sm:$0xff] }
  0x3f   : > { %341 = vst [vmem:[#allocation2 + $0x21] sm:$0xff] %v3178_v60  ;;  %v3149_v58 = vld [vmem:[%s4101_s1 + $0x170] sm:$0xff] }
  0x40   : > { %893 = vmatpush.bf16.msrb.mxu2 %v3121_v62  ;;  %350 = vst [vmem:[#allocation2 + $0x91] sm:$0xff] %v3197_v0  ;;  %v3173_v59 = vld [vmem:[%s4101_s1 + $0x230] sm:$0xff] }
  0x41   : > { %1127 = vmatpush.bf16.msrb.mxu3 %v3129_v63  ;;  %351 = vst [vmem:[#allocation2 + $0x99] sm:$0xff] %v3198_v1 }
  0x42   : > { %358 = vst [vmem:[#allocation2 + $0xf1] sm:$0xff] %v3213_v3  ;;  %691 = vmatpush.bf16.msrb.mxu1 %v3105_v4  ;;  %1361 = vmatpush.bf16.msrb.mxu0 %v3137_v5 }
  0x43   : > { %359 = vst [vmem:[#allocation2 + $0xf9] sm:$0xff] %v3214_v6 }
  0x44   : > { %894 = vmatpush.bf16.msrb.mxu2 %v3120_v8  ;;  %366 = vst [vmem:[#allocation2 + $0x151] sm:$0xff] %v3229_v10  ;;  %v3164_v8 = vld [vmem:[%s4101_s1 + $0x1e8] sm:$0xff] }
  0x45   : > { %1128 = vmatpush.bf16.msrb.mxu3 %v3128_v9  ;;  %367 = vst [vmem:[#allocation2 + $0x159] sm:$0xff] %v3230_v11  ;;  %v1009_v48 = vld [vmem:[#allocation2 + $0x18] sm:$0xff]  ;;  %v3148_v9 = vld [vmem:[%s4101_s1 + $0x168] sm:$0xff] }
  0x46   : > { %342 = vst [vmem:[#allocation2 + $0x31] sm:$0xff] %v3181_v13  ;;  %692 = vmatpush.bf16.msrb.mxu1 %v3104_v14  ;;  %1362 = vmatpush.bf16.msrb.mxu0 %v3136_v15  ;;  %v1010_v49 = vld [vmem:[#allocation2 + $0x20] sm:$0xff]  ;;  %v3172_v10 = vld [vmem:[%s4101_s1 + $0x228] sm:$0xff] }
  0x47   : > { %343 = vst [vmem:[#allocation2 + $0x39] sm:$0xff] %v3182_v16  ;;  %v1041_v53 = vpack.c.bf16 %v1010_v49, %v1009_v48  ;;  %v778_v60 = vld [vmem:[#allocation2 + $0x22] sm:$0xff] }
  0x48   : > { %895 = vmatpush.bf16.msrb.mxu2 %v3119_v18  ;;  %352 = vst [vmem:[#allocation2 + $0xa9] sm:$0xff] %v3201_v20  ;;  %v1015_v13 = vld [vmem:[#allocation2 + $0x60] sm:$0xff]  ;;  %v1016_v14 = vld [vmem:[#allocation2 + $0x68] sm:$0xff] }
  0x49   : > { %1129 = vmatpush.bf16.msrb.mxu3 %v3127_v19  ;;  %353 = vst [vmem:[#allocation2 + $0xb1] sm:$0xff] %v3202_v21  ;;  %v3721_v16 = vpack.c.bf16 %v1016_v14, %v1015_v13  ;;  %v784_v18 = vld [vmem:[#allocation2 + $0x6a] sm:$0xff]  ;;  %v1017_v19 = vld [vmem:[#allocation2 + $0x78] sm:$0xff]  ;;  %v1018_v20 = vld [vmem:[#allocation2 + $0x80] sm:$0xff] }
  0x4a   : > { %360 = vst [vmem:[#allocation2 + $0x109] sm:$0xff] %v3217_v25  ;;  %693 = vmatpush.bf16.msrb.mxu1 %v3103_v26  ;;  %1363 = vmatpush.bf16.msrb.mxu0 %v3135_v27  ;;  %v3726_v21 = vpack.c.bf16 %v784_v18, %v783_v17  ;;  %v1045_v25 = vpack.c.bf16 %v1018_v20, %v1017_v19  ;;  %v3163_v27 = vld [vmem:[%s4101_s1 + $0x1e0] sm:$0xff] }
  0x4b   : > { %361 = vst [vmem:[#allocation2 + $0x111] sm:$0xff] %v3218_v28  ;;  %587 = vmatmul.bf16.gmra.mxu1 %v3653_v30  ;;  %607 = vmatmul.bf16.gmra.mxu2 %v3656_v31 }
  0x4c   : > { %368 = vst [vmem:[#allocation2 + $0x169] sm:$0xff] %v3233_v32  ;;  %627 = vmatmul.bf16.gmra.mxu3 %v3391_v33  ;;  %1825 = vmatpush.bf16.msra.mxu2 %v3158_v38  ;;  %v3147_v32 = vld [vmem:[%s4101_s1 + $0x160] sm:$0xff]  ;;  %v1020_v38 = vld [vmem:[#allocation2 + $0x98] sm:$0xff] }
  0x4d   : > { %567 = vmatmul.bf16.gmra.mxu0 %v3392_v34  ;;  %369 = vst [vmem:[#allocation2 + $0x171] sm:$0xff] %v3234_v35  ;;  %2059 = vmatpush.bf16.msra.mxu3 %v3166_v39  ;;  %v1011_v61 = vld [vmem:[#allocation2 + $0x30] sm:$0xff]  ;;  %v785_v35 = vld [vmem:[#allocation2 + $0x7a] sm:$0xff] }
  0x4e   : > { %344 = vst [vmem:[#allocation2 + $0x49] sm:$0xff] %v3185_v36  ;;  %1590 = vmatpush.bf16.msra.mxu1 %v3150_v40  ;;  %2293 = vmatpush.bf16.msra.mxu0 %v3174_v41  ;;  %v1012_v62 = vld [vmem:[#allocation2 + $0x38] sm:$0xff]  ;;  %v786_v36 = vld [vmem:[#allocation2 + $0x82] sm:$0xff] }
  0x4f   : > { %345 = vst [vmem:[#allocation2 + $0x51] sm:$0xff] %v3186_v37  ;;  %v3699_v0 = vpack.c.bf16 %v1012_v62, %v1011_v61  ;;  %v779_v1 = vld [vmem:[#allocation2 + $0x32] sm:$0xff]  ;;  %v780_v2 = vld [vmem:[#allocation2 + $0x3a] sm:$0xff]  ;;  %v3759_v41 = vpack.c.bf16 %v786_v36, %v785_v35 }
  0x50   : > { %1826 = vmatpush.bf16.msra.mxu2 %v3157_v56  ;;  %v3703_v5 = vpack.c.bf16 %v780_v2, %v779_v1  ;;  %v1019_v37 = vld [vmem:[#allocation2 + $0x90] sm:$0xff]  ;;  %v1021_v56 = vld [vmem:[#allocation2 + $0xa8] sm:$0xff]  ;;  %v3154_v62 = vld [vmem:[%s4101_s1 + $0x198] sm:$0xff] }
  0x51   : > { %2060 = vmatpush.bf16.msra.mxu3 %v3165_v57  ;;  %v1022_v57 = vld [vmem:[#allocation2 + $0xb0] sm:$0xff]  ;;  %v3162_v1 = vld [vmem:[%s4101_s1 + $0x1d8] sm:$0xff]  ;;  %v1026_v36 = vld [vmem:[#allocation2 + $0xe0] sm:$0xff] }
  0x52   : > { %1591 = vmatpush.bf16.msra.mxu1 %v3149_v58  ;;  %2294 = vmatpush.bf16.msra.mxu0 %v3173_v59  ;;  %v1025_v35 = vld [vmem:[#allocation2 + $0xd8] sm:$0xff] }
  0x54   : > { %1827 = vmatpush.bf16.msra.mxu2 %v3156_v7  ;;  %v3170_v7 = vld [vmem:[%s4101_s1 + $0x218] sm:$0xff] }
  0x55   : > { %v1013_v3 = vld [vmem:[#allocation2 + $0x48] sm:$0xff]  ;;  %2061 = vmatpush.bf16.msra.mxu3 %v3164_v8 }
  0x56   : > { %v1014_v4 = vld [vmem:[#allocation2 + $0x50] sm:$0xff]  ;;  %1592 = vmatpush.bf16.msra.mxu1 %v3148_v9  ;;  %2295 = vmatpush.bf16.msra.mxu0 %v3172_v10  ;;  %v1023_v10 = vld [vmem:[#allocation2 + $0xc0] sm:$0xff] }
  0x57   : > { %v1043_v6 = vpack.c.bf16 %v1014_v4, %v1013_v3  ;;  %v781_v11 = vld [vmem:[#allocation2 + $0x4a] sm:$0xff]  ;;  %v782_v12 = vld [vmem:[#allocation2 + $0x52] sm:$0xff] }
  0x58   : > { %v3719_v15 = vpack.c.bf16 %v782_v12, %v781_v11  ;;  %v789_v8 = vld [vmem:[#allocation2 + $0xaa] sm:$0xff]  ;;  %v790_v9 = vld [vmem:[#allocation2 + $0xb2] sm:$0xff] }
  0x59   : > { %2062 = vmatpush.bf16.msra.mxu3 %v3163_v27  ;;  %v1024_v11 = vld [vmem:[#allocation2 + $0xc8] sm:$0xff]  ;;  %v3811_v14 = vpack.c.bf16 %v790_v9, %v789_v8 }
  0x5a   : > { %1593 = vmatpush.bf16.msra.mxu1 %v3147_v32  ;;  %v3815_v18 = vpack.c.bf16 %v1024_v11, %v1023_v10  ;;  %v791_v32 = vld [vmem:[#allocation2 + $0xc2] sm:$0xff]  ;;  %v3169_v10 = vld [vmem:[%s4101_s1 + $0x210] sm:$0xff] }
  0x5b   : > { %592 = vmatmul.bf16.gmra.mxu1 %v3675_v42  ;;  %612 = vmatmul.bf16.gmra.mxu2 %v3678_v43 }
  0x5c   : > { %632 = vmatmul.bf16.gmra.mxu3 %v3395_v44 }
  0x5d   : > { %572 = vmatmul.bf16.gmra.mxu0 %v3396_v45  ;;  %2063 = vmatpush.bf16.msra.mxu3 %v3162_v1 }
  0x6b   : > { %694 = vmatmul.bf16.vlgmr.msrb.gmra.mxu1 %v3408_v54  ;;  %896 = vmatmul.bf16.vlgmr.msrb.gmra.mxu2 %v807_v52  ;;  %v788_v54 = vld [vmem:[#allocation2 + $0x9a] sm:$0xff] }
  0x6c   : > { %1130 = vmatmul.bf16.vlgmr.msrb.gmra.mxu3 %v1041_v53 }
  0x6d   : > { %1364 = vmatmul.bf16.vlgmr.msrb.gmra.mxu0 %v3597_v55  ;;  %v777_v55 = vld [vmem:[#allocation2 + $0x1a] sm:$0xff] }
  0x6e   : > { %v3697_v63 = vpack.c.bf16 %v778_v60, %v777_v55 }
  0x7b   : > { %699 = vmatmul.bf16.gmra.mxu1 %v1041_v53  ;;  %901 = vmatmul.bf16.gmra.mxu2 %v3697_v63  ;;  %v787_v53 = vld [vmem:[#allocation2 + $0x92] sm:$0xff] }
  0x7c   : > { %1135 = vmatmul.bf16.gmra.mxu3 %v3699_v0  ;;  %v3779_v55 = vpack.c.bf16 %v788_v54, %v787_v53 }
  0x7d   : > { %1369 = vmatmul.bf16.gmra.mxu0 %v3392_v34  ;;  %v3171_v34 = vld [vmem:[%s4101_s1 + $0x220] sm:$0xff] }
  0x7e   : > { %2296 = vmatpush.bf16.msra.mxu0 %v3171_v34  ;;  %v792_v34 = vld [vmem:[#allocation2 + $0xca] sm:$0xff] }
  0x82   : > { %2297 = vmatpush.bf16.msra.mxu0 %v3170_v7 }
  0x86   : > { %2298 = vmatpush.bf16.msra.mxu0 %v3169_v10 }
  0x8b   : > { %704 = vmatmul.bf16.gmra.mxu1 %v3699_v0  ;;  %906 = vmatmul.bf16.gmra.mxu2 %v3703_v5 }
  0x8c   : > { %1140 = vmatmul.bf16.gmra.mxu3 %v1043_v6 }
  0x8d   : > { %1374 = vmatmul.bf16.gmra.mxu0 %v3396_v45  ;;  %v1046_v45 = vpack.c.bf16 %v1020_v38, %v1019_v37 }
  0x9b   : > { %709 = vmatmul.bf16.gmra.mxu1 %v1043_v6  ;;  %911 = vmatmul.bf16.gmra.mxu2 %v3719_v15 }
  0x9c   : > { %1145 = vmatmul.bf16.gmra.mxu3 %v3721_v16 }
  0x9d   : > { %1379 = vmatmul.bf16.gmra.mxu0 %v3513_v22  ;;  %v3155_v22 = vld [vmem:[%s4101_s1 + $0x1a0] sm:$0xff] }
  0x9e   : > { %1828 = vmatpush.bf16.msra.mxu2 %v3155_v22 }
  0xa2   : > { %1829 = vmatpush.bf16.msra.mxu2 %v3154_v62 }
  0xa8   : > { %v3728_v24 = vpop.f32.mrf.mxu1 }
  0xaa   : > { %v3730_v26 = vpop.f32.mrf.mxu0 }
  0xab   : > { %714 = vmatmul.bf16.gmra.mxu1 %v3721_v16  ;;  %916 = vmatmul.bf16.gmra.mxu2 %v3726_v21 }
  0xac   : > { %1150 = vmatmul.bf16.gmra.mxu3 %v1045_v25 }
  0xad   : > { %1384 = vmatmul.bf16.gmra.mxu0 %v3590_v50 }
  0xae   : > { %v3741_v28 = vpop.f32.mrf.mxu2 }
  0xaf   : > { %v3743_v29 = vpop.f32.mrf.mxu3 }
  0xb0   : > { %v3748_v33 = vpop.f32.mrf.mxu1 }
  0xb2   : > { %v3750_v50 = vpop.f32.mrf.mxu0 }
  0xb6   : > { %v3755_v39 = vpop.f32.mrf.mxu2 }
  0xb7   : > { %v3757_v40 = vpop.f32.mrf.mxu3 }
  0xb8   : > { %v3761_v44 = vpop.f32.mrf.mxu1 }
  0xba   : > { %v3763_v46 = vpop.f32.mrf.mxu0 }
  0xbb   : > { %719 = vmatmul.bf16.gmra.mxu1 %v1045_v25  ;;  %921 = vmatmul.bf16.gmra.mxu2 %v3759_v41 }
  0xbc   : > { %1155 = vmatmul.bf16.gmra.mxu3 %v1046_v45 }
  0xbd   : > { %1389 = vmatmul.bf16.gmra.mxu0 %v3653_v30  ;;  %v1047_v30 = vpack.c.bf16 %v1022_v57, %v1021_v56  ;;  %v3153_v57 = vld [vmem:[%s4101_s1 + $0x190] sm:$0xff] }
  0xbe   : > { %v3767_v47 = vpop.f32.mrf.mxu2  ;;  %1830 = vmatpush.bf16.msra.mxu2 %v3153_v57 }
  0xbf   : > { %v3769_v48 = vpop.f32.mrf.mxu3 }
  0xc0   : > { %v3771_v49 = vpop.f32.mrf.mxu1 }
  0xc2   : > { %v3773_v52 = vpop.f32.mrf.mxu0 }
  0xc6   : > { %v3775_v58 = vpop.f32.mrf.mxu2 }
  0xc7   : > { %v3777_v59 = vpop.f32.mrf.mxu3 }
  0xc8   : > { %v3781_v60 = vpop.f32.mrf.mxu1 }
  0xca   : > { %v3783_v61 = vpop.f32.mrf.mxu0 }
  0xcb   : > { %724 = vmatmul.bf16.gmra.mxu1 %v1046_v45  ;;  %926 = vmatmul.bf16.gmra.mxu2 %v3779_v55  ;;  %v3834_v45 = vpack.c.bf16 %v792_v34, %v791_v32  ;;  %v793_v32 = vld [vmem:[#allocation2 + $0xda] sm:$0xff]  ;;  %v794_v34 = vld [vmem:[#allocation2 + $0xe2] sm:$0xff] }
  0xcc   : > { %1160 = vmatmul.bf16.gmra.mxu3 %v1047_v30  ;;  %v3855_v57 = vpack.c.bf16 %v794_v34, %v793_v32 }
  0xcd   : > { %1394 = vmatmul.bf16.gmra.mxu0 %v3675_v42  ;;  %v3146_v42 = vld [vmem:[%s4101_s1 + $0x158] sm:$0xff] }
  0xce   : > { %v3793_v2 = vpop.f32.mrf.mxu2  ;;  %1594 = vmatpush.bf16.msra.mxu1 %v3146_v42 }
  0xcf   : > { %v3795_v3 = vpop.f32.mrf.mxu3 }
  0xd0   : > { %v3797_v4 = vpop.f32.mrf.mxu1 }
  0xd2   : > { %v3799_v6 = vpop.f32.mrf.mxu0 }
  0xd6   : > { %v3807_v12 = vpop.f32.mrf.mxu2 }
  0xd7   : > { %v3809_v13 = vpop.f32.mrf.mxu3 }
  0xd8   : > { %v3813_v17 = vpop.f32.mrf.mxu1 }
  0xda   : > { %v3817_v19 = vpop.f32.mrf.mxu0 }
  0xdb   : > { %729 = vmatmul.bf16.gmra.mxu1 %v1047_v30  ;;  %931 = vmatmul.bf16.gmra.mxu2 %v3811_v14  ;;  %v3161_v30 = vld [vmem:[%s4101_s1 + $0x1d0] sm:$0xff] }
  0xdc   : > { %1165 = vmatmul.bf16.gmra.mxu3 %v3815_v18 }
  0xdd   : > { %1399 = vmatmul.bf16.gmra.mxu0 %v3516_v23  ;;  %v1049_v23 = vpack.c.bf16 %v1026_v36, %v1025_v35  ;;  %2064 = vmatpush.bf16.msra.mxu3 %v3161_v30  ;;  %v1027_v35 = vld [vmem:[#allocation2 + $0xf0] sm:$0xff]  ;;  %v1028_v36 = vld [vmem:[#allocation2 + $0xf8] sm:$0xff] }
  0xde   : > { %v3822_v20 = vpop.f32.mrf.mxu2 }
  0xdf   : > { %v3824_v25 = vpop.f32.mrf.mxu3 }
  0xe0   : > { %v3826_v22 = vpop.f32.mrf.mxu1 }
  0xe2   : > { %v3828_v27 = vpop.f32.mrf.mxu0 }
  0xe6   : > { %v3830_v37 = vpop.f32.mrf.mxu2 }
  0xe7   : > { %v3832_v38 = vpop.f32.mrf.mxu3 }
  0xe8   : > { %v695_v53 = vpop.f32.mrf.mxu1 }
  0xe9   : > { %v696_v54 = vadd.f32 %v695_v53, %v3730_v26 }
  0xea   : > { %v1365_v56 = vpop.f32.mrf.mxu0 }
  0xeb   : > { %734 = vmatmul.bf16.gmra.mxu1 %v3815_v18  ;;  %936 = vmatmul.bf16.gmra.mxu2 %v3834_v45 }
  0xec   : > { %1170 = vmatmul.bf16.gmra.mxu3 %v1049_v23 }
  0xed   : > { %1404 = vmatmul.bf16.gmra.mxu0 %v3593_v51  ;;  %v3145_v51 = vld [vmem:[%s4101_s1 + $0x150] sm:$0xff] }
  0xee   : > { %v897_v62 = vpop.f32.mrf.mxu2  ;;  %1595 = vmatpush.bf16.msra.mxu1 %v3145_v51 }
  0xef   : > { %v977_v26 = vadd.f32 %v897_v62, %v696_v54  ;;  %v1131_v1 = vpop.f32.mrf.mxu3  ;;  %v3857_v62 = vpack.c.bf16 %v1028_v36, %v1027_v35 }
  0xf0   : > { %v697_v42 = vpop.f32.mrf.mxu1 }
  0xf1   : > { %v1211_v7 = vadd.f32 %v1131_v1, %v977_v26  ;;  %v698_v8 = vadd.f32 %v697_v42, %v3750_v50 }
  0xf2   : > { %v1367_v9 = vpop.f32.mrf.mxu0 }
  0xf3   : > { %v3853_v11 = vadd.f32 %v1365_v56, %v1211_v7 }
  0xf6   : > { %v899_v53 = vpop.f32.mrf.mxu2 }
  0xf7   : > { %v978_v54 = vadd.f32 %v899_v53, %v698_v8  ;;  %v1133_v50 = vpop.f32.mrf.mxu3  ;;  %v1029_v53 = vld [vmem:[#allocation2 + $0x108] sm:$0xff] }
  0xf8   : > { %v700_v30 = vpop.f32.mrf.mxu1 }
  0xf9   : > { %v1212_v26 = vadd.f32 %v1133_v50, %v978_v54  ;;  %v701_v1 = vadd.f32 %v700_v30, %v3763_v46  ;;  %v795_v46 = vld [vmem:[#allocation2 + $0xf2] sm:$0xff] }
  0xfa   : > { %v1370_v42 = vpop.f32.mrf.mxu0  ;;  %v1030_v54 = vld [vmem:[#allocation2 + $0x110] sm:$0xff] }
  0xfb   : > { %739 = vmatmul.bf16.gmra.mxu1 %v1049_v23  ;;  %941 = vmatmul.bf16.gmra.mxu2 %v3855_v57  ;;  %v3861_v56 = vadd.f32 %v1367_v9, %v1212_v26  ;;  %v796_v23 = vld [vmem:[#allocation2 + $0xfa] sm:$0xff] }
  0xfc   : > { %1175 = vmatmul.bf16.gmra.mxu3 %v3857_v62  ;;  %v3868_v26 = vpack.c.bf16 %v796_v23, %v795_v46 }
  0xfd   : > { %4107 = vst [vmem:[#allocation3_spill] sm:$0xff] %v3861_v56  ;;  %1409 = vmatmul.bf16.gmra.mxu0 %v3656_v31  ;;  %v3870_v56 = vpack.c.bf16 %v1030_v54, %v1029_v53  ;;  %v3168_v53 = vld [vmem:[%s4101_s1 + $0x208] sm:$0xff] }
  0xfe   : > { %v902_v7 = vpop.f32.mrf.mxu2  ;;  %2299 = vmatpush.bf16.msra.mxu0 %v3168_v53 }
  0xff   : > { %v979_v8 = vadd.f32 %v902_v7, %v701_v1  ;;  %v1136_v51 = vpop.f32.mrf.mxu3 }
 0x100   : > { %v702_v10 = vpop.f32.mrf.mxu1 }
 0x101   : > { %v1213_v32 = vadd.f32 %v1136_v51, %v979_v8  ;;  %v703_v34 = vadd.f32 %v702_v10, %v3773_v52  ;;  %v3160_v51 = vld [vmem:[%s4101_s1 + $0x1c8] sm:$0xff] }
 0x102   : > { %v1372_v35 = vpop.f32.mrf.mxu0  ;;  %2065 = vmatpush.bf16.msra.mxu3 %v3160_v51 }
 0x103   : > { %v3866_v36 = vadd.f32 %v1370_v42, %v1213_v32  ;;  %v3152_v42 = vld [vmem:[%s4101_s1 + $0x188] sm:$0xff] }
 0x104   : > { %1831 = vmatpush.bf16.msra.mxu2 %v3152_v42 }
 0x105   : > { %4108 = vst [vmem:[#allocation4_spill] sm:$0xff] %v3866_v36 }
 0x106   : > { %v904_v9 = vpop.f32.mrf.mxu2 }
 0x107   : > { %v980_v50 = vadd.f32 %v904_v9, %v703_v34  ;;  %v1138_v30 = vpop.f32.mrf.mxu3  ;;  %v797_v9 = vld [vmem:[#allocation2 + $0x10a] sm:$0xff] }
 0x108   : > { %v705_v31 = vpop.f32.mrf.mxu1 }
 0x109   : > { %v1214_v1 = vadd.f32 %v1138_v30, %v980_v50  ;;  %v706_v7 = vadd.f32 %v705_v31, %v3783_v61  ;;  %v798_v50 = vld [vmem:[#allocation2 + $0x112] sm:$0xff]  ;;  %v1031_v30 = vld [vmem:[#allocation2 + $0x120] sm:$0xff]  ;;  %v1032_v31 = vld [vmem:[#allocation2 + $0x128] sm:$0xff] }
 0x10a   : > { %v1375_v8 = vpop.f32.mrf.mxu0 }
 0x10b   : > { %744 = vmatmul.bf16.gmra.mxu1 %v3857_v62  ;;  %946 = vmatmul.bf16.gmra.mxu2 %v3868_v26  ;;  %v3875_v52 = vadd.f32 %v1372_v35, %v1214_v1  ;;  %v1265_v1 = vld [vmem:[#allocation2 + $0x121] sm:$0xff] }
 0x10c   : > { %1180 = vmatmul.bf16.gmra.mxu3 %v3870_v56 }
 0x10d   : > { %4109 = vst [vmem:[#allocation5_spill] sm:$0xff] %v3875_v52  ;;  %1414 = vmatmul.bf16.gmra.mxu0 %v3678_v43  ;;  %v3144_v43 = vld [vmem:[%s4101_s1 + $0x148] sm:$0xff] }
 0x10e   : > { %v907_v61 = vpop.f32.mrf.mxu2  ;;  %1596 = vmatpush.bf16.msra.mxu1 %v3144_v43 }
 0x10f   : > { %v981_v10 = vadd.f32 %v907_v61, %v706_v7  ;;  %v1141_v32 = vpop.f32.mrf.mxu3  ;;  %v1266_v7 = vld [vmem:[#allocation2 + $0x129] sm:$0xff]  ;;  %v3894_v61 = vpack.c.bf16 %v798_v50, %v797_v9 }
 0x110   : > { %v707_v34 = vpop.f32.mrf.mxu1 }
 0x111   : > { %v1215_v35 = vadd.f32 %v1141_v32, %v981_v10  ;;  %v708_v46 = vadd.f32 %v707_v34, %v3799_v6  ;;  %v3896_v32 = vpack.c.bf16 %v1032_v31, %v1031_v30  ;;  %v3898_v34 = vpack.c.bf16 %v1266_v7, %v1265_v1 }
 0x112   : > { %v1377_v23 = vpop.f32.mrf.mxu0 }
 0x113   : > { %v3892_v54 = vadd.f32 %v1375_v8, %v1215_v35  ;;  %4111 = vst [vmem:[#allocation7_spill] sm:$0xff] %v3898_v34 }
 0x115   : > { %4110 = vst [vmem:[#allocation6_spill] sm:$0xff] %v3892_v54 }
 0x116   : > { %v909_v6 = vpop.f32.mrf.mxu2 }
 0x117   : > { %v982_v42 = vadd.f32 %v909_v6, %v708_v46  ;;  %v1143_v51 = vpop.f32.mrf.mxu3  ;;  %v799_v6 = vld [vmem:[#allocation2 + $0x122] sm:$0xff] }
 0x118   : > { %v710_v10 = vpop.f32.mrf.mxu1 }
 0x119   : > { %v1216_v43 = vadd.f32 %v1143_v51, %v982_v42  ;;  %v711_v8 = vadd.f32 %v710_v10, %v3817_v19  ;;  %v800_v42 = vld [vmem:[#allocation2 + $0x12a] sm:$0xff]  ;;  %v1033_v51 = vld [vmem:[#allocation2 + $0x138] sm:$0xff]  ;;  %v1034_v10 = vld [vmem:[#allocation2 + $0x140] sm:$0xff] }
 0x11a   : > { %v1380_v35 = vpop.f32.mrf.mxu0 }
 0x11b   : > { %749 = vmatmul.bf16.gmra.mxu1 %v3870_v56  ;;  %951 = vmatmul.bf16.gmra.mxu2 %v3894_v61  ;;  %v3903_v53 = vadd.f32 %v1377_v23, %v1216_v43  ;;  %v1267_v23 = vld [vmem:[#allocation2 + $0x139] sm:$0xff]  ;;  %v1268_v43 = vld [vmem:[#allocation2 + $0x141] sm:$0xff] }
 0x11c   : > { %1185 = vmatmul.bf16.gmra.mxu3 %v3896_v32  ;;  %v1287_v36 = vpack.c.bf16 %v1268_v43, %v1267_v23  ;;  %v3167_v23 = vld [vmem:[%s4101_s1 + $0x200] sm:$0xff] }
 0x11d   : > { %4112 = vst [vmem:[#allocation8_spill] sm:$0xff] %v3903_v53  ;;  %1419 = vmatmul.bf16.gmra.mxu0 %v3898_v34  ;;  %v3910_v34 = vpack.c.bf16 %v800_v42, %v799_v6  ;;  %v801_v43 = vld [vmem:[#allocation2 + $0x13a] sm:$0xff] }
 0x11e   : > { %v912_v46 = vpop.f32.mrf.mxu2  ;;  %2300 = vmatpush.bf16.msra.mxu0 %v3167_v23 }
 0x11f   : > { %v983_v9 = vadd.f32 %v912_v46, %v711_v8  ;;  %v1146_v50 = vpop.f32.mrf.mxu3  ;;  %v1053_v46 = vpack.c.bf16 %v1034_v10, %v1033_v51  ;;  %v3143_v10 = vld [vmem:[%s4101_s1 + $0x140] sm:$0xff] }
 0x120   : > { %v712_v30 = vpop.f32.mrf.mxu1  ;;  %1597 = vmatpush.bf16.msra.mxu1 %v3143_v10 }
 0x121   : > { %v1217_v31 = vadd.f32 %v1146_v50, %v983_v9  ;;  %v713_v1 = vadd.f32 %v712_v30, %v3828_v27  ;;  %v3159_v50 = vld [vmem:[%s4101_s1 + $0x1c0] sm:$0xff] }
 0x122   : > { %v1382_v7 = vpop.f32.mrf.mxu0  ;;  %2066 = vmatpush.bf16.msra.mxu3 %v3159_v50  ;;  %v1036_v50 = vld [vmem:[#allocation2 + $0x158] sm:$0xff] }
 0x123   : > { %v3908_v19 = vadd.f32 %v1380_v35, %v1217_v31 }
 0x125   : > { %4113 = vst [vmem:[#allocation9_spill] sm:$0xff] %v3908_v19 }
 0x126   : > { %v914_v53 = vpop.f32.mrf.mxu2 }
 0x127   : > { %v984_v54 = vadd.f32 %v914_v53, %v713_v1  ;;  %v1148_v52 = vpop.f32.mrf.mxu3  ;;  %v3151_v53 = vld [vmem:[%s4101_s1 + $0x180] sm:$0xff]  ;;  %v3333_v1 = vld [vmem:[%s3465_s25 + $0x78] sm:$0xff]  }
 0x128   : > { %v715_v8 = vpop.f32.mrf.mxu1  ;;  %1832 = vmatpush.bf16.msra.mxu2 %v3151_v53  ;;  %v3237_v6 = vunpack.c.l.bf16 %v3333_v1  ;;  %v3238_v42 = vunpack.c.h.bf16 %v3333_v1 }
 0x129   : > { %v1218_v9 = vadd.f32 %v1148_v52, %v984_v54  ;;  %v716_v30 = vadd.f32 %v715_v8, %v3728_v24  ;;  %v802_v8 = vld [vmem:[#allocation2 + $0x142] sm:$0xff] }
 0x12a   : > { %v1385_v27 = vpop.f32.mrf.mxu0  ;;  %370 = vst [vmem:[#allocation2 + $0x181] sm:$0xff] %v3237_v6 }
 0x12b   : > { %754 = vmatmul.bf16.gmra.mxu1 %v3896_v32  ;;  %956 = vmatmul.bf16.gmra.mxu2 %v3910_v34  ;;  %v3914_v35 = vadd.f32 %v1382_v7, %v1218_v9  ;;  %371 = vst [vmem:[#allocation2 + $0x189] sm:$0xff] %v3238_v42  ;;  %v1035_v9 = vld [vmem:[#allocation2 + $0x150] sm:$0xff] }
 0x12c   : > { %1190 = vmatmul.bf16.gmra.mxu3 %v1053_v46  ;;  %v1054_v6 = vpack.c.bf16 %v1036_v50, %v1035_v9  ;;  %v803_v9 = vld [vmem:[#allocation2 + $0x152] sm:$0xff]  ;;  %v804_v50 = vld [vmem:[#allocation2 + $0x15a] sm:$0xff] }
 0x12d   : > { %4114 = vst [vmem:[#allocation10_spill] sm:$0xff] %v3914_v35  ;;  %1424 = vmatmul.bf16.gmra.mxu0 %v1287_v36  ;;  %v3933_v35 = vpack.c.bf16 %v802_v8, %v801_v43 }
 0x12e   : > { %v917_v52 = vpop.f32.mrf.mxu2 }
 0x12f   : > { %v985_v54 = vadd.f32 %v917_v52, %v716_v30  ;;  %v1151_v31 = vpop.f32.mrf.mxu3  ;;  %v1269_v30 = vld [vmem:[#allocation2 + $0x151] sm:$0xff]  ;;  %v1270_v52 = vld [vmem:[#allocation2 + $0x159] sm:$0xff] }
 0x130   : > { %v717_v7 = vpop.f32.mrf.mxu1  ;;  %v1288_v10 = vpack.c.bf16 %v1270_v52, %v1269_v30  ;;  %v1037_v30 = vld [vmem:[#allocation2 + $0x168] sm:$0xff]  ;;  %v1038_v52 = vld [vmem:[#allocation2 + $0x170] sm:$0xff] }
 0x131   : > { %v1219_v36 = vadd.f32 %v1151_v31, %v985_v54  ;;  %v718_v53 = vadd.f32 %v717_v7, %v3748_v33 }
 0x132   : > { %v1387_v51 = vpop.f32.mrf.mxu0 }
 0x133   : > { %v3930_v24 = vadd.f32 %v1385_v27, %v1219_v36 }
 0x135   : > { %4115 = vst [vmem:[#allocation11_spill] sm:$0xff] %v3930_v24 }
 0x136   : > { %v919_v54 = vpop.f32.mrf.mxu2 }
 0x137   : > { %v986_v31 = vadd.f32 %v919_v54, %v718_v53  ;;  %v1153_v1 = vpop.f32.mrf.mxu3 }
 0x138   : > { %v720_v19 = vpop.f32.mrf.mxu1 }
 0x139   : > { %v1220_v23 = vadd.f32 %v1153_v1, %v986_v31  ;;  %v721_v33 = vadd.f32 %v720_v19, %v3761_v44  ;;  %v1272_v31 = vld [vmem:[#allocation2 + $0x171] sm:$0xff]  ;;  %v3942_v44 = vpack.c.bf16 %v804_v50, %v803_v9 }
 0x13a   : > { %v1390_v42 = vpop.f32.mrf.mxu0 }
 0x13b   : > { %759 = vmatmul.bf16.gmra.mxu1 %v1053_v46  ;;  %961 = vmatmul.bf16.gmra.mxu2 %v3933_v35  ;;  %v3936_v27 = vadd.f32 %v1387_v51, %v1220_v23  ;;  %v1271_v51 = vld [vmem:[#allocation2 + $0x169] sm:$0xff] }
 0x13c   : > { %1195 = vmatmul.bf16.gmra.mxu3 %v1054_v6 }
 0x13d   : > { %1429 = vmatmul.bf16.gmra.mxu0 %v1288_v10 }
 0x13e   : > { %v922_v7 = vpop.f32.mrf.mxu2 }
 0x13f   : > { %v987_v36 = vadd.f32 %v922_v7, %v721_v33  ;;  %v1156_v53 = vpop.f32.mrf.mxu3  ;;  %v1055_v33 = vpack.c.bf16 %v1038_v52, %v1037_v30  ;;  %v1289_v7 = vpack.c.bf16 %v1272_v31, %v1271_v51  ;;  %v805_v52 = vld [vmem:[#allocation2 + $0x16a] sm:$0xff]  ;;  %v806_v51 = vld [vmem:[#allocation2 + $0x172] sm:$0xff]  ;;  %v1039_v31 = vld [vmem:[#allocation2 + $0x180] sm:$0xff] }
 0x140   : > { %v722_v54 = vpop.f32.mrf.mxu1 }
 0x141   : > { %v1221_v43 = vadd.f32 %v1156_v53, %v987_v36  ;;  %v723_v46 = vadd.f32 %v722_v54, %v3771_v49 }
 0x142   : > { %v1392_v8 = vpop.f32.mrf.mxu0 }
 0x143   : > { %v3939_v24 = vadd.f32 %v1390_v42, %v1221_v43 }
 0x146   : > { %v924_v1 = vpop.f32.mrf.mxu2 }
 0x147   : > { %v988_v10 = vadd.f32 %v924_v1, %v723_v46  ;;  %v1158_v23 = vpop.f32.mrf.mxu3 }
 0x148   : > { %v725_v19 = vpop.f32.mrf.mxu1 }
 0x149   : > { %v1222_v36 = vadd.f32 %v1158_v23, %v988_v10  ;;  %v726_v49 = vadd.f32 %v725_v19, %v3781_v60 }
 0x14a   : > { %v1395_v53 = vpop.f32.mrf.mxu0 }
 0x14b   : > { %764 = vmatmul.bf16.gmra.mxu1 %v1054_v6  ;;  %966 = vmatmul.bf16.gmra.mxu2 %v3942_v44  ;;  %v3945_v42 = vadd.f32 %v1392_v8, %v1222_v36  ;;  %v1040_v8 = vld [vmem:[#allocation2 + $0x188] sm:$0xff]  ;;  %v3951_v36 = vpack.c.bf16 %v806_v51, %v805_v52 }
 0x14c   : > { %1200 = vmatmul.bf16.gmra.mxu3 %v1055_v33  ;;  %v1056_v19 = vpack.c.bf16 %v1040_v8, %v1039_v31  ;;  %v1946_v8 = vld [vmem:[#allocation2 + $0x31] sm:$0xff] }
 0x14d   : > { %4116 = vst [vmem:[#allocation12_spill] sm:$0xff] %v3945_v42  ;;  %1434 = vmatmul.bf16.gmra.mxu0 %v1289_v7 }
 0x14e   : > { %v927_v54 = vpop.f32.mrf.mxu2 }
 0x14f   : > { %v989_v43 = vadd.f32 %v927_v54, %v726_v49  ;;  %v1161_v46 = vpop.f32.mrf.mxu3  ;;  %v3397_v49 = vld [vmem:[%s3465_s25 + $0x78] sm:$0xff] }
 0x150   : > { %v727_v9 = vpop.f32.mrf.mxu1 }
 0x151   : > { %v1223_v50 = vadd.f32 %v1161_v46, %v989_v43  ;;  %v728_v6 = vadd.f32 %v727_v9, %v3797_v4 }
 0x152   : > { %v1397_v1 = vpop.f32.mrf.mxu0 }
 0x153   : > { %v3948_v30 = vadd.f32 %v1395_v53, %v1223_v50 }
 0x156   : > { %v929_v10 = vpop.f32.mrf.mxu2 }
 0x157   : > { %v990_v23 = vadd.f32 %v929_v10, %v728_v6  ;;  %v1163_v7 = vpop.f32.mrf.mxu3 }
 0x158   : > { %v730_v60 = vpop.f32.mrf.mxu1 }
 0x159   : > { %v1224_v54 = vadd.f32 %v1163_v7, %v990_v23  ;;  %v731_v4 = vadd.f32 %v730_v60, %v3813_v17 }
 0x15a   : > { %v1400_v42 = vpop.f32.mrf.mxu0 }
 0x15b   : > { %769 = vmatmul.bf16.gmra.mxu1 %v1055_v33  ;;  %971 = vmatmul.bf16.gmra.mxu2 %v3951_v36  ;;  %v3955_v53 = vadd.f32 %v1397_v1, %v1224_v54  ;;  %v1947_v33 = vld [vmem:[#allocation2 + $0x39] sm:$0xff] }
 0x15c   : > { %1205 = vmatmul.bf16.gmra.mxu3 %v1056_v19  ;;  %v1978_v19 = vpack.c.bf16 %v1947_v33, %v1946_v8  ;;  %v1715_v8 = vld [vmem:[#allocation2 + $0x50] sm:$0xff] }
 0x15d   : > { %1439 = vmatmul.bf16.gmra.mxu0 %v3397_v49  ;;  %v1949_v33 = vld [vmem:[#allocation2 + $0x51] sm:$0xff] }
 0x15e   : > { %v932_v43 = vpop.f32.mrf.mxu2 }
 0x15f   : > { %v991_v46 = vadd.f32 %v932_v43, %v731_v4  ;;  %v1166_v9 = vpop.f32.mrf.mxu3 }
 0x160   : > { %v732_v50 = vpop.f32.mrf.mxu1 }
 0x161   : > { %v1225_v52 = vadd.f32 %v1166_v9, %v991_v46  ;;  %v733_v31 = vadd.f32 %v732_v50, %v3826_v22  ;;  %v1479_v50 = vld [vmem:[#allocation2 + $0x32] sm:$0xff] }
 0x162   : > { %v1402_v51 = vpop.f32.mrf.mxu0 }
 0x163   : > { %v3958_v6 = vadd.f32 %v1400_v42, %v1225_v52 }
 0x166   : > { %v934_v10 = vpop.f32.mrf.mxu2 }
 0x167   : > { %v992_v23 = vadd.f32 %v934_v10, %v733_v31  ;;  %v1168_v1 = vpop.f32.mrf.mxu3  ;;  %v1480_v31 = vld [vmem:[#allocation2 + $0x3a] sm:$0xff] }
 0x168   : > { %v735_v7 = vpop.f32.mrf.mxu1 }
 0x169   : > { %v1226_v49 = vadd.f32 %v1168_v1, %v992_v23  ;;  %v736_v22 = vadd.f32 %v735_v7, %v3741_v28  ;;  %v1510_v28 = vpack.c.bf16 %v1480_v31, %v1479_v50 }
 0x16a   : > { %v1405_v54 = vpop.f32.mrf.mxu0 }
 0x16b   : > { %1598 = vmatmul.bf16.vlgmr.msra.gmra.mxu1 %v3697_v63  ;;  %1833 = vmatmul.bf16.vlgmr.msra.gmra.mxu2 %v3699_v0  ;;  %v3963_v17 = vadd.f32 %v1402_v51, %v1226_v49  ;;  %v1714_v63 = vld [vmem:[#allocation2 + $0x48] sm:$0xff] }
 0x16c   : > { %2067 = vmatmul.bf16.vlgmr.msra.gmra.mxu3 %v1978_v19  ;;  %v1948_v51 = vld [vmem:[#allocation2 + $0x49] sm:$0xff]  ;;  %v1745_v1 = vpack.c.bf16 %v1715_v8, %v1714_v63  ;;  %v1950_v8 = vld [vmem:[#allocation2 + $0x61] sm:$0xff] }
 0x16d   : > { %2301 = vmatmul.bf16.vlgmr.msra.gmra.mxu0 %v3703_v5  ;;  %v1979_v19 = vpack.c.bf16 %v1949_v33, %v1948_v51 }
 0x16e   : > { %v937_v42 = vpop.f32.mrf.mxu2 }
 0x16f   : > { %v993_v60 = vadd.f32 %v937_v42, %v736_v22  ;;  %v1171_v4 = vpop.f32.mrf.mxu3 }
 0x170   : > { %v737_v43 = vpop.f32.mrf.mxu1 }
 0x171   : > { %v1227_v46 = vadd.f32 %v1171_v4, %v993_v60  ;;  %v738_v0 = vadd.f32 %v737_v43, %v3755_v39 }
 0x172   : > { %v1407_v9 = vpop.f32.mrf.mxu0 }
 0x173   : > { %v3967_v52 = vadd.f32 %v1405_v54, %v1227_v46 }
 0x176   : > { %v939_v10 = vpop.f32.mrf.mxu2 }
 0x177   : > { %v994_v5 = vadd.f32 %v939_v10, %v738_v0  ;;  %v1173_v23 = vpop.f32.mrf.mxu3  ;;  %v1951_v0 = vld [vmem:[#allocation2 + $0x69] sm:$0xff] }
 0x178   : > { %v740_v7 = vpop.f32.mrf.mxu1 }
 0x179   : > { %v1228_v49 = vadd.f32 %v1173_v23, %v994_v5  ;;  %v741_v39 = vadd.f32 %v740_v7, %v3767_v47  ;;  %v1980_v5 = vpack.c.bf16 %v1951_v0, %v1950_v8 }
 0x17a   : > { %v1410_v22 = vpop.f32.mrf.mxu0 }
 0x17b   : > { %1603 = vmatmul.bf16.gmra.mxu1 %v1510_v28  ;;  %1838 = vmatmul.bf16.gmra.mxu2 %v1745_v1  ;;  %v3970_v54 = vadd.f32 %v1407_v9, %v1228_v49 }
 0x17c   : > { %2072 = vmatmul.bf16.gmra.mxu3 %v1979_v19 }
 0x17d   : > { %2306 = vmatmul.bf16.gmra.mxu0 %v3719_v15 }
 0x17e   : > { %v942_v42 = vpop.f32.mrf.mxu2 }
 0x17f   : > { %v995_v60 = vadd.f32 %v942_v42, %v741_v39  ;;  %v1176_v4 = vpop.f32.mrf.mxu3  ;;  %v1483_v42 = vld [vmem:[#allocation2 + $0x62] sm:$0xff] }
 0x180   : > { %v742_v43 = vpop.f32.mrf.mxu1 }
 0x181   : > { %v1229_v46 = vadd.f32 %v1176_v4, %v995_v60  ;;  %v743_v63 = vadd.f32 %v742_v43, %v3775_v58  ;;  %v1484_v4 = vld [vmem:[#allocation2 + $0x6a] sm:$0xff]  ;;  %v1719_v43 = vld [vmem:[#allocation2 + $0x80] sm:$0xff] }
 0x182   : > { %v1412_v50 = vpop.f32.mrf.mxu0 }
 0x183   : > { %v3974_v31 = vadd.f32 %v1410_v22, %v1229_v46  ;;  %v1952_v46 = vld [vmem:[#allocation2 + $0x79] sm:$0xff] }
 0x186   : > { %v944_v51 = vpop.f32.mrf.mxu2 }
 0x187   : > { %v996_v9 = vadd.f32 %v944_v51, %v743_v63  ;;  %v1178_v33 = vpop.f32.mrf.mxu3 }
 0x188   : > { %v745_v10 = vpop.f32.mrf.mxu1 }
 0x189   : > { %v1230_v23 = vadd.f32 %v1178_v33, %v996_v9  ;;  %v746_v58 = vadd.f32 %v745_v10, %v3793_v2  ;;  %v1512_v2 = vpack.c.bf16 %v1484_v4, %v1483_v42  ;;  %v1486_v42 = vld [vmem:[#allocation2 + $0x82] sm:$0xff]  ;;  %v1720_v4 = vld [vmem:[#allocation2 + $0x90] sm:$0xff] }
 0x18a   : > { %v1415_v28 = vpop.f32.mrf.mxu0 }
 0x18b   : > { %1608 = vmatmul.bf16.gmra.mxu1 %v3719_v15  ;;  %1843 = vmatmul.bf16.gmra.mxu2 %v3721_v16  ;;  %v3979_v47 = vadd.f32 %v1412_v50, %v1230_v23  ;;  %v1718_v15 = vld [vmem:[#allocation2 + $0x78] sm:$0xff]  ;;  %v1953_v50 = vld [vmem:[#allocation2 + $0x81] sm:$0xff] }
 0x18c   : > { %2077 = vmatmul.bf16.gmra.mxu3 %v1980_v5  ;;  %v1747_v0 = vpack.c.bf16 %v1719_v43, %v1718_v15  ;;  %v1981_v9 = vpack.c.bf16 %v1953_v50, %v1952_v46  ;;  %v1721_v15 = vld [vmem:[#allocation2 + $0x98] sm:$0xff] }
 0x18d   : > { %2311 = vmatmul.bf16.gmra.mxu0 %v3726_v21  ;;  %v1954_v43 = vld [vmem:[#allocation2 + $0x91] sm:$0xff] }
 0x18e   : > { %v947_v1 = vpop.f32.mrf.mxu2 }
 0x18f   : > { %v997_v7 = vadd.f32 %v947_v1, %v746_v58  ;;  %v1181_v19 = vpop.f32.mrf.mxu3 }
 0x190   : > { %v747_v49 = vpop.f32.mrf.mxu1 }
 0x191   : > { %v1231_v22 = vadd.f32 %v1181_v19, %v997_v7  ;;  %v748_v16 = vadd.f32 %v747_v49, %v3807_v12  ;;  %v1485_v49 = vld [vmem:[#allocation2 + $0x7a] sm:$0xff] }
 0x192   : > { %v1417_v39 = vpop.f32.mrf.mxu0 }
 0x193   : > { %v3983_v60 = vadd.f32 %v1415_v28, %v1231_v22 }
 0x196   : > { %v949_v63 = vpop.f32.mrf.mxu2 }
 0x197   : > { %v998_v21 = vadd.f32 %v949_v63, %v748_v16  ;;  %v1183_v8 = vpop.f32.mrf.mxu3  ;;  %v1955_v16 = vld [vmem:[#allocation2 + $0x99] sm:$0xff]  ;;  %v1748_v63 = vpack.c.bf16 %v1721_v15, %v1720_v4  ;;  %v1956_v4 = vld [vmem:[#allocation2 + $0xa9] sm:$0xff]  ;;  %v1957_v15 = vld [vmem:[#allocation2 + $0xb1] sm:$0xff] }
 0x198   : > { %v750_v51 = vpop.f32.mrf.mxu1 }
 0x199   : > { %v1232_v33 = vadd.f32 %v1183_v8, %v998_v21  ;;  %v751_v12 = vadd.f32 %v750_v51, %v3822_v20  ;;  %v1513_v20 = vpack.c.bf16 %v1486_v42, %v1485_v49  ;;  %v1982_v8 = vpack.c.bf16 %v1955_v16, %v1954_v43  ;;  %v1722_v49 = vld [vmem:[#allocation2 + $0xa8] sm:$0xff]  ;;  %v1723_v42 = vld [vmem:[#allocation2 + $0xb0] sm:$0xff] }
 0x19a   : > { %v1420_v10 = vpop.f32.mrf.mxu0  ;;  %v1749_v16 = vpack.c.bf16 %v1723_v42, %v1722_v49 }
 0x19b   : > { %1613 = vmatmul.bf16.gmra.mxu1 %v1512_v2  ;;  %1848 = vmatmul.bf16.gmra.mxu2 %v1747_v0  ;;  %v3986_v5 = vadd.f32 %v1417_v39, %v1232_v33 }
 0x19c   : > { %2082 = vmatmul.bf16.gmra.mxu3 %v1981_v9 }
 0x19d   : > { %2316 = vmatmul.bf16.gmra.mxu0 %v3759_v41 }
 0x19e   : > { %v952_v23 = vpop.f32.mrf.mxu2 }
 0x19f   : > { %v999_v28 = vadd.f32 %v952_v23, %v751_v12  ;;  %v1186_v58 = vpop.f32.mrf.mxu3 }
 0x1a0   : > { %v752_v1 = vpop.f32.mrf.mxu1 }
 0x1a1   : > { %v1233_v7 = vadd.f32 %v1186_v58, %v999_v28  ;;  %v753_v39 = vadd.f32 %v752_v1, %v3830_v37  ;;  %v1487_v58 = vld [vmem:[#allocation2 + $0x92] sm:$0xff] }
 0x1a2   : > { %v1422_v19 = vpop.f32.mrf.mxu0 }
 0x1a3   : > { %v3990_v22 = vadd.f32 %v1420_v10, %v1233_v7  ;;  %v1488_v7 = vld [vmem:[#allocation2 + $0x9a] sm:$0xff] }
 0x1a6   : > { %v954_v46 = vpop.f32.mrf.mxu2 }
 0x1a7   : > { %v1000_v41 = vadd.f32 %v954_v46, %v753_v39  ;;  %v1188_v50 = vpop.f32.mrf.mxu3 }
 0x1a8   : > { %v755_v21 = vpop.f32.mrf.mxu1 }
 0x1a9   : > { %v1234_v2 = vadd.f32 %v1188_v50, %v1000_v41  ;;  %v756_v37 = vadd.f32 %v755_v21, %v3743_v29  ;;  %v1514_v29 = vpack.c.bf16 %v1488_v7, %v1487_v58  ;;  %v1983_v41 = vpack.c.bf16 %v1957_v15, %v1956_v4 }
 0x1aa   : > { %v1425_v0 = vpop.f32.mrf.mxu0 }
 0x1ab   : > { %1618 = vmatmul.bf16.gmra.mxu1 %v1513_v20  ;;  %1853 = vmatmul.bf16.gmra.mxu2 %v1748_v63  ;;  %v3993_v51 = vadd.f32 %v1422_v19, %v1234_v2 }
 0x1ac   : > { %2087 = vmatmul.bf16.gmra.mxu3 %v1982_v8 }
 0x1ad   : > { %2321 = vmatmul.bf16.gmra.mxu0 %v3779_v55 }
 0x1ae   : > { %v957_v9 = vpop.f32.mrf.mxu2 }
 0x1af   : > { %v1001_v33 = vadd.f32 %v957_v9, %v756_v37  ;;  %v1191_v10 = vpop.f32.mrf.mxu3 }
 0x1b0   : > { %v757_v12 = vpop.f32.mrf.mxu1 }
 0x1b1   : > { %v1235_v23 = vadd.f32 %v1191_v10, %v1001_v33  ;;  %v758_v19 = vadd.f32 %v757_v12, %v3757_v40  ;;  %v1958_v12 = vld [vmem:[#allocation2 + $0xc1] sm:$0xff] }
 0x1b2   : > { %v1427_v28 = vpop.f32.mrf.mxu0 }
 0x1b3   : > { %v3997_v1 = vadd.f32 %v1425_v0, %v1235_v23  ;;  %v1959_v23 = vld [vmem:[#allocation2 + $0xc9] sm:$0xff] }
 0x1b4   : > { %v1984_v42 = vpack.c.bf16 %v1959_v23, %v1958_v12 }
 0x1b6   : > { %v959_v39 = vpop.f32.mrf.mxu2 }
 0x1b7   : > { %v1002_v55 = vadd.f32 %v959_v39, %v758_v19  ;;  %v1193_v43 = vpop.f32.mrf.mxu3 }
 0x1b8   : > { %v760_v46 = vpop.f32.mrf.mxu1 }
 0x1b9   : > { %v1236_v50 = vadd.f32 %v1193_v43, %v1002_v55  ;;  %v761_v40 = vadd.f32 %v760_v46, %v3769_v48  ;;  %v1491_v46 = vld [vmem:[#allocation2 + $0xc2] sm:$0xff] }
 0x1ba   : > { %v1430_v20 = vpop.f32.mrf.mxu0 }
 0x1bb   : > { %1623 = vmatmul.bf16.gmra.mxu1 %v1514_v29  ;;  %1858 = vmatmul.bf16.gmra.mxu2 %v1749_v16  ;;  %v4000_v63 = vadd.f32 %v1427_v28, %v1236_v50  ;;  %v1492_v50 = vld [vmem:[#allocation2 + $0xca] sm:$0xff] }
 0x1bc   : > { %2092 = vmatmul.bf16.gmra.mxu3 %v1983_v41 }
 0x1bd   : > { %2326 = vmatmul.bf16.gmra.mxu0 %v3811_v14 }
 0x1be   : > { %v962_v21 = vpop.f32.mrf.mxu2 }
 0x1bf   : > { %v1003_v8 = vadd.f32 %v962_v21, %v761_v40  ;;  %v1196_v2 = vpop.f32.mrf.mxu3  ;;  %v1960_v40 = vld [vmem:[#allocation2 + $0xd9] sm:$0xff]  ;;  %v1961_v21 = vld [vmem:[#allocation2 + $0xe1] sm:$0xff] }
 0x1c0   : > { %v762_v0 = vpop.f32.mrf.mxu1 }
 0x1c1   : > { %v1237_v37 = vadd.f32 %v1196_v2, %v1003_v8  ;;  %v763_v10 = vadd.f32 %v762_v0, %v3777_v59 }
 0x1c2   : > { %v1432_v9 = vpop.f32.mrf.mxu0 }
 0x1c3   : > { %v4004_v33 = vadd.f32 %v1430_v20, %v1237_v37  ;;  %v1727_v20 = vld [vmem:[#allocation2 + $0xe0] sm:$0xff] }
 0x1c6   : > { %v964_v58 = vpop.f32.mrf.mxu2 }
 0x1c7   : > { %v1004_v28 = vadd.f32 %v964_v58, %v763_v10  ;;  %v1198_v7 = vpop.f32.mrf.mxu3 }
 0x1c8   : > { %v765_v49 = vpop.f32.mrf.mxu1 }
 0x1c9   : > { %v1238_v19 = vadd.f32 %v1198_v7, %v1004_v28  ;;  %v766_v59 = vadd.f32 %v765_v49, %v3795_v3  ;;  %v1516_v3 = vpack.c.bf16 %v1492_v50, %v1491_v46 }
 0x1ca   : > { %v1435_v4 = vpop.f32.mrf.mxu0 }
 0x1cb   : > { %1628 = vmatmul.bf16.gmra.mxu1 %v3811_v14  ;;  %1863 = vmatmul.bf16.gmra.mxu2 %v3815_v18  ;;  %v4009_v48 = vadd.f32 %v1432_v9, %v1238_v19  ;;  %v1726_v14 = vld [vmem:[#allocation2 + $0xd8] sm:$0xff]  ;;  %v1985_v9 = vpack.c.bf16 %v1961_v21, %v1960_v40 }
 0x1cc   : > { %2097 = vmatmul.bf16.gmra.mxu3 %v1984_v42  ;;  %v1751_v0 = vpack.c.bf16 %v1727_v20, %v1726_v14 }
 0x1cd   : > { %2331 = vmatmul.bf16.gmra.mxu0 %v3834_v45 }
 0x1ce   : > { %v967_v15 = vpop.f32.mrf.mxu2 }
 0x1cf   : > { %v1005_v39 = vadd.f32 %v967_v15, %v766_v59  ;;  %v1201_v55 = vpop.f32.mrf.mxu3  ;;  %v1962_v15 = vld [vmem:[#allocation2 + $0xf1] sm:$0xff] }
 0x1d0   : > { %v767_v43 = vpop.f32.mrf.mxu1 }
 0x1d1   : > { %v1239_v29 = vadd.f32 %v1201_v55, %v1005_v39  ;;  %v768_v18 = vadd.f32 %v767_v43, %v3809_v13  ;;  %v1963_v39 = vld [vmem:[#allocation2 + $0xf9] sm:$0xff] }
 0x1d2   : > { %v1437_v16 = vpop.f32.mrf.mxu0  ;;  %v1986_v46 = vpack.c.bf16 %v1963_v39, %v1962_v15 }
 0x1d3   : > { %v4013_v41 = vadd.f32 %v1435_v4, %v1239_v29 }
 0x1d6   : > { %v969_v8 = vpop.f32.mrf.mxu2 }
 0x1d7   : > { %v1006_v45 = vadd.f32 %v969_v8, %v768_v18  ;;  %v1203_v2 = vpop.f32.mrf.mxu3 }
 0x1d8   : > { %v770_v37 = vpop.f32.mrf.mxu1 }
 0x1d9   : > { %v1240_v10 = vadd.f32 %v1203_v2, %v1006_v45  ;;  %v771_v13 = vadd.f32 %v770_v37, %v3824_v25  ;;  %v4117_v2 = vld [vmem:[#allocation3_spill] sm:$0xff] }
 0x1da   : > { %v1440_v12 = vpop.f32.mrf.mxu0 }
 0x1db   : > { %1633 = vmatmul.bf16.gmra.mxu1 %v1516_v3  ;;  %1868 = vmatmul.bf16.gmra.mxu2 %v1751_v0  ;;  %v4016_v23 = vadd.f32 %v1437_v16, %v1240_v10  ;;  %v1964_v0 = vld [vmem:[#allocation2 + $0x109] sm:$0xff] }
 0x1dc   : > { %2102 = vmatmul.bf16.gmra.mxu3 %v1985_v9 }
 0x1dd   : > { %2336 = vmatmul.bf16.gmra.mxu0 %v3855_v57 }
 0x1de   : > { %v972_v58 = vpop.f32.mrf.mxu2 }
 0x1df   : > { %v1007_v28 = vadd.f32 %v972_v58, %v771_v13  ;;  %v1206_v7 = vpop.f32.mrf.mxu3 }
 0x1e0   : > { %v772_v49 = vpop.f32.mrf.mxu1 }
 0x1e1   : > { %v1241_v42 = vadd.f32 %v1206_v7, %v1007_v28  ;;  %v773_v59 = vadd.f32 %v772_v49, %v3832_v38 }
 0x1e2   : > { %v1442_v19 = vpop.f32.mrf.mxu0 }
 0x1e3   : > { %v4020_v4 = vadd.f32 %v1440_v12, %v1241_v42 }
 0x1e6   : > { %v974_v55 = vpop.f32.mrf.mxu2 }
 0x1e7   : > { %v1008_v43 = vadd.f32 %v974_v55, %v773_v59  ;;  %v1208_v29 = vpop.f32.mrf.mxu3  ;;  %v4118_v59 = vld [vmem:[#allocation4_spill] sm:$0xff] }
 0x1e8   : > { %v1599_v16 = vpop.f32.mrf.mxu1 }
 0x1e9   : > { %v1242_v50 = vadd.f32 %v1208_v29, %v1008_v43  ;;  %v1679_v38 = vadd.f32 %v1599_v16, %v3853_v11 }
 0x1ea   : > { %v2302_v14 = vpop.f32.mrf.mxu0 }
 0x1eb   : > { %1638 = vmatmul.bf16.gmra.mxu1 %v3855_v57  ;;  %1873 = vmatmul.bf16.gmra.mxu2 %v3857_v62  ;;  %v4025_v25 = vadd.f32 %v1442_v19, %v1242_v50  ;;  %v1965_v57 = vld [vmem:[#allocation2 + $0x111] sm:$0xff] }
 0x1ec   : > { %2107 = vmatmul.bf16.gmra.mxu3 %v1986_v46  ;;  %v1987_v13 = vpack.c.bf16 %v1965_v57, %v1964_v0  ;;  %v4120_v57 = vld [vmem:[#allocation7_spill] sm:$0xff] }
 0x1ed   : > { %2341 = vmatmul.bf16.gmra.mxu0 %v3868_v26 }
 0x1ee   : > { %v1834_v20 = vpop.f32.mrf.mxu2 }
 0x1ef   : > { %v2068_v18 = vpop.f32.mrf.mxu3  ;;  %v1914_v40 = vadd.f32 %v1834_v20, %v1679_v38  ;;  %v4119_v38 = vld [vmem:[#allocation5_spill] sm:$0xff] }
 0x1f0   : > { %v1601_v21 = vpop.f32.mrf.mxu1 }
 0x1f1   : > { %v2148_v45 = vadd.f32 %v2068_v18, %v1914_v40  ;;  %v1680_v3 = vadd.f32 %v1601_v21, %v4117_v2 }
 0x1f2   : > { %v2304_v8 = vpop.f32.mrf.mxu0 }
 0x1f3   : > { %v2382_v10 = vadd.f32 %v2302_v14, %v2148_v45 }
 0x1f5   : > { %v2515_v7 = vmul.f32 %v2382_v10, %v2382_v10 }
 0x1f6   : > { %v1836_v37 = vpop.f32.mrf.mxu2 }
 0x1f7   : > { %v1915_v62 = vadd.f32 %v1836_v37, %v1680_v3  ;;  %v2070_v9 = vpop.f32.mrf.mxu3 }
 0x1f8   : > { %v1604_v12 = vpop.f32.mrf.mxu1 }
 0x1f9   : > { %v2149_v58 = vadd.f32 %v2070_v9, %v1915_v62  ;;  %v1681_v15 = vadd.f32 %v1604_v12, %v4118_v59  ;;  %v1734_v59 = vld [vmem:[#allocation2 + $0x138] sm:$0xff] }
 0x1fa   : > { %v2307_v28 = vpop.f32.mrf.mxu0 }
 0x1fb   : > { %v2383_v11 = vadd.f32 %v2304_v8, %v2149_v58  ;;  %1643 = vmatmul.bf16.gmra.mxu1 %v3868_v26  ;;  %1878 = vmatmul.bf16.gmra.mxu2 %v3870_v56 }
 0x1fc   : > { %2112 = vmatmul.bf16.gmra.mxu3 %v1987_v13 }
 0x1fd   : > { %2346 = vmatmul.bf16.gmra.mxu0 %v3894_v61  ;;  %v3242_v49 = vpack.c.bf16 %v2383_v11, %v2382_v10  ;;  %v2478_v42 = vadd.f32 %v2383_v11, %v2382_v10  ;;  %v2516_v19 = vmul.f32 %v2383_v11, %v2383_v11  ;;  %v4121_v10 = vld [vmem:[#allocation6_spill] sm:$0xff] }
 0x1fe   : > { %v1839_v39 = vpop.f32.mrf.mxu2 }
 0x1ff   : > { %3243 = vst [vmem:[%s4037_s29] sm:$0xff] %v3242_v49   ;;  %v2547_v26 = vadd.f32 %v2516_v19, %v2515_v7  ;;  %v1916_v56 = vadd.f32 %v1839_v39, %v1681_v15  ;;  %v2073_v55 = vpop.f32.mrf.mxu3  ;;  %v1499_v19 = vld [vmem:[#allocation2 + $0x122] sm:$0xff] }
 0x200   : > { %v1606_v43 = vpop.f32.mrf.mxu1  ;;  %v1735_v15 = vld [vmem:[#allocation2 + $0x140] sm:$0xff] }
 0x201   : > { %v2150_v29 = vadd.f32 %v2073_v55, %v1916_v56  ;;  %v1682_v20 = vadd.f32 %v1606_v43, %v4119_v38  ;;  %v1968_v55 = vld [vmem:[#allocation2 + $0x139] sm:$0xff]  ;;  %v1969_v43 = vld [vmem:[#allocation2 + $0x141] sm:$0xff]  ;;  %v1755_v38 = vpack.c.bf16 %v1735_v15, %v1734_v59  ;;  %v1970_v59 = vld [vmem:[#allocation2 + $0x151] sm:$0xff] }
 0x202   : > { %v2309_v16 = vpop.f32.mrf.mxu0  ;;  %v1971_v15 = vld [vmem:[#allocation2 + $0x159] sm:$0xff] }
 0x203   : > { %v2384_v46 = vadd.f32 %v2307_v28, %v2150_v29 }
 0x205   : > { %v2479_v50 = vadd.f32 %v2478_v42, %v2384_v46  ;;  %v2517_v14 = vmul.f32 %v2384_v46, %v2384_v46 }
 0x206   : > { %v1841_v18 = vpop.f32.mrf.mxu2 }
 0x207   : > { %v2548_v40 = vadd.f32 %v2547_v26, %v2517_v14  ;;  %v1917_v21 = vadd.f32 %v1841_v18, %v1682_v20  ;;  %v2075_v8 = vpop.f32.mrf.mxu3  ;;  %v4122_v26 = vld [vmem:[#allocation8_spill] sm:$0xff]  ;;  %v1989_v18 = vpack.c.bf16 %v1969_v43, %v1968_v55 }
 0x208   : > { %v1609_v45 = vpop.f32.mrf.mxu1 }
 0x209   : > { %v2151_v2 = vadd.f32 %v2075_v8, %v1917_v21  ;;  %v1683_v12 = vadd.f32 %v1609_v45, %v4121_v10 }
 0x20a   : > { %v2312_v3 = vpop.f32.mrf.mxu0 }
 0x20b   : > { %v2385_v0 = vadd.f32 %v2309_v16, %v2151_v2  ;;  %1648 = vmatmul.bf16.gmra.mxu1 %v3894_v61  ;;  %1883 = vmatmul.bf16.gmra.mxu2 %v3896_v32  ;;  %v1500_v32 = vld [vmem:[#allocation2 + $0x12a] sm:$0xff] }
 0x20c   : > { %2117 = vmatmul.bf16.gmra.mxu3 %v4120_v57  ;;  %v1520_v14 = vpack.c.bf16 %v1500_v32, %v1499_v19 }
 0x20d   : > { %2351 = vmatmul.bf16.gmra.mxu0 %v3910_v34  ;;  %v3247_v37 = vpack.c.bf16 %v2385_v0, %v2384_v46  ;;  %v2480_v62 = vadd.f32 %v2479_v50, %v2385_v0  ;;  %v2518_v9 = vmul.f32 %v2385_v0, %v2385_v0  ;;  %v4123_v0 = vld [vmem:[#allocation9_spill] sm:$0xff] }
 0x20e   : > { %v1844_v13 = vpop.f32.mrf.mxu2 }
 0x20f   : > { %3334 = vst [vmem:[%s4037_s29 + $0x8] sm:$0xff] %v3247_v37   ;;  %v2549_v58 = vadd.f32 %v2548_v40, %v2518_v9  ;;  %v1918_v28 = vadd.f32 %v1844_v13, %v1683_v12  ;;  %v2078_v11 = vpop.f32.mrf.mxu3 }
 0x210   : > { %v1611_v7 = vpop.f32.mrf.mxu1 }
 0x211   : > { %v2152_v49 = vadd.f32 %v2078_v11, %v1918_v28  ;;  %v1684_v56 = vadd.f32 %v1611_v7, %v4122_v26  ;;  %v1501_v11 = vld [vmem:[#allocation2 + $0x13a] sm:$0xff]  ;;  %v1502_v7 = vld [vmem:[#allocation2 + $0x142] sm:$0xff] }
 0x212   : > { %v2314_v42 = vpop.f32.mrf.mxu0  ;;  %v1521_v55 = vpack.c.bf16 %v1502_v7, %v1501_v11  ;;  %v1972_v11 = vld [vmem:[#allocation2 + $0x169] sm:$0xff]  ;;  %v1973_v7 = vld [vmem:[#allocation2 + $0x171] sm:$0xff] }
 0x213   : > { %v2386_v61 = vadd.f32 %v2312_v3, %v2152_v49  ;;  %v1736_v49 = vld [vmem:[#allocation2 + $0x150] sm:$0xff] }
 0x215   : > { %v2481_v39 = vadd.f32 %v2480_v62, %v2386_v61  ;;  %v2519_v34 = vmul.f32 %v2386_v61, %v2386_v61 }
 0x216   : > { %v1846_v29 = vpop.f32.mrf.mxu2 }
 0x217   : > { %v2550_v16 = vadd.f32 %v2549_v58, %v2519_v34  ;;  %v1919_v46 = vadd.f32 %v1846_v29, %v1684_v56  ;;  %v2080_v50 = vpop.f32.mrf.mxu3 }
 0x218   : > { %v1614_v20 = vpop.f32.mrf.mxu1 }
 0x219   : > { %v2153_v40 = vadd.f32 %v2080_v50, %v1919_v46  ;;  %v1685_v57 = vadd.f32 %v1614_v20, %v4123_v0 }
 0x21a   : > { %v2317_v21 = vpop.f32.mrf.mxu0 }
 0x21b   : > { %v2387_v8 = vadd.f32 %v2314_v42, %v2153_v40  ;;  %1653 = vmatmul.bf16.gmra.mxu1 %v1520_v14  ;;  %1888 = vmatmul.bf16.gmra.mxu2 %v1755_v38  ;;  %v1737_v42 = vld [vmem:[#allocation2 + $0x158] sm:$0xff]  ;;  %v4125_v40 = vld [vmem:[#allocation11_spill] sm:$0xff] }
 0x21c   : > { %2122 = vmatmul.bf16.gmra.mxu3 %v1989_v18  ;;  %v1756_v43 = vpack.c.bf16 %v1737_v42, %v1736_v49 }
 0x21d   : > { %2356 = vmatmul.bf16.gmra.mxu0 %v3933_v35  ;;  %v3252_v45 = vpack.c.bf16 %v2387_v8, %v2386_v61  ;;  %v2482_v2 = vadd.f32 %v2481_v39, %v2387_v8  ;;  %v2520_v3 = vmul.f32 %v2387_v8, %v2387_v8  ;;  %v4124_v61 = vld [vmem:[#allocation10_spill] sm:$0xff] }
 0x21e   : > { %v1849_v37 = vpop.f32.mrf.mxu2 }
 0x21f   : > { %3335 = vst [vmem:[%s4037_s29 + $0x10] sm:$0xff] %v3252_v45   ;;  %v2551_v62 = vadd.f32 %v2550_v16, %v2520_v3  ;;  %v1920_v9 = vadd.f32 %v1849_v37, %v1685_v57  ;;  %v2083_v10 = vpop.f32.mrf.mxu3  ;;  %v1990_v16 = vpack.c.bf16 %v1971_v15, %v1970_v59  ;;  %v1991_v15 = vpack.c.bf16 %v1973_v7, %v1972_v11 }
 0x220   : > { %v1616_v12 = vpop.f32.mrf.mxu1 }
 0x221   : > { %v2154_v13 = vadd.f32 %v2083_v10, %v1920_v9  ;;  %v1686_v32 = vadd.f32 %v1616_v12, %v4124_v61  ;;  %v1503_v9 = vld [vmem:[#allocation2 + $0x152] sm:$0xff]  ;;  %v1504_v10 = vld [vmem:[#allocation2 + $0x15a] sm:$0xff]  ;;  %v1738_v12 = vld [vmem:[#allocation2 + $0x168] sm:$0xff] }
 0x222   : > { %v2319_v58 = vpop.f32.mrf.mxu0  ;;  %v1522_v61 = vpack.c.bf16 %v1504_v10, %v1503_v9 }
 0x223   : > { %v2388_v28 = vadd.f32 %v2317_v21, %v2154_v13  ;;  %v1739_v13 = vld [vmem:[#allocation2 + $0x170] sm:$0xff] }
 0x225   : > { %v2483_v19 = vadd.f32 %v2482_v2, %v2388_v28  ;;  %v2521_v35 = vmul.f32 %v2388_v28, %v2388_v28 }
 0x226   : > { %v1851_v39 = vpop.f32.mrf.mxu2 }
 0x227   : > { %v2552_v34 = vadd.f32 %v2551_v62, %v2521_v35  ;;  %v1921_v26 = vadd.f32 %v1851_v39, %v1686_v32  ;;  %v2085_v56 = vpop.f32.mrf.mxu3  ;;  %v1757_v32 = vpack.c.bf16 %v1739_v13, %v1738_v12 }
 0x228   : > { %v1619_v29 = vpop.f32.mrf.mxu1 }
 0x229   : > { %v2155_v46 = vadd.f32 %v2085_v56, %v1921_v26  ;;  %v1687_v21 = vadd.f32 %v1619_v29, %v4125_v40  ;;  %v1505_v40 = vld [vmem:[#allocation2 + $0x16a] sm:$0xff] }
 0x22a   : > { %v2322_v50 = vpop.f32.mrf.mxu0 }
 0x22b   : > { %v2389_v14 = vadd.f32 %v2319_v58, %v2155_v46  ;;  %1658 = vmatmul.bf16.gmra.mxu1 %v1521_v55  ;;  %1893 = vmatmul.bf16.gmra.mxu2 %v1756_v43 }
 0x22c   : > { %2127 = vmatmul.bf16.gmra.mxu3 %v1990_v16 }
 0x22d   : > { %2361 = vmatmul.bf16.gmra.mxu0 %v3942_v44  ;;  %v3257_v38 = vpack.c.bf16 %v2389_v14, %v2388_v28  ;;  %v2484_v20 = vadd.f32 %v2483_v19, %v2389_v14  ;;  %v2522_v18 = vmul.f32 %v2389_v14, %v2389_v14 }
 0x22e   : > { %v1854_v8 = vpop.f32.mrf.mxu2 }
 0x22f   : > { %3336 = vst [vmem:[%s4037_s29 + $0x18] sm:$0xff] %v3257_v38   ;;  %v2553_v45 = vadd.f32 %v2552_v34, %v2522_v18  ;;  %v1922_v2 = vadd.f32 %v1854_v8, %v1687_v21  ;;  %v2088_v3 = vpop.f32.mrf.mxu3  ;;  %v1506_v21 = vld [vmem:[#allocation2 + $0x172] sm:$0xff]  ;;  %v1740_v8 = vld [vmem:[#allocation2 + $0x180] sm:$0xff] }
 0x230   : > { %v1621_v0 = vpop.f32.mrf.mxu1 }
 0x231   : > { %v2156_v57 = vadd.f32 %v2088_v3, %v1922_v2  ;;  %v1688_v28 = vadd.f32 %v1621_v0, %v3936_v27  ;;  %v1974_v2 = vld [vmem:[#allocation2 + $0x181] sm:$0xff]  ;;  %v4126_v0 = vld [vmem:[#allocation12_spill] sm:$0xff] }
 0x232   : > { %v2324_v37 = vpop.f32.mrf.mxu0 }
 0x233   : > { %v2390_v62 = vadd.f32 %v2322_v50, %v2156_v57 }
 0x235   : > { %v2485_v58 = vadd.f32 %v2484_v20, %v2390_v62  ;;  %v2523_v44 = vmul.f32 %v2390_v62, %v2390_v62 }
 0x236   : > { %v1856_v49 = vpop.f32.mrf.mxu2 }
 0x237   : > { %v2554_v42 = vadd.f32 %v2553_v45, %v2523_v44  ;;  %v1923_v19 = vadd.f32 %v1856_v49, %v1688_v28  ;;  %v2090_v35 = vpop.f32.mrf.mxu3  ;;  %v1741_v45 = vld [vmem:[#allocation2 + $0x188] sm:$0xff] }
 0x238   : > { %v1624_v59 = vpop.f32.mrf.mxu1  ;;  %v1758_v44 = vpack.c.bf16 %v1741_v45, %v1740_v8  ;;  %v3398_v8 = vld [vmem:[#allocation2] sm:$0xff] }
 0x239   : > { %v2157_v39 = vadd.f32 %v2090_v35, %v1923_v19  ;;  %v1689_v43 = vadd.f32 %v1624_v59, %v3939_v24  ;;  %v2208_v24 = vld [vmem:[#allocation2 + $0x182] sm:$0xff]  ;;  %v1759_v45 = vpack.c.bf16 %v3398_v8, %v3398_v8 }
 0x23a   : > { %v2327_v34 = vpop.f32.mrf.mxu0 }
 0x23b   : > { %v2391_v26 = vadd.f32 %v2324_v37, %v2157_v39  ;;  %1663 = vmatmul.bf16.gmra.mxu1 %v1522_v61  ;;  %1898 = vmatmul.bf16.gmra.mxu2 %v1757_v32  ;;  %v1975_v37 = vld [vmem:[#allocation2 + $0x189] sm:$0xff] }
 0x23c   : > { %2132 = vmatmul.bf16.gmra.mxu3 %v1991_v15  ;;  %v1992_v11 = vpack.c.bf16 %v1975_v37, %v1974_v2 }
 0x23d   : > { %2366 = vmatmul.bf16.gmra.mxu0 %v3951_v36  ;;  %v3262_v27 = vpack.c.bf16 %v2391_v26, %v2390_v62  ;;  %v2486_v56 = vadd.f32 %v2485_v58, %v2391_v26  ;;  %v2524_v55 = vmul.f32 %v2391_v26, %v2391_v26  ;;  %v2209_v62 = vld [vmem:[#allocation2 + $0x18a] sm:$0xff]  ;;  %v1523_v58 = vpack.c.bf16 %v1506_v21, %v1505_v40 }
 0x23e   : > { %v1859_v29 = vpop.f32.mrf.mxu2  ;;  %v2226_v7 = vpack.c.bf16 %v2209_v62, %v2208_v24 }
 0x23f   : > { %3337 = vst [vmem:[%s4037_s29 + $0x20] sm:$0xff] %v3262_v27   ;;  %v2555_v16 = vadd.f32 %v2554_v42, %v2524_v55  ;;  %v1924_v46 = vadd.f32 %v1859_v29, %v1689_v43  ;;  %v2093_v50 = vpop.f32.mrf.mxu3  ;;  %v1976_v29 = vld [vmem:[#allocation2 + $0x199] sm:$0xff] }
 0x240   : > { %v1626_v14 = vpop.f32.mrf.mxu1 }
 0x241   : > { %v2158_v38 = vadd.f32 %v2093_v50, %v1924_v46  ;;  %v1690_v57 = vadd.f32 %v1626_v14, %v4126_v0  ;;  %v1977_v14 = vld [vmem:[#allocation2 + $0x1a1] sm:$0xff] }
 0x242   : > { %v2329_v20 = vpop.f32.mrf.mxu0 }
 0x243   : > { %v2392_v18 = vadd.f32 %v2327_v34, %v2158_v38  ;;  %v2210_v38 = vld [vmem:[#allocation2 + $0x19a] sm:$0xff] }
 0x245   : > { %v2487_v36 = vadd.f32 %v2486_v56, %v2392_v18  ;;  %v2525_v3 = vmul.f32 %v2392_v18, %v2392_v18 }
 0x246   : > { %v1861_v9 = vpop.f32.mrf.mxu2 }
 0x247   : > { %v2556_v10 = vadd.f32 %v2555_v16, %v2525_v3  ;;  %v1925_v12 = vadd.f32 %v1861_v9, %v1690_v57  ;;  %v2095_v13 = vpop.f32.mrf.mxu3 }
 0x248   : > { %v1629_v28 = vpop.f32.mrf.mxu1 }
 0x249   : > { %v2159_v49 = vadd.f32 %v2095_v13, %v1925_v12  ;;  %v1691_v59 = vadd.f32 %v1629_v28, %v3948_v30 }
 0x24a   : > { %v2332_v42 = vpop.f32.mrf.mxu0 }
 0x24b   : > { %v2393_v19 = vadd.f32 %v2329_v20, %v2159_v49  ;;  %1668 = vmatmul.bf16.gmra.mxu1 %v1523_v58  ;;  %1903 = vmatmul.bf16.gmra.mxu2 %v1758_v44  ;;  %v2211_v20 = vld [vmem:[#allocation2 + $0x1a2] sm:$0xff] }
 0x24c   : > { %2137 = vmatmul.bf16.gmra.mxu3 %v1992_v11  ;;  %v2227_v3 = vpack.c.bf16 %v2211_v20, %v2210_v38 }
 0x24d   : > { %2371 = vmatmul.bf16.gmra.mxu0 %v2226_v7  ;;  %v3267_v35 = vpack.c.bf16 %v2393_v19, %v2392_v18  ;;  %v2488_v61 = vadd.f32 %v2487_v36, %v2393_v19  ;;  %v2526_v32 = vmul.f32 %v2393_v19, %v2393_v19  ;;  %v1993_v36 = vpack.c.bf16 %v1977_v14, %v1976_v29 }
 0x24e   : > { %v1864_v15 = vpop.f32.mrf.mxu2 }
 0x24f   : > { %3338 = vst [vmem:[%s4037_s29 + $0x28] sm:$0xff] %v3267_v35   ;;  %v2557_v39 = vadd.f32 %v2556_v10, %v2526_v32  ;;  %v1926_v34 = vadd.f32 %v1864_v15, %v1691_v59  ;;  %v2098_v26 = vpop.f32.mrf.mxu3 }
 0x250   : > { %v1631_v27 = vpop.f32.mrf.mxu1 }
 0x251   : > { %v2160_v56 = vadd.f32 %v2098_v26, %v1926_v34  ;;  %v1692_v50 = vadd.f32 %v1631_v27, %v3955_v53 }
 0x252   : > { %v2334_v55 = vpop.f32.mrf.mxu0 }
 0x253   : > { %v2394_v43 = vadd.f32 %v2332_v42, %v2160_v56 }
 0x255   : > { %v2489_v16 = vadd.f32 %v2488_v61, %v2394_v43  ;;  %v2527_v46 = vmul.f32 %v2394_v43, %v2394_v43 }
 0x256   : > { %v1866_v18 = vpop.f32.mrf.mxu2 }
 0x257   : > { %v2558_v40 = vadd.f32 %v2557_v39, %v2527_v46  ;;  %v1927_v30 = vadd.f32 %v1866_v18, %v1692_v50  ;;  %v2100_v21 = vpop.f32.mrf.mxu3 }
 0x258   : > { %v1634_v2 = vpop.f32.mrf.mxu1 }
 0x259   : > { %v2161_v0 = vadd.f32 %v2100_v21, %v1927_v30  ;;  %v1693_v9 = vadd.f32 %v1634_v2, %v3958_v6 }
 0x25a   : > { %v2337_v57 = vpop.f32.mrf.mxu0 }
 0x25b   : > { %v2395_v37 = vadd.f32 %v2334_v55, %v2161_v0  ;;  %1673 = vmatmul.bf16.gmra.mxu1 %v2226_v7  ;;  %1908 = vmatmul.bf16.gmra.mxu2 %v1759_v45 }
 0x25c   : > { %2142 = vmatmul.bf16.gmra.mxu3 %v1993_v36 }
 0x25d   : > { %2376 = vmatmul.bf16.gmra.mxu0 %v2227_v3  ;;  %v3272_v53 = vpack.c.bf16 %v2395_v37, %v2394_v43  ;;  %v2490_v24 = vadd.f32 %v2489_v16, %v2395_v37  ;;  %v2528_v62 = vmul.f32 %v2395_v37, %v2395_v37 }
 0x25e   : > { %v1869_v10 = vpop.f32.mrf.mxu2 }
 0x25f   : > { %3339 = vst [vmem:[%s4037_s29 + $0x30] sm:$0xff] %v3272_v53   ;;  %v2559_v12 = vadd.f32 %v2558_v40, %v2528_v62  ;;  %v1928_v13 = vadd.f32 %v1869_v10, %v1693_v9  ;;  %v2103_v58 = vpop.f32.mrf.mxu3 }
 0x260   : > { %v1636_v44 = vpop.f32.mrf.mxu1 }
 0x261   : > { %v2162_v28 = vadd.f32 %v2103_v58, %v1928_v13  ;;  %v1694_v19 = vadd.f32 %v1636_v44, %v3963_v17 }
 0x262   : > { %v2339_v11 = vpop.f32.mrf.mxu0 }
 0x263   : > { %v2396_v49 = vadd.f32 %v2337_v57, %v2162_v28 }
 0x265   : > { %v2491_v42 = vadd.f32 %v2490_v24, %v2396_v49  ;;  %v2529_v7 = vmul.f32 %v2396_v49, %v2396_v49 }
 0x266   : > { %v1871_v35 = vpop.f32.mrf.mxu2 }
 0x267   : > { %v2560_v61 = vadd.f32 %v2559_v12, %v2529_v7  ;;  %v1929_v32 = vadd.f32 %v1871_v35, %v1694_v19  ;;  %v2105_v59 = vpop.f32.mrf.mxu3 }
 0x268   : > { %v1639_v15 = vpop.f32.mrf.mxu1 }
 0x269   : > { %v2163_v6 = vadd.f32 %v2105_v59, %v1929_v32  ;;  %v1695_v55 = vadd.f32 %v1639_v15, %v3967_v52 }
 0x26a   : > { %v2342_v39 = vpop.f32.mrf.mxu0 }
 0x26b   : > { %v2397_v34 = vadd.f32 %v2339_v11, %v2163_v6 }
 0x26d   : > { %v3277_v26 = vpack.c.bf16 %v2397_v34, %v2396_v49  ;;  %v2492_v27 = vadd.f32 %v2491_v42, %v2397_v34  ;;  %v2530_v56 = vmul.f32 %v2397_v34, %v2397_v34 }
 0x26e   : > { %v1874_v43 = vpop.f32.mrf.mxu2 }
 0x26f   : > { %3340 = vst [vmem:[%s4037_s29 + $0x38] sm:$0xff] %v3277_v26   ;;  %v2561_v29 = vadd.f32 %v2560_v61, %v2530_v56  ;;  %v1930_v16 = vadd.f32 %v1874_v43, %v1695_v55  ;;  %v2108_v46 = vpop.f32.mrf.mxu3 }
 0x270   : > { %v1641_v50 = vpop.f32.mrf.mxu1 }
 0x271   : > { %v2164_v17 = vadd.f32 %v2108_v46, %v1930_v16  ;;  %v1696_v40 = vadd.f32 %v1641_v50, %v3970_v54 }
 0x272   : > { %v2344_v14 = vpop.f32.mrf.mxu0 }
 0x273   : > { %v2398_v38 = vadd.f32 %v2342_v39, %v2164_v17 }
 0x275   : > { %v2493_v20 = vadd.f32 %v2492_v27, %v2398_v38  ;;  %v2531_v18 = vmul.f32 %v2398_v38, %v2398_v38 }
 0x276   : > { %v1876_v30 = vpop.f32.mrf.mxu2 }
 0x277   : > { %v2562_v21 = vadd.f32 %v2561_v29, %v2531_v18  ;;  %v1931_v8 = vadd.f32 %v1876_v30, %v1696_v40  ;;  %v2110_v45 = vpop.f32.mrf.mxu3 }
 0x278   : > { %v1644_v2 = vpop.f32.mrf.mxu1 }
 0x279   : > { %v2165_v52 = vadd.f32 %v2110_v45, %v1931_v8  ;;  %v1697_v53 = vadd.f32 %v1644_v2, %v3974_v31 }
 0x27a   : > { %v2347_v36 = vpop.f32.mrf.mxu0 }
 0x27b   : > { %v2399_v3 = vadd.f32 %v2344_v14, %v2165_v52 }
 0x27d   : > { %v3282_v0 = vpack.c.bf16 %v2399_v3, %v2398_v38  ;;  %v2494_v57 = vadd.f32 %v2493_v20, %v2399_v3  ;;  %v2532_v37 = vmul.f32 %v2399_v3, %v2399_v3 }
 0x27e   : > { %v1879_v24 = vpop.f32.mrf.mxu2 }
 0x27f   : > { %3341 = vst [vmem:[%s4037_s29 + $0x40] sm:$0xff] %v3282_v0   ;;  %v2563_v62 = vadd.f32 %v2562_v21, %v2532_v37  ;;  %v1932_v9 = vadd.f32 %v1879_v24, %v1697_v53  ;;  %v2113_v10 = vpop.f32.mrf.mxu3 }
 0x280   : > { %v1646_v12 = vpop.f32.mrf.mxu1 }
 0x281   : > { %v2166_v54 = vadd.f32 %v2113_v10, %v1932_v9  ;;  %v1698_v11 = vadd.f32 %v1646_v12, %v3979_v47 }
 0x282   : > { %v2349_v13 = vpop.f32.mrf.mxu0 }
 0x283   : > { %v2400_v58 = vadd.f32 %v2347_v36, %v2166_v54 }
 0x285   : > { %v2495_v44 = vadd.f32 %v2494_v57, %v2400_v58  ;;  %v2533_v28 = vmul.f32 %v2400_v58, %v2400_v58 }
 0x286   : > { %v1881_v49 = vpop.f32.mrf.mxu2 }
 0x287   : > { %v2564_v42 = vadd.f32 %v2563_v62, %v2533_v28  ;;  %v1933_v7 = vadd.f32 %v1881_v49, %v1698_v11  ;;  %v2115_v19 = vpop.f32.mrf.mxu3 }
 0x288   : > { %v1649_v35 = vpop.f32.mrf.mxu1 }
 0x289   : > { %v2167_v31 = vadd.f32 %v2115_v19, %v1933_v7  ;;  %v1699_v39 = vadd.f32 %v1649_v35, %v3983_v60 }
 0x28a   : > { %v2352_v61 = vpop.f32.mrf.mxu0 }
 0x28b   : > { %v2401_v32 = vadd.f32 %v2349_v13, %v2167_v31 }
 0x28d   : > { %v3287_v59 = vpack.c.bf16 %v2401_v32, %v2400_v58  ;;  %v2496_v15 = vadd.f32 %v2495_v44, %v2401_v32  ;;  %v2534_v6 = vmul.f32 %v2401_v32, %v2401_v32 }
 0x28e   : > { %v1884_v34 = vpop.f32.mrf.mxu2 }
 0x28f   : > { %3342 = vst [vmem:[%s4037_s29 + $0x48] sm:$0xff] %v3287_v59   ;;  %v2565_v26 = vadd.f32 %v2564_v42, %v2534_v6  ;;  %v1934_v27 = vadd.f32 %v1884_v34, %v1699_v39  ;;  %v2118_v56 = vpop.f32.mrf.mxu3 }
 0x290   : > { %v1651_v55 = vpop.f32.mrf.mxu1 }
 0x291   : > { %v2168_v47 = vadd.f32 %v2118_v56, %v1934_v27  ;;  %v1700_v50 = vadd.f32 %v1651_v55, %v3986_v5 }
 0x292   : > { %v2354_v43 = vpop.f32.mrf.mxu0 }
 0x293   : > { %v2402_v29 = vadd.f32 %v2352_v61, %v2168_v47 }
 0x295   : > { %v2497_v16 = vadd.f32 %v2496_v15, %v2402_v29  ;;  %v2535_v46 = vmul.f32 %v2402_v29, %v2402_v29 }
 0x296   : > { %v1886_v17 = vpop.f32.mrf.mxu2 }
 0x297   : > { %v2566_v14 = vadd.f32 %v2565_v26, %v2535_v46  ;;  %v1935_v38 = vadd.f32 %v1886_v17, %v1700_v50  ;;  %v2120_v20 = vpop.f32.mrf.mxu3 }
 0x298   : > { %v1654_v18 = vpop.f32.mrf.mxu1 }
 0x299   : > { %v2169_v60 = vadd.f32 %v2120_v20, %v1935_v38  ;;  %v1701_v2 = vadd.f32 %v1654_v18, %v3990_v22 }
 0x29a   : > { %v2357_v40 = vpop.f32.mrf.mxu0 }
 0x29b   : > { %v2403_v30 = vadd.f32 %v2354_v43, %v2169_v60 }
 0x29d   : > { %v3292_v21 = vpack.c.bf16 %v2403_v30, %v2402_v29  ;;  %v2498_v8 = vadd.f32 %v2497_v16, %v2403_v30  ;;  %v2536_v45 = vmul.f32 %v2403_v30, %v2403_v30 }
 0x29e   : > { %v1889_v52 = vpop.f32.mrf.mxu2 }
 0x29f   : > { %3343 = vst [vmem:[%s4037_s29 + $0x50] sm:$0xff] %v3292_v21   ;;  %v2567_v36 = vadd.f32 %v2566_v14, %v2536_v45  ;;  %v1936_v3 = vadd.f32 %v1889_v52, %v1701_v2  ;;  %v2123_v0 = vpop.f32.mrf.mxu3 }
 0x2a0   : > { %v1656_v57 = vpop.f32.mrf.mxu1 }
 0x2a1   : > { %v2170_v5 = vadd.f32 %v2123_v0, %v1936_v3  ;;  %v1702_v9 = vadd.f32 %v1656_v57, %v3993_v51 }
 0x2a2   : > { %v2359_v37 = vpop.f32.mrf.mxu0 }
 0x2a3   : > { %v2404_v53 = vadd.f32 %v2357_v40, %v2170_v5 }
 0x2a5   : > { %v2499_v24 = vadd.f32 %v2498_v8, %v2404_v53  ;;  %v2537_v62 = vmul.f32 %v2404_v53, %v2404_v53 }
 0x2a6   : > { %v1891_v10 = vpop.f32.mrf.mxu2 }
 0x2a7   : > { %v2568_v12 = vadd.f32 %v2567_v36, %v2537_v62  ;;  %v1937_v54 = vadd.f32 %v1891_v10, %v1702_v9  ;;  %v2125_v13 = vpop.f32.mrf.mxu3 }
 0x2a8   : > { %v1659_v58 = vpop.f32.mrf.mxu1 }
 0x2a9   : > { %v2171_v22 = vadd.f32 %v2125_v13, %v1937_v54  ;;  %v1703_v7 = vadd.f32 %v1659_v58, %v3997_v1 }
 0x2aa   : > { %v2362_v44 = vpop.f32.mrf.mxu0 }
 0x2ab   : > { %v2405_v28 = vadd.f32 %v2359_v37, %v2171_v22 }
 0x2ad   : > { %v3297_v11 = vpack.c.bf16 %v2405_v28, %v2404_v53  ;;  %v2500_v49 = vadd.f32 %v2499_v24, %v2405_v28  ;;  %v2538_v42 = vmul.f32 %v2405_v28, %v2405_v28 }
 0x2ae   : > { %v1894_v19 = vpop.f32.mrf.mxu2 }
 0x2af   : > { %3344 = vst [vmem:[%s4037_s29 + $0x58] sm:$0xff] %v3297_v11   ;;  %v2569_v35 = vadd.f32 %v2568_v12, %v2538_v42  ;;  %v1938_v31 = vadd.f32 %v1894_v19, %v1703_v7  ;;  %v2128_v61 = vpop.f32.mrf.mxu3 }
 0x2b0   : > { %v1661_v32 = vpop.f32.mrf.mxu1 }
 0x2b1   : > { %v2172_v51 = vadd.f32 %v2128_v61, %v1938_v31  ;;  %v1704_v34 = vadd.f32 %v1661_v32, %v4000_v63 }
 0x2b2   : > { %v2364_v59 = vpop.f32.mrf.mxu0 }
 0x2b3   : > { %v2406_v15 = vadd.f32 %v2362_v44, %v2172_v51 }
 0x2b5   : > { %v2501_v6 = vadd.f32 %v2500_v49, %v2406_v15  ;;  %v2539_v39 = vmul.f32 %v2406_v15, %v2406_v15 }
 0x2b6   : > { %v1896_v26 = vpop.f32.mrf.mxu2 }
 0x2b7   : > { %v2570_v27 = vadd.f32 %v2569_v35, %v2539_v39  ;;  %v1939_v56 = vadd.f32 %v1896_v26, %v1704_v34  ;;  %v2130_v55 = vpop.f32.mrf.mxu3 }
 0x2b8   : > { %v1664_v47 = vpop.f32.mrf.mxu1 }
 0x2b9   : > { %v2173_v1 = vadd.f32 %v2130_v55, %v1939_v56  ;;  %v1705_v17 = vadd.f32 %v1664_v47, %v4004_v33 }
 0x2ba   : > { %v2367_v43 = vpop.f32.mrf.mxu0 }
 0x2bb   : > { %v2407_v29 = vadd.f32 %v2364_v59, %v2173_v1 }
 0x2bd   : > { %v3302_v16 = vpack.c.bf16 %v2407_v29, %v2406_v15  ;;  %v2502_v46 = vadd.f32 %v2501_v6, %v2407_v29  ;;  %v2540_v50 = vmul.f32 %v2407_v29, %v2407_v29 }
 0x2be   : > { %v1899_v14 = vpop.f32.mrf.mxu2 }
 0x2bf   : > { %3345 = vst [vmem:[%s4037_s29 + $0x60] sm:$0xff] %v3302_v16   ;;  %v2571_v38 = vadd.f32 %v2570_v27, %v2540_v50  ;;  %v1940_v20 = vadd.f32 %v1899_v14, %v1705_v17  ;;  %v2133_v18 = vpop.f32.mrf.mxu3 }
 0x2c0   : > { %v1666_v60 = vpop.f32.mrf.mxu1 }
 0x2c1   : > { %v2174_v63 = vadd.f32 %v2133_v18, %v1940_v20  ;;  %v1706_v45 = vadd.f32 %v1666_v60, %v4009_v48 }
 0x2c2   : > { %v2369_v40 = vpop.f32.mrf.mxu0 }
 0x2c3   : > { %v2408_v30 = vadd.f32 %v2367_v43, %v2174_v63 }
 0x2c5   : > { %v2503_v21 = vadd.f32 %v2502_v46, %v2408_v30  ;;  %v2541_v8 = vmul.f32 %v2408_v30, %v2408_v30 }
 0x2c6   : > { %v1901_v2 = vpop.f32.mrf.mxu2 }
 0x2c7   : > { %v2572_v52 = vadd.f32 %v2571_v38, %v2541_v8  ;;  %v1941_v36 = vadd.f32 %v1901_v2, %v1706_v45  ;;  %v2135_v3 = vpop.f32.mrf.mxu3 }
 0x2c8   : > { %v1669_v0 = vpop.f32.mrf.mxu1 }
 0x2c9   : > { %v2175_v33 = vadd.f32 %v2135_v3, %v1941_v36  ;;  %v1707_v62 = vadd.f32 %v1669_v0, %v4013_v41 }
 0x2ca   : > { %v2372_v5 = vpop.f32.mrf.mxu0 }
 0x2cb   : > { %v2409_v57 = vadd.f32 %v2369_v40, %v2175_v33 }
 0x2cd   : > { %v3307_v37 = vpack.c.bf16 %v2409_v57, %v2408_v30  ;;  %v2504_v53 = vadd.f32 %v2503_v21, %v2409_v57  ;;  %v2542_v24 = vmul.f32 %v2409_v57, %v2409_v57 }
 0x2ce   : > { %v1904_v9 = vpop.f32.mrf.mxu2 }
 0x2cf   : > { %3346 = vst [vmem:[%s4037_s29 + $0x68] sm:$0xff] %v3307_v37   ;;  %v2573_v10 = vadd.f32 %v2572_v52, %v2542_v24  ;;  %v1942_v12 = vadd.f32 %v1904_v9, %v1707_v62  ;;  %v2138_v54 = vpop.f32.mrf.mxu3 }
 0x2d0   : > { %v1671_v13 = vpop.f32.mrf.mxu1 }
 0x2d1   : > { %v2176_v48 = vadd.f32 %v2138_v54, %v1942_v12  ;;  %v1708_v28 = vadd.f32 %v1671_v13, %v4016_v23 }
 0x2d2   : > { %v2374_v11 = vpop.f32.mrf.mxu0 }
 0x2d3   : > { %v2410_v58 = vadd.f32 %v2372_v5, %v2176_v48 }
 0x2d5   : > { %v2505_v22 = vadd.f32 %v2504_v53, %v2410_v58  ;;  %v2543_v44 = vmul.f32 %v2410_v58, %v2410_v58 }
 0x2d6   : > { %v1906_v49 = vpop.f32.mrf.mxu2 }
 0x2d7   : > { %v2574_v42 = vadd.f32 %v2573_v10, %v2543_v44  ;;  %v1943_v7 = vadd.f32 %v1906_v49, %v1708_v28  ;;  %v2140_v19 = vpop.f32.mrf.mxu3 }
 0x2d8   : > { %v1674_v35 = vpop.f32.mrf.mxu1 }
 0x2d9   : > { %v2177_v41 = vadd.f32 %v2140_v19, %v1943_v7  ;;  %v1709_v59 = vadd.f32 %v1674_v35, %v4020_v4 }
 0x2da   : > { %v2377_v26 = vpop.f32.mrf.mxu0 }
 0x2db   : > { %v2411_v31 = vadd.f32 %v2374_v11, %v2177_v41 }
 0x2dd   : > { %v3312_v61 = vpack.c.bf16 %v2411_v31, %v2410_v58  ;;  %v2506_v32 = vadd.f32 %v2505_v22, %v2411_v31  ;;  %v2544_v51 = vmul.f32 %v2411_v31, %v2411_v31 }
 0x2de   : > { %v1909_v15 = vpop.f32.mrf.mxu2 }
 0x2df   : > { %3347 = vst [vmem:[%s4037_s29 + $0x70] sm:$0xff] %v3312_v61   ;;  %v2575_v6 = vadd.f32 %v2574_v42, %v2544_v51  ;;  %v1944_v39 = vadd.f32 %v1909_v15, %v1709_v59  ;;  %v2143_v34 = vpop.f32.mrf.mxu3 }
 0x2e0   : > { %v1676_v27 = vpop.f32.mrf.mxu1 }
 0x2e1   : > { %v2178_v23 = vadd.f32 %v2143_v34, %v1944_v39  ;;  %v1710_v1 = vadd.f32 %v1676_v27, %v4025_v25 }
 0x2e2   : > { %v2379_v4 = vpop.f32.mrf.mxu0 }
 0x2e3   : > { %v2412_v56 = vadd.f32 %v2377_v26, %v2178_v23 }
 0x2e5   : > { %v2507_v55 = vadd.f32 %v2506_v32, %v2412_v56  ;;  %v2545_v47 = vmul.f32 %v2412_v56, %v2412_v56 }
 0x2e6   : > { %v1911_v43 = vpop.f32.mrf.mxu2 }
 0x2e7   : > { %v2576_v29 = vadd.f32 %v2575_v6, %v2545_v47  ;;  %v1945_v16 = vadd.f32 %v1911_v43, %v1710_v1  ;;  %v2145_v46 = vpop.f32.mrf.mxu3 }
 0x2e9   : > { %v2179_v50 = vadd.f32 %v2145_v46, %v1945_v16 }
 0x2eb   : > { %v2413_v17 = vadd.f32 %v2379_v4, %v2179_v50 }
 0x2ed   : > { %v3317_v14 = vpack.c.bf16 %v2413_v17, %v2412_v56  ;;  %v2508_v38 = vadd.f32 %v2507_v55, %v2413_v17  ;;  %v2546_v20 = vmul.f32 %v2413_v17, %v2413_v17 }
 0x2ef   : > { %3348 = vst [vmem:[%s4037_s29 + $0x78] sm:$0xff] %v3317_v14   ;;  %v2509_v18 = vrot.slane %v2508_v38, 4  ;;  %v2577_v60 = vadd.f32 %v2576_v29, %v2546_v20 }
 0x2f1   : > { %v2510_v63 = vadd.f32 %v2509_v18, %v2508_v38  ;;  %v2578_v40 = vrot.slane %v2577_v60, 4 }
 0x2f3   : > { %v2511_v30 = vrot.slane %v2510_v63, 2  ;;  %v2579_v21 = vadd.f32 %v2578_v40, %v2577_v60 }
 0x2f5   : > { %v2512_v8 = vadd.f32 %v2511_v30, %v2510_v63  ;;  %v2580_v25 = vrot.slane %v2579_v21, 2 }
 0x2f7   : > { %v2513_v45 = vrot.slane %v2512_v8, 1  ;;  %v2581_v2 = vadd.f32 %v2580_v25, %v2579_v21 }
 0x2f9   : > { %v2582_v52 = vrot.slane %v2581_v2, 1  ;;  %v2514_v36 = vadd.f32 %v2513_v45, %v2512_v8 }
 0x2fb   : > { %v2583_v3 = vadd.f32 %v2582_v52, %v2581_v2 }
 0x2fd   : > { %v2585_v0 = vsel %vm2584_vm0, %v2514_v36, %v2583_v3 }
 0x2fe   : > { %2586 = vst [vmem:[%s235_s7] sm:$0x3] %v2585_v0 }
 0x2ff PF: > { %s16_s18 = sadd.s32 1, %s3405_s18  }
 0x300   : > { %p13_p4 = scmp.ge.s32.totalorder %s16_s18, 4  }
 0x302   :  { %15 = sbr.rel (!%p13_p4) target bundleno = 1 (0x1), region = 89 }

</bundles_post_ra>
